<compile_context>
chip_gen: v7x
topology: tpu7x:2x2x1
jax: 0.10.0
libtpu: 0.0.40
codegen_flags: <defaults>
</compile_context>

<pallas_src>
import functools

import jax
import jax.numpy as jnp
import numpy as np
from jax import lax
from jax.experimental import pallas as pl
from jax.experimental.pallas import tpu as pltpu


def block_kernel(x_ref, wq_ref, wkv_ref, wp_ref, bp_ref,
                 g1_ref, be1_ref, w1_ref, bf1_ref, w2_ref, bf2_ref,
                 g2_ref, be2_ref, o_ref,
                 m_scr, l_scr, acc_scr,
                 *, num_heads, head_size, q_tile, kv_tile, ln_eps):
    H, D, TQ, TK = num_heads, head_size, q_tile, kv_tile
    HD = H * D
    f32 = jnp.float32
    C = x_ref.shape[-1]

    qi = pl.program_id(1)
    row0 = pl.multiple_of(qi * TQ, TQ)

    xq = x_ref[pl.ds(row0, TQ), :]                                   # (TQ, C)

    # ---- fused Q projection: all heads in one lane-dense matmul ----
    q_all = jnp.dot(xq, wq_ref[...], preferred_element_type=f32)     # (TQ, H*D)
    q_heads = [q_all[:, h * D:(h + 1) * D] for h in range(H)]        # static lane slices

    # ---- online-softmax state (VMEM scratch) ----
    m_scr[...] = jnp.full_like(m_scr, -1e30)
    l_scr[...] = jnp.zeros_like(l_scr)
    acc_scr[...] = jnp.zeros_like(acc_scr)

    scale = float(D) ** -0.5

    # ---- flash-style loop over causal KV tiles (ki <= qi since TK == TQ) ----
    @pl.loop(0, qi + 1)
    def _(ki):
        k0 = pl.multiple_of(ki * TK, TK)
        x_kv = x_ref[pl.ds(k0, TK), :]                               # (TK, C)
        # fused K|V projection for this tile in one wide matmul
        kv = jnp.dot(x_kv, wkv_ref[...], preferred_element_type=f32)  # (TK, 2*H*D)

        # additive causal mask for this (q-tile, kv-tile) pair; shared by all heads
        q_pos = row0 + lax.broadcasted_iota(jnp.int32, (TQ, TK), 0)
        k_pos = k0 + lax.broadcasted_iota(jnp.int32, (TQ, TK), 1)
        bias = jnp.where(q_pos >= k_pos, 0.0, -1e30).astype(f32)     # (TQ, TK)

        for h in range(H):                     # static unroll; state lives in VMEM scratch
            k_h = kv[:, h * D:(h + 1) * D]                           # (TK, D)
            v_h = kv[:, HD + h * D:HD + (h + 1) * D]                 # (TK, D)
            # scores without materializing k.T
            s = lax.dot_general(q_heads[h], k_h,
                                dimension_numbers=(((1,), (1,)), ((), ())),
                                preferred_element_type=f32)          # (TQ, TK)
            s = s * scale + bias
            m_prev = m_scr[h]                                        # (TQ, 1)
            m_new = jnp.maximum(m_prev, jnp.max(s, axis=-1, keepdims=True))
            alpha = jnp.exp(m_prev - m_new)
            p = jnp.exp(s - m_new)                                   # (TQ, TK)
            l_scr[h] = alpha * l_scr[h] + jnp.sum(p, axis=-1, keepdims=True)
            acc_scr[h] = alpha * acc_scr[h] + jnp.dot(
                p, v_h, preferred_element_type=f32)
            m_scr[h] = m_new

    # ---- output projection folded per head (no lane-axis concatenate) ----
    attn = jnp.zeros((TQ, C), f32)
    for h in range(H):
        ctx_h = acc_scr[h] * pl.reciprocal(l_scr[h], approx=True)    # (TQ, D)
        attn = attn + jnp.dot(ctx_h, wp_ref[pl.ds(h * D, D), :],
                              preferred_element_type=f32)            # (TQ, C)
    attn = attn + bp_ref[...]
    # dropout(attn): identity (eval mode)

    def layer_norm(h, g_ref, b_ref):
        mu = jnp.mean(h, axis=-1, keepdims=True)
        c = h - mu
        var = jnp.mean(c * c, axis=-1, keepdims=True)
        return c * lax.rsqrt(var + ln_eps) * g_ref[...] + b_ref[...]

    # ---- residual + LayerNorm 1 ----
    h1 = layer_norm(xq + attn, g1_ref, be1_ref)                      # (TQ, C)

    # ---- feed-forward: Linear(C,4C) -> ReLU -> Linear(4C,C); dropout = identity ----
    ff = jnp.dot(h1, w1_ref[...], preferred_element_type=f32) + bf1_ref[...]
    ff = jnp.maximum(ff, 0.0)
    ff = jnp.dot(ff, w2_ref[...], preferred_element_type=f32) + bf2_ref[...]

    # ---- residual + LayerNorm 2 ----
    out = layer_norm(h1 + ff, g2_ref, be2_ref)
    o_ref[...] = out.astype(o_ref.dtype)


def transformer_block(x, wq, wkv, wp, bp, g1, be1, w1, bf1, w2, bf2, g2, be2,
                      *, num_heads, q_tile=None):
    """
    x   : (B, T, C) float32
    wq  : (C, H*D)   fused per-head query projection (lane-dense)
    wkv : (C, 2*H*D) fused key|value projection (lane-dense, K cols then V cols)
    wp  : (H*D, C)   attention output projection, bp : (C,)
    g1, be1 / g2, be2 : (C,) LayerNorm scale / shift
    w1 : (C, 4C), bf1 : (4C,), w2 : (4C, C), bf2 : (C,)
    returns (B, T, C)
    """
    B, T, C = x.shape
    HD = wq.shape[1]
    D = HD // num_heads
    TQ = q_tile if q_tile is not None else min(T, 128)
    assert T % TQ == 0 and TQ % 8 == 0, "T must be a multiple of the query tile"
    NQ = T // TQ

    kernel = functools.partial(
        block_kernel, num_heads=num_heads, head_size=D,
        q_tile=TQ, kv_tile=TQ, ln_eps=1e-5)

    def full(shape):  # grid-invariant (weights / params)
        return pl.BlockSpec(shape, lambda b, qi: (0,) * len(shape))

    row = lambda a: a.reshape(1, -1)

    return pl.pallas_call(
        kernel,
        out_shape=jax.ShapeDtypeStruct((B, T, C), x.dtype),
        grid=(B, NQ),
        in_specs=[
            pl.BlockSpec((None, T, C), lambda b, qi: (b, 0, 0)),   # x (full seq per batch)
            full((C, HD)),           # wq
            full((C, 2 * HD)),       # wkv
            full((HD, C)),           # wp
            full((1, C)),            # bp
            full((1, C)),            # ln1 gamma
            full((1, C)),            # ln1 beta
            full((C, 4 * C)),        # ffn w1
            full((1, 4 * C)),        # ffn b1
            full((4 * C, C)),        # ffn w2
            full((1, C)),            # ffn b2
            full((1, C)),            # ln2 gamma
            full((1, C)),            # ln2 beta
        ],
        out_specs=pl.BlockSpec((None, TQ, C), lambda b, qi: (b, qi, 0)),
        scratch_shapes=[
            pltpu.VMEM((num_heads, TQ, 1), jnp.float32),   # running max  m
            pltpu.VMEM((num_heads, TQ, 1), jnp.float32),   # running sum  l
            pltpu.VMEM((num_heads, TQ, D), jnp.float32),   # running context acc
        ],
        compiler_params=pltpu.CompilerParams(
            dimension_semantics=("parallel", "parallel")),
    )(x, wq, wkv, wp, row(bp), row(g1), row(be1), w1, row(bf1),
      w2, row(bf2), row(g2), row(be2))


# ----------------------------- pure-JAX reference -----------------------------

def _layer_norm_ref(h, g, b, eps=1e-5):
    mu = jnp.mean(h, axis=-1, keepdims=True)
    var = jnp.mean((h - mu) ** 2, axis=-1, keepdims=True)
    return (h - mu) / jnp.sqrt(var + eps) * g + b


def reference_block(x, wq, wk, wv, wp, bp, g1, be1, w1, bf1, w2, bf2, g2, be2,
                    *, num_heads):
    """Pure-JAX reference reproducing the PyTorch Block forward (dropout = identity)."""
    B, T, C = x.shape
    D = wq.shape[1] // num_heads
    mask = jnp.tril(jnp.ones((T, T), dtype=bool))
    heads = []
    for h in range(num_heads):
        q = x @ wq[:, h * D:(h + 1) * D]
        k = x @ wk[:, h * D:(h + 1) * D]
        v = x @ wv[:, h * D:(h + 1) * D]
        s = (q @ jnp.swapaxes(k, -1, -2)) * (D ** -0.5)
        s = jnp.where(mask, s, -jnp.inf)
        p = jax.nn.softmax(s, axis=-1)
        heads.append(p @ v)
    y = jnp.concatenate(heads, axis=-1) @ wp + bp
    h1 = _layer_norm_ref(x + y, g1, be1)
    ff = jax.nn.relu(h1 @ w1 + bf1)
    ff = ff @ w2 + bf2
    return _layer_norm_ref(h1 + ff, g2, be2)


if __name__ == "__main__":
    # Make the pure-JAX reference use true f32 matmuls (kernel accumulates in f32).
    jax.config.update("jax_default_matmul_precision", "highest")

    # small shapes consistent with the module
    B, T = 2, 8               # batch, block_size
    n_embed = 32
    n_head = 4
    head_size = n_embed // n_head      # 8
    HD = n_head * head_size            # 32

    key = jax.random.PRNGKey(0)
    ks = jax.random.split(key, 14)

    x = jax.random.normal(ks[0], (B, T, n_embed), dtype=jnp.float32)

    def unif(k, shape, scale):
        return jax.random.uniform(k, shape, minval=-scale, maxval=scale,
                                  dtype=jnp.float32)

    sc_in = 1.0 / np.sqrt(n_embed)
    sc_hd = 1.0 / np.sqrt(HD)
    sc_ff = 1.0 / np.sqrt(4 * n_embed)

    wq = unif(ks[1], (n_embed, HD), sc_in)
    wk = unif(ks[2], (n_embed, HD), sc_in)
    wv = unif(ks[3], (n_embed, HD), sc_in)
    wp = unif(ks[4], (HD, n_embed), sc_hd)
    bp = unif(ks[5], (n_embed,), sc_hd)
    g1 = 1.0 + 0.05 * jax.random.normal(ks[6], (n_embed,), dtype=jnp.float32)
    be1 = 0.05 * jax.random.normal(ks[7], (n_embed,), dtype=jnp.float32)
    w1 = unif(ks[8], (n_embed, 4 * n_embed), sc_in)
    bf1 = unif(ks[9], (4 * n_embed,), sc_in)
    w2 = unif(ks[10], (4 * n_embed, n_embed), sc_ff)
    bf2 = unif(ks[11], (n_embed,), sc_ff)
    g2 = 1.0 + 0.05 * jax.random.normal(ks[12], (n_embed,), dtype=jnp.float32)
    be2 = 0.05 * jax.random.normal(ks[13], (n_embed,), dtype=jnp.float32)

    wkv = jnp.concatenate([wk, wv], axis=1)       # fused K|V projection (C, 2*H*D)

    out = transformer_block(x, wq, wkv, wp, bp, g1, be1, w1, bf1, w2, bf2,
                            g2, be2, num_heads=n_head)
    out = jax.block_until_ready(out)

    ref = reference_block(x, wq, wk, wv, wp, bp, g1, be1, w1, bf1, w2, bf2,
                          g2, be2, num_heads=n_head)
    # tolerance covers the approximate EUP reciprocal in the softmax normalizer
    np.testing.assert_allclose(np.asarray(out), np.asarray(ref),
                               rtol=2e-2, atol=2e-2)

    print("KERNEL_OK")
</pallas_src>

<mosaic_0001>
module attributes {stable_mosaic.version = 11 : i64} {
  func.func @block_kernel(%arg0: i32, %arg1: i32, %arg2: memref<1x8x32xf32, #tpu.memory_space<vmem>>, %arg3: memref<32x32xf32, #tpu.memory_space<vmem>>, %arg4: memref<32x64xf32, #tpu.memory_space<vmem>>, %arg5: memref<32x32xf32, #tpu.memory_space<vmem>>, %arg6: memref<1x32xf32, #tpu.memory_space<vmem>>, %arg7: memref<1x32xf32, #tpu.memory_space<vmem>>, %arg8: memref<1x32xf32, #tpu.memory_space<vmem>>, %arg9: memref<32x128xf32, #tpu.memory_space<vmem>>, %arg10: memref<1x128xf32, #tpu.memory_space<vmem>>, %arg11: memref<128x32xf32, #tpu.memory_space<vmem>>, %arg12: memref<1x32xf32, #tpu.memory_space<vmem>>, %arg13: memref<1x32xf32, #tpu.memory_space<vmem>>, %arg14: memref<1x32xf32, #tpu.memory_space<vmem>>, %arg15: memref<1x8x32xf32, #tpu.memory_space<vmem>>, %arg16: memref<4x8x1xf32, #tpu.memory_space<vmem>>, %arg17: memref<4x8x1xf32, #tpu.memory_space<vmem>>, %arg18: memref<4x8x8xf32, #tpu.memory_space<vmem>>) attributes {dimension_semantics = [#tpu.dimension_semantics<parallel>, #tpu.dimension_semantics<parallel>], iteration_bounds = array<i64: 2, 1>, scalar_prefetch = 0 : i64, scratch_operands = 3 : i64, tpu.core_type = #tpu.core_type<tc>, window_params = [{transform_indices = @transform_0, window_bounds = array<i64: 1, 8, 32>}, {pipeline_mode = #tpu.pipeline_mode<synchronous>, transform_indices = @transform_1, window_bounds = array<i64: 32, 32>}, {pipeline_mode = #tpu.pipeline_mode<synchronous>, transform_indices = @transform_2, window_bounds = array<i64: 32, 64>}, {pipeline_mode = #tpu.pipeline_mode<synchronous>, transform_indices = @transform_3, window_bounds = array<i64: 32, 32>}, {pipeline_mode = #tpu.pipeline_mode<synchronous>, transform_indices = @transform_4, window_bounds = array<i64: 1, 32>}, {pipeline_mode = #tpu.pipeline_mode<synchronous>, transform_indices = @transform_5, window_bounds = array<i64: 1, 32>}, {pipeline_mode = #tpu.pipeline_mode<synchronous>, transform_indices = @transform_6, window_bounds = array<i64: 1, 32>}, {pipeline_mode = #tpu.pipeline_mode<synchronous>, transform_indices = @transform_7, window_bounds = array<i64: 32, 128>}, {pipeline_mode = #tpu.pipeline_mode<synchronous>, transform_indices = @transform_8, window_bounds = array<i64: 1, 128>}, {pipeline_mode = #tpu.pipeline_mode<synchronous>, transform_indices = @transform_9, window_bounds = array<i64: 128, 32>}, {pipeline_mode = #tpu.pipeline_mode<synchronous>, transform_indices = @transform_10, window_bounds = array<i64: 1, 32>}, {pipeline_mode = #tpu.pipeline_mode<synchronous>, transform_indices = @transform_11, window_bounds = array<i64: 1, 32>}, {pipeline_mode = #tpu.pipeline_mode<synchronous>, transform_indices = @transform_12, window_bounds = array<i64: 1, 32>}, {transform_indices = @transform_13, window_bounds = array<i64: 1, 8, 32>}]} {
    %c8_i32 = arith.constant 8 : i32
    %0 = arith.muli %arg1, %c8_i32 : i32
    %1 = tpu.assume_multiple %0, 8 : i32
    %c0 = arith.constant 0 : index
    %2 = arith.index_cast %1 : i32 to index
    %c0_0 = arith.constant 0 : index
    %3 = vector.load %arg2[%c0, %2, %c0_0] : memref<1x8x32xf32, #tpu.memory_space<vmem>>, vector<1x8x32xf32>
    %4 = vector.shape_cast %3 : vector<1x8x32xf32> to vector<8x32xf32>
    %c0_1 = arith.constant 0 : index
    %c0_2 = arith.constant 0 : index
    %5 = vector.load %arg3[%c0_1, %c0_2] : memref<32x32xf32, #tpu.memory_space<vmem>>, vector<32x32xf32>
    %cst = arith.constant dense<0.000000e+00> : vector<8x32xf32>
    %6 = tpu.matmul %4, %5, %cst {dimension_numbers = #tpu.dot_dimension_numbers<[1], [0], [0], [1], [0, 0, 1, 1], [], []>, precision = #tpu.contract_precision<fp32>} : vector<8x32xf32>, vector<32x32xf32>, vector<8x32xf32> -> vector<8x32xf32>
    %7 = vector.extract_strided_slice %6 {offsets = [0, 0], sizes = [8, 8], strides = [1, 1]} : vector<8x32xf32> to vector<8x8xf32>
    %8 = vector.extract_strided_slice %6 {offsets = [0, 8], sizes = [8, 8], strides = [1, 1]} : vector<8x32xf32> to vector<8x8xf32>
    %9 = vector.extract_strided_slice %6 {offsets = [0, 16], sizes = [8, 8], strides = [1, 1]} : vector<8x32xf32> to vector<8x8xf32>
    %10 = vector.extract_strided_slice %6 {offsets = [0, 24], sizes = [8, 8], strides = [1, 1]} : vector<8x32xf32> to vector<8x8xf32>
    %cst_3 = arith.constant -1.000000e+30 : f32
    %11 = vector.broadcast %cst_3 : f32 to vector<4x8x1xf32>
    %c0_4 = arith.constant 0 : index
    %c0_5 = arith.constant 0 : index
    %c0_6 = arith.constant 0 : index
    %12 = vector.load %arg16[%c0_4, %c0_5, %c0_6] : memref<4x8x1xf32, #tpu.memory_space<vmem>>, vector<4x8x1xf32>
    tpu.vector_store %arg16[%c0_4, %c0_5, %c0_6], %11 {strides = array<i32>} : memref<4x8x1xf32, #tpu.memory_space<vmem>>, vector<4x8x1xf32>,
    %cst_7 = arith.constant 0.000000e+00 : f32
    %13 = vector.broadcast %cst_7 : f32 to vector<4x8x1xf32>
    %c0_8 = arith.constant 0 : index
    %c0_9 = arith.constant 0 : index
    %c0_10 = arith.constant 0 : index
    %14 = vector.load %arg17[%c0_8, %c0_9, %c0_10] : memref<4x8x1xf32, #tpu.memory_space<vmem>>, vector<4x8x1xf32>
    tpu.vector_store %arg17[%c0_8, %c0_9, %c0_10], %13 {strides = array<i32>} : memref<4x8x1xf32, #tpu.memory_space<vmem>>, vector<4x8x1xf32>,
    %cst_11 = arith.constant 0.000000e+00 : f32
    %15 = vector.broadcast %cst_11 : f32 to vector<4x8x8xf32>
    %c0_12 = arith.constant 0 : index
    %c0_13 = arith.constant 0 : index
    %c0_14 = arith.constant 0 : index
    %16 = vector.load %arg18[%c0_12, %c0_13, %c0_14] : memref<4x8x8xf32, #tpu.memory_space<vmem>>, vector<4x8x8xf32>
    tpu.vector_store %arg18[%c0_12, %c0_13, %c0_14], %15 {strides = array<i32>} : memref<4x8x8xf32, #tpu.memory_space<vmem>>, vector<4x8x8xf32>,
    %c1_i32 = arith.constant 1 : i32
    %17 = arith.addi %arg1, %c1_i32 : i32
    %c0_i32 = arith.constant 0 : i32
    %18 = arith.subi %17, %c0_i32 : i32
    %c1_i32_15 = arith.constant 1 : i32
    %c1_i32_16 = arith.constant 1 : i32
    %19 = arith.subi %c1_i32_15, %c1_i32_16 : i32
    %20 = arith.addi %18, %19 : i32
    %c1_i32_17 = arith.constant 1 : i32
    %21 = arith.divsi %20, %c1_i32_17 : i32
    %c1_i32_18 = arith.constant 1 : i32
    %c0_i32_19 = arith.constant 0 : i32
    %c0_i32_20 = arith.constant 0 : i32
    %22 = arith.subi %21, %c0_i32_20 : i32
    %23 = arith.addi %c0_i32_20, %22 : i32
    %c1_i32_21 = arith.constant 1 : i32
    scf.for %arg19 = %c0_i32_20 to %23 step %c1_i32_21  : i32 {
      %129 = arith.muli %arg19, %c1_i32_18 : i32
      %130 = arith.addi %c0_i32_19, %129 : i32
      %c8_i32_87 = arith.constant 8 : i32
      %131 = arith.muli %130, %c8_i32_87 : i32
      %132 = tpu.assume_multiple %131, 8 : i32
      %c0_88 = arith.constant 0 : index
      %133 = arith.index_cast %132 : i32 to index
      %c0_89 = arith.constant 0 : index
      %134 = vector.load %arg2[%c0_88, %133, %c0_89] : memref<1x8x32xf32, #tpu.memory_space<vmem>>, vector<1x8x32xf32>
      %135 = vector.shape_cast %134 : vector<1x8x32xf32> to vector<8x32xf32>
      %c0_90 = arith.constant 0 : index
      %c0_91 = arith.constant 0 : index
      %136 = vector.load %arg4[%c0_90, %c0_91] : memref<32x64xf32, #tpu.memory_space<vmem>>, vector<32x64xf32>
      %cst_92 = arith.constant dense<0.000000e+00> : vector<8x64xf32>
      %137 = tpu.matmul %135, %136, %cst_92 {dimension_numbers = #tpu.dot_dimension_numbers<[1], [0], [0], [1], [0, 0, 1, 1], [], []>, precision = #tpu.contract_precision<fp32>} : vector<8x32xf32>, vector<32x64xf32>, vector<8x64xf32> -> vector<8x64xf32>
      %138 = tpu.iota {dimensions = array<i32: 0>} : vector<8x8xi32>
      %139 = vector.broadcast %1 : i32 to vector<8x8xi32>
      %140 = arith.addi %139, %138 : vector<8x8xi32>
      %141 = tpu.iota {dimensions = array<i32: 1>} : vector<8x8xi32>
      %142 = vector.broadcast %132 : i32 to vector<8x8xi32>
      %143 = arith.addi %142, %141 : vector<8x8xi32>
      %144 = arith.cmpi sge, %140, %143 : vector<8x8xi32>
      %cst_93 = arith.constant 0.000000e+00 : f32
      %cst_94 = arith.constant -1.000000e+30 : f32
      %145 = vector.broadcast %cst_93 : f32 to vector<8x8xf32>
      %146 = vector.broadcast %cst_94 : f32 to vector<8x8xf32>
      %147 = arith.select %144, %145, %146 : vector<8x8xi1>, vector<8x8xf32>
      %148 = vector.extract_strided_slice %137 {offsets = [0, 0], sizes = [8, 8], strides = [1, 1]} : vector<8x64xf32> to vector<8x8xf32>
      %149 = vector.extract_strided_slice %137 {offsets = [0, 32], sizes = [8, 8], strides = [1, 1]} : vector<8x64xf32> to vector<8x8xf32>
      %cst_95 = arith.constant dense<0.000000e+00> : vector<8x8xf32>
      %150 = tpu.matmul %7, %148, %cst_95 {dimension_numbers = #tpu.dot_dimension_numbers<[1], [1], [0], [0], [0, 0, 1, 0], [], []>, precision = #tpu.contract_precision<fp32>} : vector<8x8xf32>, vector<8x8xf32>, vector<8x8xf32> -> vector<8x8xf32>
      %cst_96 = arith.constant 0.353553385 : f32
      %151 = vector.broadcast %cst_96 : f32 to vector<8x8xf32>
      %152 = arith.mulf %150, %151 : vector<8x8xf32>
      %153 = arith.addf %152, %147 : vector<8x8xf32>
      %c0_97 = arith.constant 0 : index
      %c0_98 = arith.constant 0 : index
      %c0_99 = arith.constant 0 : index
      %154 = vector.load %arg16[%c0_97, %c0_98, %c0_99] : memref<4x8x1xf32, #tpu.memory_space<vmem>>, vector<1x8x1xf32>
      %155 = vector.shape_cast %154 : vector<1x8x1xf32> to vector<8x1xf32>
      %cst_100 = arith.constant dense<0xFF800000> : vector<8xf32>
      %156 = vector.multi_reduction <maximumf>, %153, %cst_100 [1] : vector<8x8xf32> to vector<8xf32>
      %157 = vector.shape_cast %156 : vector<8xf32> to vector<8x1xf32>
      %158 = arith.maximumf %155, %157 : vector<8x1xf32>
      %159 = arith.subf %155, %158 : vector<8x1xf32>
      %160 = math.exp %159 : vector<8x1xf32>
      %161 = vector.broadcast %158 : vector<8x1xf32> to vector<8x8xf32>
      %162 = arith.subf %153, %161 : vector<8x8xf32>
      %163 = math.exp %162 : vector<8x8xf32>
      %c0_101 = arith.constant 0 : index
      %c0_102 = arith.constant 0 : index
      %c0_103 = arith.constant 0 : index
      %164 = vector.load %arg17[%c0_101, %c0_102, %c0_103] : memref<4x8x1xf32, #tpu.memory_space<vmem>>, vector<1x8x1xf32>
      %165 = vector.shape_cast %164 : vector<1x8x1xf32> to vector<8x1xf32>
      %166 = arith.mulf %160, %165 : vector<8x1xf32>
      %cst_104 = arith.constant dense<0.000000e+00> : vector<8xf32>
      %167 = vector.multi_reduction <add>, %163, %cst_104 [1] : vector<8x8xf32> to vector<8xf32>
      %168 = vector.shape_cast %167 : vector<8xf32> to vector<8x1xf32>
      %169 = arith.addf %166, %168 : vector<8x1xf32>
      %c0_105 = arith.constant 0 : index
      %c0_106 = arith.constant 0 : index
      %c0_107 = arith.constant 0 : index
      %170 = vector.load %arg17[%c0_105, %c0_106, %c0_107] : memref<4x8x1xf32, #tpu.memory_space<vmem>>, vector<1x8x1xf32>
      %171 = vector.shape_cast %170 : vector<1x8x1xf32> to vector<8x1xf32>
      %172 = vector.shape_cast %169 : vector<8x1xf32> to vector<1x8x1xf32>
      tpu.vector_store %arg17[%c0_105, %c0_106, %c0_107], %172 {strides = array<i32>} : memref<4x8x1xf32, #tpu.memory_space<vmem>>, vector<1x8x1xf32>,
      %c0_108 = arith.constant 0 : index
      %c0_109 = arith.constant 0 : index
      %c0_110 = arith.constant 0 : index
      %173 = vector.load %arg18[%c0_108, %c0_109, %c0_110] : memref<4x8x8xf32, #tpu.memory_space<vmem>>, vector<1x8x8xf32>
      %174 = vector.shape_cast %173 : vector<1x8x8xf32> to vector<8x8xf32>
      %175 = vector.broadcast %160 : vector<8x1xf32> to vector<8x8xf32>
      %176 = arith.mulf %175, %174 : vector<8x8xf32>
      %cst_111 = arith.constant dense<0.000000e+00> : vector<8x8xf32>
      %177 = tpu.matmul %163, %149, %cst_111 {dimension_numbers = #tpu.dot_dimension_numbers<[1], [0], [0], [1], [0, 0, 1, 1], [], []>, precision = #tpu.contract_precision<fp32>} : vector<8x8xf32>, vector<8x8xf32>, vector<8x8xf32> -> vector<8x8xf32>
      %178 = arith.addf %176, %177 : vector<8x8xf32>
      %c0_112 = arith.constant 0 : index
      %c0_113 = arith.constant 0 : index
      %c0_114 = arith.constant 0 : index
      %179 = vector.load %arg18[%c0_112, %c0_113, %c0_114] : memref<4x8x8xf32, #tpu.memory_space<vmem>>, vector<1x8x8xf32>
      %180 = vector.shape_cast %179 : vector<1x8x8xf32> to vector<8x8xf32>
      %181 = vector.shape_cast %178 : vector<8x8xf32> to vector<1x8x8xf32>
      tpu.vector_store %arg18[%c0_112, %c0_113, %c0_114], %181 {strides = array<i32>} : memref<4x8x8xf32, #tpu.memory_space<vmem>>, vector<1x8x8xf32>,
      %c0_115 = arith.constant 0 : index
      %c0_116 = arith.constant 0 : index
      %c0_117 = arith.constant 0 : index
      %182 = vector.load %arg16[%c0_115, %c0_116, %c0_117] : memref<4x8x1xf32, #tpu.memory_space<vmem>>, vector<1x8x1xf32>
      %183 = vector.shape_cast %182 : vector<1x8x1xf32> to vector<8x1xf32>
      %184 = vector.shape_cast %158 : vector<8x1xf32> to vector<1x8x1xf32>
      tpu.vector_store %arg16[%c0_115, %c0_116, %c0_117], %184 {strides = array<i32>} : memref<4x8x1xf32, #tpu.memory_space<vmem>>, vector<1x8x1xf32>,
      %185 = vector.extract_strided_slice %137 {offsets = [0, 8], sizes = [8, 8], strides = [1, 1]} : vector<8x64xf32> to vector<8x8xf32>
      %186 = vector.extract_strided_slice %137 {offsets = [0, 40], sizes = [8, 8], strides = [1, 1]} : vector<8x64xf32> to vector<8x8xf32>
      %cst_118 = arith.constant dense<0.000000e+00> : vector<8x8xf32>
      %187 = tpu.matmul %8, %185, %cst_118 {dimension_numbers = #tpu.dot_dimension_numbers<[1], [1], [0], [0], [0, 0, 1, 0], [], []>, precision = #tpu.contract_precision<fp32>} : vector<8x8xf32>, vector<8x8xf32>, vector<8x8xf32> -> vector<8x8xf32>
      %cst_119 = arith.constant 0.353553385 : f32
      %188 = vector.broadcast %cst_119 : f32 to vector<8x8xf32>
      %189 = arith.mulf %187, %188 : vector<8x8xf32>
      %190 = arith.addf %189, %147 : vector<8x8xf32>
      %c1_120 = arith.constant 1 : index
      %c0_121 = arith.constant 0 : index
      %c0_122 = arith.constant 0 : index
      %191 = vector.load %arg16[%c1_120, %c0_121, %c0_122] : memref<4x8x1xf32, #tpu.memory_space<vmem>>, vector<1x8x1xf32>
      %192 = vector.shape_cast %191 : vector<1x8x1xf32> to vector<8x1xf32>
      %cst_123 = arith.constant dense<0xFF800000> : vector<8xf32>
      %193 = vector.multi_reduction <maximumf>, %190, %cst_123 [1] : vector<8x8xf32> to vector<8xf32>
      %194 = vector.shape_cast %193 : vector<8xf32> to vector<8x1xf32>
      %195 = arith.maximumf %192, %194 : vector<8x1xf32>
      %196 = arith.subf %192, %195 : vector<8x1xf32>
      %197 = math.exp %196 : vector<8x1xf32>
      %198 = vector.broadcast %195 : vector<8x1xf32> to vector<8x8xf32>
      %199 = arith.subf %190, %198 : vector<8x8xf32>
      %200 = math.exp %199 : vector<8x8xf32>
      %c1_124 = arith.constant 1 : index
      %c0_125 = arith.constant 0 : index
      %c0_126 = arith.constant 0 : index
      %201 = vector.load %arg17[%c1_124, %c0_125, %c0_126] : memref<4x8x1xf32, #tpu.memory_space<vmem>>, vector<1x8x1xf32>
      %202 = vector.shape_cast %201 : vector<1x8x1xf32> to vector<8x1xf32>
      %203 = arith.mulf %197, %202 : vector<8x1xf32>
      %cst_127 = arith.constant dense<0.000000e+00> : vector<8xf32>
      %204 = vector.multi_reduction <add>, %200, %cst_127 [1] : vector<8x8xf32> to vector<8xf32>
      %205 = vector.shape_cast %204 : vector<8xf32> to vector<8x1xf32>
      %206 = arith.addf %203, %205 : vector<8x1xf32>
      %c1_128 = arith.constant 1 : index
      %c0_129 = arith.constant 0 : index
      %c0_130 = arith.constant 0 : index
      %207 = vector.load %arg17[%c1_128, %c0_129, %c0_130] : memref<4x8x1xf32, #tpu.memory_space<vmem>>, vector<1x8x1xf32>
      %208 = vector.shape_cast %207 : vector<1x8x1xf32> to vector<8x1xf32>
      %209 = vector.shape_cast %206 : vector<8x1xf32> to vector<1x8x1xf32>
      tpu.vector_store %arg17[%c1_128, %c0_129, %c0_130], %209 {strides = array<i32>} : memref<4x8x1xf32, #tpu.memory_space<vmem>>, vector<1x8x1xf32>,
      %c1_131 = arith.constant 1 : index
      %c0_132 = arith.constant 0 : index
      %c0_133 = arith.constant 0 : index
      %210 = vector.load %arg18[%c1_131, %c0_132, %c0_133] : memref<4x8x8xf32, #tpu.memory_space<vmem>>, vector<1x8x8xf32>
      %211 = vector.shape_cast %210 : vector<1x8x8xf32> to vector<8x8xf32>
      %212 = vector.broadcast %197 : vector<8x1xf32> to vector<8x8xf32>
      %213 = arith.mulf %212, %211 : vector<8x8xf32>
      %cst_134 = arith.constant dense<0.000000e+00> : vector<8x8xf32>
      %214 = tpu.matmul %200, %186, %cst_134 {dimension_numbers = #tpu.dot_dimension_numbers<[1], [0], [0], [1], [0, 0, 1, 1], [], []>, precision = #tpu.contract_precision<fp32>} : vector<8x8xf32>, vector<8x8xf32>, vector<8x8xf32> -> vector<8x8xf32>
      %215 = arith.addf %213, %214 : vector<8x8xf32>
      %c1_135 = arith.constant 1 : index
      %c0_136 = arith.constant 0 : index
      %c0_137 = arith.constant 0 : index
      %216 = vector.load %arg18[%c1_135, %c0_136, %c0_137] : memref<4x8x8xf32, #tpu.memory_space<vmem>>, vector<1x8x8xf32>
      %217 = vector.shape_cast %216 : vector<1x8x8xf32> to vector<8x8xf32>
      %218 = vector.shape_cast %215 : vector<8x8xf32> to vector<1x8x8xf32>
      tpu.vector_store %arg18[%c1_135, %c0_136, %c0_137], %218 {strides = array<i32>} : memref<4x8x8xf32, #tpu.memory_space<vmem>>, vector<1x8x8xf32>,
      %c1_138 = arith.constant 1 : index
      %c0_139 = arith.constant 0 : index
      %c0_140 = arith.constant 0 : index
      %219 = vector.load %arg16[%c1_138, %c0_139, %c0_140] : memref<4x8x1xf32, #tpu.memory_space<vmem>>, vector<1x8x1xf32>
      %220 = vector.shape_cast %219 : vector<1x8x1xf32> to vector<8x1xf32>
      %221 = vector.shape_cast %195 : vector<8x1xf32> to vector<1x8x1xf32>
      tpu.vector_store %arg16[%c1_138, %c0_139, %c0_140], %221 {strides = array<i32>} : memref<4x8x1xf32, #tpu.memory_space<vmem>>, vector<1x8x1xf32>,
      %222 = vector.extract_strided_slice %137 {offsets = [0, 16], sizes = [8, 8], strides = [1, 1]} : vector<8x64xf32> to vector<8x8xf32>
      %223 = vector.extract_strided_slice %137 {offsets = [0, 48], sizes = [8, 8], strides = [1, 1]} : vector<8x64xf32> to vector<8x8xf32>
      %cst_141 = arith.constant dense<0.000000e+00> : vector<8x8xf32>
      %224 = tpu.matmul %9, %222, %cst_141 {dimension_numbers = #tpu.dot_dimension_numbers<[1], [1], [0], [0], [0, 0, 1, 0], [], []>, precision = #tpu.contract_precision<fp32>} : vector<8x8xf32>, vector<8x8xf32>, vector<8x8xf32> -> vector<8x8xf32>
      %cst_142 = arith.constant 0.353553385 : f32
      %225 = vector.broadcast %cst_142 : f32 to vector<8x8xf32>
      %226 = arith.mulf %224, %225 : vector<8x8xf32>
      %227 = arith.addf %226, %147 : vector<8x8xf32>
      %c2_143 = arith.constant 2 : index
      %c0_144 = arith.constant 0 : index
      %c0_145 = arith.constant 0 : index
      %228 = vector.load %arg16[%c2_143, %c0_144, %c0_145] : memref<4x8x1xf32, #tpu.memory_space<vmem>>, vector<1x8x1xf32>
      %229 = vector.shape_cast %228 : vector<1x8x1xf32> to vector<8x1xf32>
      %cst_146 = arith.constant dense<0xFF800000> : vector<8xf32>
      %230 = vector.multi_reduction <maximumf>, %227, %cst_146 [1] : vector<8x8xf32> to vector<8xf32>
      %231 = vector.shape_cast %230 : vector<8xf32> to vector<8x1xf32>
      %232 = arith.maximumf %229, %231 : vector<8x1xf32>
      %233 = arith.subf %229, %232 : vector<8x1xf32>
      %234 = math.exp %233 : vector<8x1xf32>
      %235 = vector.broadcast %232 : vector<8x1xf32> to vector<8x8xf32>
      %236 = arith.subf %227, %235 : vector<8x8xf32>
      %237 = math.exp %236 : vector<8x8xf32>
      %c2_147 = arith.constant 2 : index
      %c0_148 = arith.constant 0 : index
      %c0_149 = arith.constant 0 : index
      %238 = vector.load %arg17[%c2_147, %c0_148, %c0_149] : memref<4x8x1xf32, #tpu.memory_space<vmem>>, vector<1x8x1xf32>
      %239 = vector.shape_cast %238 : vector<1x8x1xf32> to vector<8x1xf32>
      %240 = arith.mulf %234, %239 : vector<8x1xf32>
      %cst_150 = arith.constant dense<0.000000e+00> : vector<8xf32>
      %241 = vector.multi_reduction <add>, %237, %cst_150 [1] : vector<8x8xf32> to vector<8xf32>
      %242 = vector.shape_cast %241 : vector<8xf32> to vector<8x1xf32>
      %243 = arith.addf %240, %242 : vector<8x1xf32>
      %c2_151 = arith.constant 2 : index
      %c0_152 = arith.constant 0 : index
      %c0_153 = arith.constant 0 : index
      %244 = vector.load %arg17[%c2_151, %c0_152, %c0_153] : memref<4x8x1xf32, #tpu.memory_space<vmem>>, vector<1x8x1xf32>
      %245 = vector.shape_cast %244 : vector<1x8x1xf32> to vector<8x1xf32>
      %246 = vector.shape_cast %243 : vector<8x1xf32> to vector<1x8x1xf32>
      tpu.vector_store %arg17[%c2_151, %c0_152, %c0_153], %246 {strides = array<i32>} : memref<4x8x1xf32, #tpu.memory_space<vmem>>, vector<1x8x1xf32>,
      %c2_154 = arith.constant 2 : index
      %c0_155 = arith.constant 0 : index
      %c0_156 = arith.constant 0 : index
      %247 = vector.load %arg18[%c2_154, %c0_155, %c0_156] : memref<4x8x8xf32, #tpu.memory_space<vmem>>, vector<1x8x8xf32>
      %248 = vector.shape_cast %247 : vector<1x8x8xf32> to vector<8x8xf32>
      %249 = vector.broadcast %234 : vector<8x1xf32> to vector<8x8xf32>
      %250 = arith.mulf %249, %248 : vector<8x8xf32>
      %cst_157 = arith.constant dense<0.000000e+00> : vector<8x8xf32>
      %251 = tpu.matmul %237, %223, %cst_157 {dimension_numbers = #tpu.dot_dimension_numbers<[1], [0], [0], [1], [0, 0, 1, 1], [], []>, precision = #tpu.contract_precision<fp32>} : vector<8x8xf32>, vector<8x8xf32>, vector<8x8xf32> -> vector<8x8xf32>
      %252 = arith.addf %250, %251 : vector<8x8xf32>
      %c2_158 = arith.constant 2 : index
      %c0_159 = arith.constant 0 : index
      %c0_160 = arith.constant 0 : index
      %253 = vector.load %arg18[%c2_158, %c0_159, %c0_160] : memref<4x8x8xf32, #tpu.memory_space<vmem>>, vector<1x8x8xf32>
      %254 = vector.shape_cast %253 : vector<1x8x8xf32> to vector<8x8xf32>
      %255 = vector.shape_cast %252 : vector<8x8xf32> to vector<1x8x8xf32>
      tpu.vector_store %arg18[%c2_158, %c0_159, %c0_160], %255 {strides = array<i32>} : memref<4x8x8xf32, #tpu.memory_space<vmem>>, vector<1x8x8xf32>,
      %c2_161 = arith.constant 2 : index
      %c0_162 = arith.constant 0 : index
      %c0_163 = arith.constant 0 : index
      %256 = vector.load %arg16[%c2_161, %c0_162, %c0_163] : memref<4x8x1xf32, #tpu.memory_space<vmem>>, vector<1x8x1xf32>
      %257 = vector.shape_cast %256 : vector<1x8x1xf32> to vector<8x1xf32>
      %258 = vector.shape_cast %232 : vector<8x1xf32> to vector<1x8x1xf32>
      tpu.vector_store %arg16[%c2_161, %c0_162, %c0_163], %258 {strides = array<i32>} : memref<4x8x1xf32, #tpu.memory_space<vmem>>, vector<1x8x1xf32>,
      %259 = vector.extract_strided_slice %137 {offsets = [0, 24], sizes = [8, 8], strides = [1, 1]} : vector<8x64xf32> to vector<8x8xf32>
      %260 = vector.extract_strided_slice %137 {offsets = [0, 56], sizes = [8, 8], strides = [1, 1]} : vector<8x64xf32> to vector<8x8xf32>
      %cst_164 = arith.constant dense<0.000000e+00> : vector<8x8xf32>
      %261 = tpu.matmul %10, %259, %cst_164 {dimension_numbers = #tpu.dot_dimension_numbers<[1], [1], [0], [0], [0, 0, 1, 0], [], []>, precision = #tpu.contract_precision<fp32>} : vector<8x8xf32>, vector<8x8xf32>, vector<8x8xf32> -> vector<8x8xf32>
      %cst_165 = arith.constant 0.353553385 : f32
      %262 = vector.broadcast %cst_165 : f32 to vector<8x8xf32>
      %263 = arith.mulf %261, %262 : vector<8x8xf32>
      %264 = arith.addf %263, %147 : vector<8x8xf32>
      %c3_166 = arith.constant 3 : index
      %c0_167 = arith.constant 0 : index
      %c0_168 = arith.constant 0 : index
      %265 = vector.load %arg16[%c3_166, %c0_167, %c0_168] : memref<4x8x1xf32, #tpu.memory_space<vmem>>, vector<1x8x1xf32>
      %266 = vector.shape_cast %265 : vector<1x8x1xf32> to vector<8x1xf32>
      %cst_169 = arith.constant dense<0xFF800000> : vector<8xf32>
      %267 = vector.multi_reduction <maximumf>, %264, %cst_169 [1] : vector<8x8xf32> to vector<8xf32>
      %268 = vector.shape_cast %267 : vector<8xf32> to vector<8x1xf32>
      %269 = arith.maximumf %266, %268 : vector<8x1xf32>
      %270 = arith.subf %266, %269 : vector<8x1xf32>
      %271 = math.exp %270 : vector<8x1xf32>
      %272 = vector.broadcast %269 : vector<8x1xf32> to vector<8x8xf32>
      %273 = arith.subf %264, %272 : vector<8x8xf32>
      %274 = math.exp %273 : vector<8x8xf32>
      %c3_170 = arith.constant 3 : index
      %c0_171 = arith.constant 0 : index
      %c0_172 = arith.constant 0 : index
      %275 = vector.load %arg17[%c3_170, %c0_171, %c0_172] : memref<4x8x1xf32, #tpu.memory_space<vmem>>, vector<1x8x1xf32>
      %276 = vector.shape_cast %275 : vector<1x8x1xf32> to vector<8x1xf32>
      %277 = arith.mulf %271, %276 : vector<8x1xf32>
      %cst_173 = arith.constant dense<0.000000e+00> : vector<8xf32>
      %278 = vector.multi_reduction <add>, %274, %cst_173 [1] : vector<8x8xf32> to vector<8xf32>
      %279 = vector.shape_cast %278 : vector<8xf32> to vector<8x1xf32>
      %280 = arith.addf %277, %279 : vector<8x1xf32>
      %c3_174 = arith.constant 3 : index
      %c0_175 = arith.constant 0 : index
      %c0_176 = arith.constant 0 : index
      %281 = vector.load %arg17[%c3_174, %c0_175, %c0_176] : memref<4x8x1xf32, #tpu.memory_space<vmem>>, vector<1x8x1xf32>
      %282 = vector.shape_cast %281 : vector<1x8x1xf32> to vector<8x1xf32>
      %283 = vector.shape_cast %280 : vector<8x1xf32> to vector<1x8x1xf32>
      tpu.vector_store %arg17[%c3_174, %c0_175, %c0_176], %283 {strides = array<i32>} : memref<4x8x1xf32, #tpu.memory_space<vmem>>, vector<1x8x1xf32>,
      %c3_177 = arith.constant 3 : index
      %c0_178 = arith.constant 0 : index
      %c0_179 = arith.constant 0 : index
      %284 = vector.load %arg18[%c3_177, %c0_178, %c0_179] : memref<4x8x8xf32, #tpu.memory_space<vmem>>, vector<1x8x8xf32>
      %285 = vector.shape_cast %284 : vector<1x8x8xf32> to vector<8x8xf32>
      %286 = vector.broadcast %271 : vector<8x1xf32> to vector<8x8xf32>
      %287 = arith.mulf %286, %285 : vector<8x8xf32>
      %cst_180 = arith.constant dense<0.000000e+00> : vector<8x8xf32>
      %288 = tpu.matmul %274, %260, %cst_180 {dimension_numbers = #tpu.dot_dimension_numbers<[1], [0], [0], [1], [0, 0, 1, 1], [], []>, precision = #tpu.contract_precision<fp32>} : vector<8x8xf32>, vector<8x8xf32>, vector<8x8xf32> -> vector<8x8xf32>
      %289 = arith.addf %287, %288 : vector<8x8xf32>
      %c3_181 = arith.constant 3 : index
      %c0_182 = arith.constant 0 : index
      %c0_183 = arith.constant 0 : index
      %290 = vector.load %arg18[%c3_181, %c0_182, %c0_183] : memref<4x8x8xf32, #tpu.memory_space<vmem>>, vector<1x8x8xf32>
      %291 = vector.shape_cast %290 : vector<1x8x8xf32> to vector<8x8xf32>
      %292 = vector.shape_cast %289 : vector<8x8xf32> to vector<1x8x8xf32>
      tpu.vector_store %arg18[%c3_181, %c0_182, %c0_183], %292 {strides = array<i32>} : memref<4x8x8xf32, #tpu.memory_space<vmem>>, vector<1x8x8xf32>,
      %c3_184 = arith.constant 3 : index
      %c0_185 = arith.constant 0 : index
      %c0_186 = arith.constant 0 : index
      %293 = vector.load %arg16[%c3_184, %c0_185, %c0_186] : memref<4x8x1xf32, #tpu.memory_space<vmem>>, vector<1x8x1xf32>
      %294 = vector.shape_cast %293 : vector<1x8x1xf32> to vector<8x1xf32>
      %295 = vector.shape_cast %269 : vector<8x1xf32> to vector<1x8x1xf32>
      tpu.vector_store %arg16[%c3_184, %c0_185, %c0_186], %295 {strides = array<i32>} : memref<4x8x1xf32, #tpu.memory_space<vmem>>, vector<1x8x1xf32>,
    }
    %cst_22 = arith.constant 0.000000e+00 : f32
    %24 = vector.broadcast %cst_22 : f32 to vector<8x32xf32>
    %c0_23 = arith.constant 0 : index
    %c0_24 = arith.constant 0 : index
    %c0_25 = arith.constant 0 : index
    %25 = vector.load %arg18[%c0_23, %c0_24, %c0_25] : memref<4x8x8xf32, #tpu.memory_space<vmem>>, vector<1x8x8xf32>
    %26 = vector.shape_cast %25 : vector<1x8x8xf32> to vector<8x8xf32>
    %c0_26 = arith.constant 0 : index
    %c0_27 = arith.constant 0 : index
    %c0_28 = arith.constant 0 : index
    %27 = vector.load %arg17[%c0_26, %c0_27, %c0_28] : memref<4x8x1xf32, #tpu.memory_space<vmem>>, vector<1x8x1xf32>
    %28 = vector.shape_cast %27 : vector<1x8x1xf32> to vector<8x1xf32>
    %29 = tpu.reciprocal %28 {approx = true} : vector<8x1xf32> -> vector<8x1xf32>
    %30 = vector.broadcast %29 : vector<8x1xf32> to vector<8x8xf32>
    %31 = arith.mulf %26, %30 : vector<8x8xf32>
    %c0_29 = arith.constant 0 : index
    %c0_30 = arith.constant 0 : index
    %32 = vector.load %arg5[%c0_29, %c0_30] : memref<32x32xf32, #tpu.memory_space<vmem>>, vector<8x32xf32>
    %cst_31 = arith.constant dense<0.000000e+00> : vector<8x32xf32>
    %33 = tpu.matmul %31, %32, %cst_31 {dimension_numbers = #tpu.dot_dimension_numbers<[1], [0], [0], [1], [0, 0, 1, 1], [], []>, precision = #tpu.contract_precision<fp32>} : vector<8x8xf32>, vector<8x32xf32>, vector<8x32xf32> -> vector<8x32xf32>
    %34 = arith.addf %24, %33 : vector<8x32xf32>
    %c1 = arith.constant 1 : index
    %c0_32 = arith.constant 0 : index
    %c0_33 = arith.constant 0 : index
    %35 = vector.load %arg18[%c1, %c0_32, %c0_33] : memref<4x8x8xf32, #tpu.memory_space<vmem>>, vector<1x8x8xf32>
    %36 = vector.shape_cast %35 : vector<1x8x8xf32> to vector<8x8xf32>
    %c1_34 = arith.constant 1 : index
    %c0_35 = arith.constant 0 : index
    %c0_36 = arith.constant 0 : index
    %37 = vector.load %arg17[%c1_34, %c0_35, %c0_36] : memref<4x8x1xf32, #tpu.memory_space<vmem>>, vector<1x8x1xf32>
    %38 = vector.shape_cast %37 : vector<1x8x1xf32> to vector<8x1xf32>
    %39 = tpu.reciprocal %38 {approx = true} : vector<8x1xf32> -> vector<8x1xf32>
    %40 = vector.broadcast %39 : vector<8x1xf32> to vector<8x8xf32>
    %41 = arith.mulf %36, %40 : vector<8x8xf32>
    %c8 = arith.constant 8 : index
    %c0_37 = arith.constant 0 : index
    %42 = vector.load %arg5[%c8, %c0_37] : memref<32x32xf32, #tpu.memory_space<vmem>>, vector<8x32xf32>
    %cst_38 = arith.constant dense<0.000000e+00> : vector<8x32xf32>
    %43 = tpu.matmul %41, %42, %cst_38 {dimension_numbers = #tpu.dot_dimension_numbers<[1], [0], [0], [1], [0, 0, 1, 1], [], []>, precision = #tpu.contract_precision<fp32>} : vector<8x8xf32>, vector<8x32xf32>, vector<8x32xf32> -> vector<8x32xf32>
    %44 = arith.addf %34, %43 : vector<8x32xf32>
    %c2 = arith.constant 2 : index
    %c0_39 = arith.constant 0 : index
    %c0_40 = arith.constant 0 : index
    %45 = vector.load %arg18[%c2, %c0_39, %c0_40] : memref<4x8x8xf32, #tpu.memory_space<vmem>>, vector<1x8x8xf32>
    %46 = vector.shape_cast %45 : vector<1x8x8xf32> to vector<8x8xf32>
    %c2_41 = arith.constant 2 : index
    %c0_42 = arith.constant 0 : index
    %c0_43 = arith.constant 0 : index
    %47 = vector.load %arg17[%c2_41, %c0_42, %c0_43] : memref<4x8x1xf32, #tpu.memory_space<vmem>>, vector<1x8x1xf32>
    %48 = vector.shape_cast %47 : vector<1x8x1xf32> to vector<8x1xf32>
    %49 = tpu.reciprocal %48 {approx = true} : vector<8x1xf32> -> vector<8x1xf32>
    %50 = vector.broadcast %49 : vector<8x1xf32> to vector<8x8xf32>
    %51 = arith.mulf %46, %50 : vector<8x8xf32>
    %c16 = arith.constant 16 : index
    %c0_44 = arith.constant 0 : index
    %52 = vector.load %arg5[%c16, %c0_44] : memref<32x32xf32, #tpu.memory_space<vmem>>, vector<8x32xf32>
    %cst_45 = arith.constant dense<0.000000e+00> : vector<8x32xf32>
    %53 = tpu.matmul %51, %52, %cst_45 {dimension_numbers = #tpu.dot_dimension_numbers<[1], [0], [0], [1], [0, 0, 1, 1], [], []>, precision = #tpu.contract_precision<fp32>} : vector<8x8xf32>, vector<8x32xf32>, vector<8x32xf32> -> vector<8x32xf32>
    %54 = arith.addf %44, %53 : vector<8x32xf32>
    %c3 = arith.constant 3 : index
    %c0_46 = arith.constant 0 : index
    %c0_47 = arith.constant 0 : index
    %55 = vector.load %arg18[%c3, %c0_46, %c0_47] : memref<4x8x8xf32, #tpu.memory_space<vmem>>, vector<1x8x8xf32>
    %56 = vector.shape_cast %55 : vector<1x8x8xf32> to vector<8x8xf32>
    %c3_48 = arith.constant 3 : index
    %c0_49 = arith.constant 0 : index
    %c0_50 = arith.constant 0 : index
    %57 = vector.load %arg17[%c3_48, %c0_49, %c0_50] : memref<4x8x1xf32, #tpu.memory_space<vmem>>, vector<1x8x1xf32>
    %58 = vector.shape_cast %57 : vector<1x8x1xf32> to vector<8x1xf32>
    %59 = tpu.reciprocal %58 {approx = true} : vector<8x1xf32> -> vector<8x1xf32>
    %60 = vector.broadcast %59 : vector<8x1xf32> to vector<8x8xf32>
    %61 = arith.mulf %56, %60 : vector<8x8xf32>
    %c24 = arith.constant 24 : index
    %c0_51 = arith.constant 0 : index
    %62 = vector.load %arg5[%c24, %c0_51] : memref<32x32xf32, #tpu.memory_space<vmem>>, vector<8x32xf32>
    %cst_52 = arith.constant dense<0.000000e+00> : vector<8x32xf32>
    %63 = tpu.matmul %61, %62, %cst_52 {dimension_numbers = #tpu.dot_dimension_numbers<[1], [0], [0], [1], [0, 0, 1, 1], [], []>, precision = #tpu.contract_precision<fp32>} : vector<8x8xf32>, vector<8x32xf32>, vector<8x32xf32> -> vector<8x32xf32>
    %64 = arith.addf %54, %63 : vector<8x32xf32>
    %c0_53 = arith.constant 0 : index
    %c0_54 = arith.constant 0 : index
    %65 = vector.load %arg6[%c0_53, %c0_54] : memref<1x32xf32, #tpu.memory_space<vmem>>, vector<1x32xf32>
    %66 = vector.broadcast %65 : vector<1x32xf32> to vector<8x32xf32>
    %67 = arith.addf %64, %66 : vector<8x32xf32>
    %68 = arith.addf %4, %67 : vector<8x32xf32>
    %cst_55 = arith.constant dense<0.000000e+00> : vector<8xf32>
    %69 = vector.multi_reduction <add>, %68, %cst_55 [1] : vector<8x32xf32> to vector<8xf32>
    %70 = vector.shape_cast %69 : vector<8xf32> to vector<8x1xf32>
    %cst_56 = arith.constant 3.200000e+01 : f32
    %71 = vector.broadcast %cst_56 : f32 to vector<8x1xf32>
    %72 = arith.divf %70, %71 : vector<8x1xf32>
    %73 = vector.broadcast %72 : vector<8x1xf32> to vector<8x32xf32>
    %74 = arith.subf %68, %73 : vector<8x32xf32>
    %75 = arith.mulf %74, %74 : vector<8x32xf32>
    %cst_57 = arith.constant dense<0.000000e+00> : vector<8xf32>
    %76 = vector.multi_reduction <add>, %75, %cst_57 [1] : vector<8x32xf32> to vector<8xf32>
    %77 = vector.shape_cast %76 : vector<8xf32> to vector<8x1xf32>
    %cst_58 = arith.constant 3.200000e+01 : f32
    %78 = vector.broadcast %cst_58 : f32 to vector<8x1xf32>
    %79 = arith.divf %77, %78 : vector<8x1xf32>
    %cst_59 = arith.constant 9.99999974E-6 : f32
    %80 = vector.broadcast %cst_59 : f32 to vector<8x1xf32>
    %81 = arith.addf %79, %80 : vector<8x1xf32>
    %82 = math.rsqrt %81 : vector<8x1xf32>
    %83 = vector.broadcast %82 : vector<8x1xf32> to vector<8x32xf32>
    %84 = arith.mulf %74, %83 : vector<8x32xf32>
    %c0_60 = arith.constant 0 : index
    %c0_61 = arith.constant 0 : index
    %85 = vector.load %arg7[%c0_60, %c0_61] : memref<1x32xf32, #tpu.memory_space<vmem>>, vector<1x32xf32>
    %86 = vector.broadcast %85 : vector<1x32xf32> to vector<8x32xf32>
    %87 = arith.mulf %84, %86 : vector<8x32xf32>
    %c0_62 = arith.constant 0 : index
    %c0_63 = arith.constant 0 : index
    %88 = vector.load %arg8[%c0_62, %c0_63] : memref<1x32xf32, #tpu.memory_space<vmem>>, vector<1x32xf32>
    %89 = vector.broadcast %88 : vector<1x32xf32> to vector<8x32xf32>
    %90 = arith.addf %87, %89 : vector<8x32xf32>
    %c0_64 = arith.constant 0 : index
    %c0_65 = arith.constant 0 : index
    %91 = vector.load %arg9[%c0_64, %c0_65] : memref<32x128xf32, #tpu.memory_space<vmem>>, vector<32x128xf32>
    %cst_66 = arith.constant dense<0.000000e+00> : vector<8x128xf32>
    %92 = tpu.matmul %90, %91, %cst_66 {dimension_numbers = #tpu.dot_dimension_numbers<[1], [0], [0], [1], [0, 0, 1, 1], [], []>, precision = #tpu.contract_precision<fp32>} : vector<8x32xf32>, vector<32x128xf32>, vector<8x128xf32> -> vector<8x128xf32>
    %c0_67 = arith.constant 0 : index
    %c0_68 = arith.constant 0 : index
    %93 = vector.load %arg10[%c0_67, %c0_68] : memref<1x128xf32, #tpu.memory_space<vmem>>, vector<1x128xf32>
    %94 = vector.broadcast %93 : vector<1x128xf32> to vector<8x128xf32>
    %95 = arith.addf %92, %94 : vector<8x128xf32>
    %cst_69 = arith.constant 0.000000e+00 : f32
    %96 = vector.broadcast %cst_69 : f32 to vector<8x128xf32>
    %97 = arith.maximumf %95, %96 : vector<8x128xf32>
    %c0_70 = arith.constant 0 : index
    %c0_71 = arith.constant 0 : index
    %98 = vector.load %arg11[%c0_70, %c0_71] : memref<128x32xf32, #tpu.memory_space<vmem>>, vector<128x32xf32>
    %cst_72 = arith.constant dense<0.000000e+00> : vector<8x32xf32>
    %99 = tpu.matmul %97, %98, %cst_72 {dimension_numbers = #tpu.dot_dimension_numbers<[1], [0], [0], [1], [0, 0, 1, 1], [], []>, precision = #tpu.contract_precision<fp32>} : vector<8x128xf32>, vector<128x32xf32>, vector<8x32xf32> -> vector<8x32xf32>
    %c0_73 = arith.constant 0 : index
    %c0_74 = arith.constant 0 : index
    %100 = vector.load %arg12[%c0_73, %c0_74] : memref<1x32xf32, #tpu.memory_space<vmem>>, vector<1x32xf32>
    %101 = vector.broadcast %100 : vector<1x32xf32> to vector<8x32xf32>
    %102 = arith.addf %99, %101 : vector<8x32xf32>
    %103 = arith.addf %90, %102 : vector<8x32xf32>
    %cst_75 = arith.constant dense<0.000000e+00> : vector<8xf32>
    %104 = vector.multi_reduction <add>, %103, %cst_75 [1] : vector<8x32xf32> to vector<8xf32>
    %105 = vector.shape_cast %104 : vector<8xf32> to vector<8x1xf32>
    %cst_76 = arith.constant 3.200000e+01 : f32
    %106 = vector.broadcast %cst_76 : f32 to vector<8x1xf32>
    %107 = arith.divf %105, %106 : vector<8x1xf32>
    %108 = vector.broadcast %107 : vector<8x1xf32> to vector<8x32xf32>
    %109 = arith.subf %103, %108 : vector<8x32xf32>
    %110 = arith.mulf %109, %109 : vector<8x32xf32>
    %cst_77 = arith.constant dense<0.000000e+00> : vector<8xf32>
    %111 = vector.multi_reduction <add>, %110, %cst_77 [1] : vector<8x32xf32> to vector<8xf32>
    %112 = vector.shape_cast %111 : vector<8xf32> to vector<8x1xf32>
    %cst_78 = arith.constant 3.200000e+01 : f32
    %113 = vector.broadcast %cst_78 : f32 to vector<8x1xf32>
    %114 = arith.divf %112, %113 : vector<8x1xf32>
    %cst_79 = arith.constant 9.99999974E-6 : f32
    %115 = vector.broadcast %cst_79 : f32 to vector<8x1xf32>
    %116 = arith.addf %114, %115 : vector<8x1xf32>
    %117 = math.rsqrt %116 : vector<8x1xf32>
    %118 = vector.broadcast %117 : vector<8x1xf32> to vector<8x32xf32>
    %119 = arith.mulf %109, %118 : vector<8x32xf32>
    %c0_80 = arith.constant 0 : index
    %c0_81 = arith.constant 0 : index
    %120 = vector.load %arg13[%c0_80, %c0_81] : memref<1x32xf32, #tpu.memory_space<vmem>>, vector<1x32xf32>
    %121 = vector.broadcast %120 : vector<1x32xf32> to vector<8x32xf32>
    %122 = arith.mulf %119, %121 : vector<8x32xf32>
    %c0_82 = arith.constant 0 : index
    %c0_83 = arith.constant 0 : index
    %123 = vector.load %arg14[%c0_82, %c0_83] : memref<1x32xf32, #tpu.memory_space<vmem>>, vector<1x32xf32>
    %124 = vector.broadcast %123 : vector<1x32xf32> to vector<8x32xf32>
    %125 = arith.addf %122, %124 : vector<8x32xf32>
    %c0_84 = arith.constant 0 : index
    %c0_85 = arith.constant 0 : index
    %c0_86 = arith.constant 0 : index
    %126 = vector.load %arg15[%c0_84, %c0_85, %c0_86] : memref<1x8x32xf32, #tpu.memory_space<vmem>>, vector<1x8x32xf32>
    %127 = vector.shape_cast %126 : vector<1x8x32xf32> to vector<8x32xf32>
    %128 = vector.shape_cast %125 : vector<8x32xf32> to vector<1x8x32xf32>
    tpu.vector_store %arg15[%c0_84, %c0_85, %c0_86], %128 {strides = array<i32>} : memref<1x8x32xf32, #tpu.memory_space<vmem>>, vector<1x8x32xf32>,
    return
  }
  func.func @transform_0(%arg0: i32, %arg1: i32) -> (i32, i32, i32) {
    %c0_i32 = arith.constant 0 : i32
    %c0_i32_0 = arith.constant 0 : i32
    %c0_i32_1 = arith.constant 0 : i32
    return %arg0, %c0_i32, %c0_i32_0 : i32, i32, i32
  }
  func.func @transform_1(%arg0: i32, %arg1: i32) -> (i32, i32) {
    %c0_i32 = arith.constant 0 : i32
    %c0_i32_0 = arith.constant 0 : i32
    %c0_i32_1 = arith.constant 0 : i32
    return %c0_i32, %c0_i32_0 : i32, i32
  }
  func.func @transform_2(%arg0: i32, %arg1: i32) -> (i32, i32) {
    %c0_i32 = arith.constant 0 : i32
    %c0_i32_0 = arith.constant 0 : i32
    %c0_i32_1 = arith.constant 0 : i32
    return %c0_i32, %c0_i32_0 : i32, i32
  }
  func.func @transform_3(%arg0: i32, %arg1: i32) -> (i32, i32) {
    %c0_i32 = arith.constant 0 : i32
    %c0_i32_0 = arith.constant 0 : i32
    %c0_i32_1 = arith.constant 0 : i32
    return %c0_i32, %c0_i32_0 : i32, i32
  }
  func.func @transform_4(%arg0: i32, %arg1: i32) -> (i32, i32) {
    %c0_i32 = arith.constant 0 : i32
    %c0_i32_0 = arith.constant 0 : i32
    %c0_i32_1 = arith.constant 0 : i32
    return %c0_i32, %c0_i32_0 : i32, i32
  }
  func.func @transform_5(%arg0: i32, %arg1: i32) -> (i32, i32) {
    %c0_i32 = arith.constant 0 : i32
    %c0_i32_0 = arith.constant 0 : i32
    %c0_i32_1 = arith.constant 0 : i32
    return %c0_i32, %c0_i32_0 : i32, i32
  }
  func.func @transform_6(%arg0: i32, %arg1: i32) -> (i32, i32) {
    %c0_i32 = arith.constant 0 : i32
    %c0_i32_0 = arith.constant 0 : i32
    %c0_i32_1 = arith.constant 0 : i32
    return %c0_i32, %c0_i32_0 : i32, i32
  }
  func.func @transform_7(%arg0: i32, %arg1: i32) -> (i32, i32) {
    %c0_i32 = arith.constant 0 : i32
    %c0_i32_0 = arith.constant 0 : i32
    %c0_i32_1 = arith.constant 0 : i32
    return %c0_i32, %c0_i32_0 : i32, i32
  }
  func.func @transform_8(%arg0: i32, %arg1: i32) -> (i32, i32) {
    %c0_i32 = arith.constant 0 : i32
    %c0_i32_0 = arith.constant 0 : i32
    %c0_i32_1 = arith.constant 0 : i32
    return %c0_i32, %c0_i32_0 : i32, i32
  }
  func.func @transform_9(%arg0: i32, %arg1: i32) -> (i32, i32) {
    %c0_i32 = arith.constant 0 : i32
    %c0_i32_0 = arith.constant 0 : i32
    %c0_i32_1 = arith.constant 0 : i32
    return %c0_i32, %c0_i32_0 : i32, i32
  }
  func.func @transform_10(%arg0: i32, %arg1: i32) -> (i32, i32) {
    %c0_i32 = arith.constant 0 : i32
    %c0_i32_0 = arith.constant 0 : i32
    %c0_i32_1 = arith.constant 0 : i32
    return %c0_i32, %c0_i32_0 : i32, i32
  }
  func.func @transform_11(%arg0: i32, %arg1: i32) -> (i32, i32) {
    %c0_i32 = arith.constant 0 : i32
    %c0_i32_0 = arith.constant 0 : i32
    %c0_i32_1 = arith.constant 0 : i32
    return %c0_i32, %c0_i32_0 : i32, i32
  }
  func.func @transform_12(%arg0: i32, %arg1: i32) -> (i32, i32) {
    %c0_i32 = arith.constant 0 : i32
    %c0_i32_0 = arith.constant 0 : i32
    %c0_i32_1 = arith.constant 0 : i32
    return %c0_i32, %c0_i32_0 : i32, i32
  }
  func.func @transform_13(%arg0: i32, %arg1: i32) -> (i32, i32, i32) {
    %c0_i32 = arith.constant 0 : i32
    %c0_i32_0 = arith.constant 0 : i32
    return %arg0, %arg1, %c0_i32 : i32, i32, i32
  }
}

</mosaic_0001>

<bundles_post_ra>
// kernel: tpu_custom_call.1
= control target key start
LH: loop header
LB: loop body
LE: loop exit
PB: predicated region body
PF: predicated region fallthrough
CT: control target
= control target key end

     0   :  { %s11183_s0 = inlined_call_operand.vmem [shape: f32[2,8,32], index: 0, kind: input, shape index: {}]   ;;  %s11184_s1 = inlined_call_operand.vmem [shape: f32[32,32], index: 1, kind: input, shape index: {}]   ;;  %s11185_s2 = inlined_call_operand.vmem [shape: f32[32,64], index: 2, kind: input, shape index: {}]   ;;  %s11186_s3 = inlined_call_operand.vmem [shape: f32[32,32], index: 3, kind: input, shape index: {}]   ;;  %s11187_s4 = inlined_call_operand.vmem [shape: f32[1,32], index: 4, kind: input, shape index: {}]   ;;  %s11188_s5 = inlined_call_operand.vmem [shape: f32[1,32], index: 5, kind: input, shape index: {}]   ;;  %s11189_s6 = inlined_call_operand.vmem [shape: f32[1,32], index: 6, kind: input, shape index: {}]   ;;  %s11190_s7 = inlined_call_operand.vmem [shape: f32[32,128], index: 7, kind: input, shape index: {}]   ;;  %s11191_s8 = inlined_call_operand.vmem [shape: f32[1,128], index: 8, kind: input, shape index: {}]   ;;  %s11192_s9 = inlined_call_operand.vmem [shape: f32[128,32], index: 9, kind: input, shape index: {}]   ;;  %s11193_s10 = inlined_call_operand.vmem [shape: f32[1,32], index: 10, kind: input, shape index: {}]   ;;  %s11194_s11 = inlined_call_operand.vmem [shape: f32[1,32], index: 11, kind: input, shape index: {}]   ;;  %s11195_s12 = inlined_call_operand.vmem [shape: f32[1,32], index: 12, kind: input, shape index: {}]   ;;  %s11196_s13 = inlined_call_operand.hbm [shape: f32[2,8,32], index: 13, kind: output, shape index: {}]  }
   0x1   :  { %11200 = sst [smem:[#allocation10_spill]] %s11183_s0 }
   0x2   :  { %11201 = sst [smem:[#allocation11_spill]] %s11184_s1 }
   0x3   :  { %18 = vsyncpa [#allocation6], 0 }
   0x4   :  { %20 = vsyncpa [#allocation6 + $0x1], 0  ;;  %s10146_s25 = smov 0   ;;  %s10148_s26 = smov 0  }
   0x5   :  { %s10150_s27 = smov 0   ;;  %s10152_s28 = smov 0  }
   0x6   :  { %s10154_s29 = smov 0   ;;  %s10156_s30 = smov 0  }
   0x7 LB: > { %11202 = sst [smem:[#allocation8_spill]] %s10048_s29  ;;  %s8413_s14 = sadd.s32 4294967295, %s10052_s30   ;;  %s10052_s30 = sphi %s10156_s30, %s26_s30   ;;  %s10048_s29 = sphi %s10154_s29, %s11212_s29   ;;  %s10044_s28 = sphi %s10152_s28, %s11211_s28   ;;  %s10040_s27 = sphi %s10150_s27, %s11215_s27   ;;  %s10036_s26 = sphi %s10148_s26, %s11214_s26   ;;  %s10032_s25 = sphi %s10146_s25, %s11213_s25  }
   0x8   : > { %s8414_s15 = sadd.s32 4294967294, %s10052_s30   ;;  %s38_s16 = sadd.s32 1, %s10048_s29 }
   0x9   : > { %s325_s17 = sadd.s32 1, %s10040_s27  ;;  %p40_p0 = scmp.ge.s32.totalorder %s38_s16, 2 }
   0xa   : > { %p335_p1 = scmp.ne.s32.totalorder %s10040_s27, %s10036_s26  ;;  %p336_p2 = scmp.eq.s32.totalorder %s8413_s14, 1 }
   0xb   : > { %p341_p3 = scmp.ne.s32.totalorder %s10036_s26, %s10032_s25  ;;  %s11217_s16 = smov (%p40_p0, %s38_s16), 0 }
   0xc   : > { %11203 = sst [smem:[#allocation9_spill]] %s11217_s16  ;;  %p10186_p4 = por %p336_p2, %p335_p1 }
   0xd   : > { %p342_p5 = scmp.eq.s32.totalorder %s8414_s15, 1  ;;  %s320_s19 = ssub.s32 %s10048_s29, %s11217_s16 }
   0xe   : > { %p8417_p6 = scmp.ge.s32.totalorder %s10052_s30, 1  ;;  %p323_p7 = scmp.eq.s32.totalorder %s320_s19, 0 }
   0xf   : > { %p10193_p8 = por %p342_p5, %p341_p3  ;;  %p403_p9 = scmp.lt.s32.totalorder %s10052_s30, 3 }
  0x10   : > { %s10199_s21 = scalar_select %p323_p7, %s10040_s27, %s325_s17  }
  0x11   : > { %p404_p10 = pnand %p8417_p6, %p403_p9 }
  0x12   : > { %s11206_s1 = sld [smem:[#allocation11_spill]] (!%p404_p10)  ;;  %s11198_s15 = sand.u32 (!%p404_p10), 1, %s10036_s26   ;;  %v10058_v3 = vmov (!%p404_p10), 0.0|0.0   ;;  %vm10059_vm0 = vmmov (!%p404_p10), 0   ;;  %v10060_v9 = vmov (!%p404_p10), 0.0   ;;  %vm946_vm1 = vcmask (!%p404_p10), 7168  }
  0x13   : > { %407 = sbr.rel (%p404_p10) target bundleno = 3109 (0xc25), region = 72  ;;  %9554 = vmatprep.subr.bf16.mxu0 (!%p404_p10), %v10058_v3  ;;  %s10214_s17 = sshll.u32 (!%p404_p10), %s11198_s15, 3  ;;  %9536 = vmatprep.subr.bf16.mxu1 (!%p404_p10), %v10058_v3  ;;  %vm955_vm2 = vcmask (!%p404_p10), 64512   ;;  %v10061_v13 = vmov (!%p404_p10), -1e+30   ;;  %951 = vst.msk [vmem:[#allocation3] sm:$0xff] (!%p404_p10), %vm946_vm1, %v10060_v9 }
  0x14   : > { %8809 = vmatprep.mubr.msk.f32.mxu0 (!%p404_p10), %vm10059_vm0, %v10060_v9  ;;  %8776 = vmatprep.mubr.msk.f32.mxu1 (!%p404_p10), %vm10059_vm0, %v10060_v9  ;;  %947 = vst.msk [vmem:[#allocation2] sm:$0xff] (!%p404_p10), %vm946_vm1, %v10061_v13  ;;  %948 = vst.msk [vmem:[#allocation2 + $0x8] sm:$0xff] (!%p404_p10), %vm946_vm1, %v10061_v13  ;;  %p446_p11 = scmp.lt.s32.totalorder (!%p404_p10), %s10044_s28, 1  ;;  %vm457_vm3 = vcmask (!%p404_p10), 261120   ;;  %s11207_s0 = sld [smem:[#allocation10_spill]] (!%p404_p10) }
  0x15   : > { %949 = vst.msk [vmem:[#allocation2 + $0x10] sm:$0xff] (!%p404_p10), %vm946_vm1, %v10061_v13  ;;  %950 = vst.msk [vmem:[#allocation2 + $0x18] sm:$0xff] (!%p404_p10), %vm946_vm1, %v10061_v13 }
  0x16   : > { %952 = vst.msk [vmem:[#allocation3 + $0x8] sm:$0xff] (!%p404_p10), %vm946_vm1, %v10060_v9  ;;  %953 = vst.msk [vmem:[#allocation3 + $0x10] sm:$0xff] (!%p404_p10), %vm946_vm1, %v10060_v9 }
  0x17   : > { %954 = vst.msk [vmem:[#allocation3 + $0x18] sm:$0xff] (!%p404_p10), %vm946_vm1, %v10060_v9 }
  0x18   : > { %v453_v0 = vld [vmem:[%s11206_s1] sm:$0xff] (!%p404_p10)  ;;  %v454_v1 = vld [vmem:[%s11206_s1 + $0x8] sm:$0xff] (!%p404_p10)  ;;  %v455_v2 = vld [vmem:[%s11206_s1 + $0x10] sm:$0xff] (!%p404_p10)  ;;  %956 = vst.msk [vmem:[#allocation4] sm:$0xff] (!%p404_p10), %vm955_vm2, %v10060_v9 }
  0x19   : > { %v462_v4 = vand.u32 (!%p404_p10), 4294901760, %v453_v0  ;;  %v465_v5 = vand.u32 (!%p404_p10), 4294901760, %v454_v1  ;;  %v456_v6 = vld [vmem:[%s11206_s1 + $0x18] sm:$0xff] (!%p404_p10)  ;;  %v468_v7 = vand.u32 (!%p404_p10), 4294901760, %v455_v2  ;;  %957 = vst.msk [vmem:[#allocation4 + $0x8] sm:$0xff] (!%p404_p10), %vm955_vm2, %v10060_v9  ;;  %958 = vst.msk [vmem:[#allocation4 + $0x10] sm:$0xff] (!%p404_p10), %vm955_vm2, %v10060_v9 }
  0x1a   : > { %v471_v8 = vand.u32 4294901760, %v456_v6  ;;  %959 = vst.msk [vmem:[#allocation4 + $0x18] sm:$0xff] %vm955_vm2, %v10060_v9  ;;  %s447_s16 = scalar_select %p446_p11, %s10044_s28, 1 }
  0x1b   : > { %v10224_v10 = vpack.c.bf16 %v465_v5, %v462_v4  ;;  %v10226_v11 = vsub.f32 %v453_v0, %v462_v4  ;;  %v10228_v12 = vsub.f32 %v454_v1, %v465_v5  ;;  %v556_v15 = vsub.f32 %v455_v2, %v468_v7 }
  0x1c   : > { %v9540_v14 = vpack.c.bf16 %v471_v8, %v468_v7  ;;  %v563_v16 = vsub.f32 %v456_v6, %v471_v8  ;;  %s8419_s24 = sshll.u32 %s447_s16, 3  ;;  %s10292_s16 = smov 0  }
  0x1d   : > { %9556 = vmatpush3.bf16.msra.mxu0 %v10224_v10  ;;  %9538 = vmatpush3.bf16.msra.mxu1 %v10224_v10  ;;  %v543_v17 = vand.u32 4294901760, %v10226_v11  ;;  %v550_v18 = vand.u32 4294901760, %v10228_v12  ;;  %s10261_s22 = scalar_lea.vmem %s11207_s0, %s8419_s24  ;;  %v557_v20 = vand.u32 4294901760, %v556_v15  ;;  %v9549_v40 = vpack.c.bf16 %v10228_v12, %v10226_v11 }
  0x1e   : > { %9557 = vmatprep.subr.bf16.mxu0 %v10058_v3  ;;  %9539 = vmatprep.subr.bf16.mxu1 %v10058_v3  ;;  %v10264_v19 = vld [vmem:[%s10261_s22] sm:$0xff]  ;;  %v564_v24 = vand.u32 4294901760, %v563_v16  ;;  %v9552_v41 = vpack.c.bf16 %v563_v16, %v556_v15 }
  0x1f   : > { %v459_v21 = vsel %vm457_vm3, %v10264_v19, 0  ;;  %v544_v22 = vsub.f32 %v10226_v11, %v543_v17  ;;  %v551_v23 = vsub.f32 %v10228_v12, %v550_v18  ;;  %v9561_v27 = vpack.c.bf16 %v550_v18, %v543_v17 }
  0x20   : > { %v530_v25 = vand.u32 4294901760, %v459_v21  ;;  %v558_v30 = vsub.f32 %v556_v15, %v557_v20  ;;  %v565_v31 = vsub.f32 %v563_v16, %v564_v24  ;;  %v9564_v35 = vpack.c.bf16 %v564_v24, %v557_v20 }
  0x21   : > { %9559 = vmatpush3.bf16.msra.mxu0 %v9540_v14  ;;  %9541 = vmatpush3.bf16.msra.mxu1 %v9540_v14  ;;  %v545_v28 = vand.u32 4294901760, %v544_v22  ;;  %v552_v29 = vand.u32 4294901760, %v551_v23 }
  0x22   : > { %9560 = vmatprep.subr.bf16.mxu0 %v10058_v3  ;;  %9542 = vmatprep.subr.bf16.mxu1 %v10058_v3  ;;  %v531_v26 = vsub.f32 %v459_v21, %v530_v25  ;;  %v559_v36 = vand.u32 4294901760, %v558_v30  ;;  %v566_v37 = vand.u32 4294901760, %v565_v31 }
  0x23   : > { %v9543_v34 = vpack.c.bf16 %v552_v29, %v545_v28 }
  0x24   : > { %v532_v32 = vand.u32 4294901760, %v531_v26  ;;  %v9546_v39 = vpack.c.bf16 %v566_v37, %v559_v36 }
  0x26   : > { %8810 = vmatmul.mubr.f32.vlgmr.msra.gmra.mrb[0].mxu0 %v532_v32  ;;  %v533_v33 = vsub.f32 %v531_v26, %v532_v32 }
  0x27   : > { %9562 = vmatpush3.bf16.msra.mxu0 %v9561_v27  ;;  %8820 = vmatprep.mubr.msk.f32.mxu0 %vm10059_vm0, %v10060_v9 }
  0x28   : > { %v534_v38 = vand.u32 4294901760, %v533_v33  ;;  %9563 = vmatprep.subr.bf16.mxu0 %v10058_v3 }
  0x2a   : > { %8777 = vmatmul.mubr.f32.vlgmr.msra.gmra.mrb[0].mxu1 %v534_v38 }
  0x2b   : > { %9544 = vmatpush3.bf16.msra.mxu1 %v9543_v34  ;;  %9565 = vmatpush3.bf16.msra.mxu0 %v9564_v35 }
  0x2c   : > { %9545 = vmatprep.subr.bf16.mxu1 %v10058_v3  ;;  %9566 = vmatprep.subr.bf16.mxu0 %v10058_v3 }
  0x2d   : > { %8787 = vmatprep.mubr.msk.f32.mxu1 %vm10059_vm0, %v10060_v9 }
  0x2e   : > { %8821 = vmatmul.mubr.f32.vlgmr.msra.gmra.mrb[0].mxu0 %v530_v25 }
  0x2f   : > { %9547 = vmatpush3.bf16.msra.mxu1 %v9546_v39  ;;  %9568 = vmatpush3.bf16.msra.mxu0 %v10224_v10 }
  0x30   : > { %9548 = vmatprep.subr.bf16.mxu1 %v10058_v3  ;;  %9569 = vmatprep.subr.bf16.mxu0 %v10058_v3 }
  0x31   : > { %8831 = vmatprep.mubr.msk.f32.mxu0 %vm10059_vm0, %v10060_v9 }
  0x32   : > { %8788 = vmatmul.mubr.f32.vlgmr.msra.gmra.mrb[0].mxu1 %v530_v25 }
  0x33   : > { %9550 = vmatpush3.bf16.msra.mxu1 %v9549_v40  ;;  %9571 = vmatpush3.bf16.msra.mxu0 %v9540_v14 }
  0x34   : > { %9551 = vmatprep.subr.bf16.mxu1 %v10058_v3  ;;  %8798 = vmatprep.mubr.msk.f32.mxu1 %vm10059_vm0, %v10060_v9 }
  0x36   : > { %8832 = vmatmul.mubr.f32.vlgmr.msra.gmra.mrb[0].mxu0 %v530_v25 }
  0x37   : > { %9553 = vmatpush3.bf16.msra.mxu1 %v9552_v41 }
  0x3a   : > { %8799 = vmatmul.mubr.f32.vlgmr.msra.gmra.mrb[0].mxu1 %v531_v26 }
 0x109   : > { %v942_v42 = vpop.f32.mrb[0].mxu0 }
 0x10a   : > { %v8833_v43 = vpop.f32.mrb[1].mxu0 }
 0x10d   : > { %v707_v44 = vpop.f32.mrb[0].mxu1 }
 0x10e   : > { %v10289_v45 = vadd.f32 %v942_v42, %v707_v44  ;;  %v8800_v46 = vpop.f32.mrb[1].mxu1 }
 0x10f LB: >> { %v970_v47 = vld [vmem:[%s11185_s2] sm:$0xff]  ;;  %v971_v48 = vld [vmem:[%s11185_s2 + $0x8] sm:$0xff]  ;;  %v972_v49 = vld [vmem:[%s11185_s2 + $0x10] sm:$0xff]  ;;  %v10062_v50 = vmov 0.0|0.0   ;;  %vm10063_vm4 = vmmov 0   ;;  %v10064_v55 = vmov 0.0   ;;  %s10056_s16 = sphi %s10292_s16, %s964_s16  }
 0x110   : >> { %9572 = vmatprep.subr.bf16.mxu0 %v10062_v50  ;;  %v978_v51 = vand.u32 4294901760, %v970_v47  ;;  %v981_v52 = vand.u32 4294901760, %v971_v48  ;;  %v973_v53 = vld [vmem:[%s11185_s2 + $0x18] sm:$0xff]  ;;  %v984_v54 = vand.u32 4294901760, %v972_v49  ;;  %8842 = vmatprep.mubr.msk.f32.mxu0 %vm10063_vm4, %v10064_v55  ;;  %s8420_s0 = sshll.u32 %s10056_s16, 3  ;;  %s10065_s1 = smov 120  }
 0x111   : >> { %v987_v56 = vand.u32 4294901760, %v973_v53  ;;  %2411 = vrot.lane.b32.xlu0 %v10289_v45, %s10065_s1  ;;  %8900 = vmatprep.subr.mxu1 %v10064_v55  ;;  %s968_s29 = scalar_lea.vmem %s10261_s22, %s8420_s0  ;;  %s10066_s15 = smov 112   ;;  %v1473_v27 = vsel %vm955_vm2, %v10289_v45, 0 }
 0x112   : >> { %v10316_v57 = vpack.c.bf16 %v981_v52, %v978_v51  ;;  %v1058_v58 = vsub.f32 %v970_v47, %v978_v51  ;;  %v1065_v59 = vsub.f32 %v971_v48, %v981_v52  ;;  %v1072_v60 = vsub.f32 %v972_v49, %v984_v54  ;;  %3355 = vrot.lane.b32.xlu1 %v10289_v45, %s10066_s15  ;;  %v969_v63 = vld [vmem:[%s968_s29] sm:$0xff]  ;;  %s10067_s23 = smov 104   ;;  %s10070_s24 = smov 96  }
 0x113   : >> { %v9576_v61 = vpack.c.bf16 %v987_v56, %v984_v54  ;;  %v1079_v62 = vsub.f32 %v973_v53, %v987_v56  ;;  %8902 = vmatprep.mubr.msk.f32.mxu1 %vm10063_vm4, %v10064_v55  ;;  %v975_v0 = vsel %vm457_vm3, %v969_v63, 0  ;;  %v1544_v28 = vand.u32 4294901760, %v1473_v27  ;;  %s10071_s14 = smov 88   ;;  %s10072_s19 = smov 80  }
 0x114   : >> { %9574 = vmatpush3.bf16.msra.mxu0 %v10316_v57  ;;  %v1059_v1 = vand.u32 4294901760, %v1058_v58  ;;  %v1066_v2 = vand.u32 4294901760, %v1065_v59  ;;  %v1073_v4 = vand.u32 4294901760, %v1072_v60  ;;  %v1046_v5 = vand.u32 4294901760, %v975_v0  ;;  %s964_s16 = sadd.s32 1, %s10056_s16  }
 0x115   : >> { %9575 = vmatprep.subr.bf16.mxu0 %v10062_v50  ;;  %v1080_v6 = vand.u32 4294901760, %v1079_v62  ;;  %v9585_v23 = vpack.c.bf16 %v1065_v59, %v1058_v58  ;;  %v9588_v24 = vpack.c.bf16 %v1079_v62, %v1072_v60  ;;  %v1545_v29 = vsub.f32 %v1473_v27, %v1544_v28  ;;  %p963_p12 = scmp.ge.s32.totalorder %s964_s16, 1 }
 0x116   : >> { %v1060_v7 = vsub.f32 %v1058_v58, %v1059_v1  ;;  %v1067_v8 = vsub.f32 %v1065_v59, %v1066_v2  ;;  %v1047_v10 = vsub.f32 %v975_v0, %v1046_v5  ;;  %v1074_v13 = vsub.f32 %v1072_v60, %v1073_v4  ;;  %s11208_s29 = scalar_lea.vmem (%p963_p12), [#allocation5], %s10214_s17  ;;  %s10075_s16 = smov (%p963_p12), [#allocation5]  }
 0x117   : >> { %v1081_v14 = vsub.f32 %v1079_v62, %v1080_v6  ;;  %v9597_v25 = vpack.c.bf16 %v1066_v2, %v1059_v1  ;;  %v9600_v26 = vpack.c.bf16 %v1080_v6, %v1073_v4  ;;  %v1546_v30 = vand.u32 4294901760, %v1545_v29 }
 0x118   : >> { %9577 = vmatpush3.bf16.msra.mxu0 %v9576_v61  ;;  %v1061_v11 = vand.u32 4294901760, %v1060_v7  ;;  %v1068_v12 = vand.u32 4294901760, %v1067_v8  ;;  %v1048_v15 = vand.u32 4294901760, %v1047_v10  ;;  %v1075_v18 = vand.u32 4294901760, %v1074_v13 }
 0x119   : >> { %9578 = vmatprep.subr.bf16.mxu0 %v10062_v50  ;;  %v1082_v20 = vand.u32 4294901760, %v1081_v14  ;;  %v1547_v31 = vsub.f32 %v1545_v29, %v1546_v30 }
 0x11a   : >> { %v1049_v16 = vsub.f32 %v1047_v10, %v1048_v15  ;;  %v9579_v17 = vpack.c.bf16 %v1068_v12, %v1061_v11 }
 0x11b   : >> { %v9582_v22 = vpack.c.bf16 %v1082_v20, %v1075_v18  ;;  %v1548_v36 = vand.u32 4294901760, %v1547_v31 }
 0x11c   : >> { %v1050_v21 = vand.u32 4294901760, %v1049_v16 }
 0x11e   : >> { %8843 = vmatmul.mubr.f32.vlgmr.msra.gmra.mrb[0].mxu0 %v1050_v21 }
 0x11f   : >> { %9580 = vmatpush3.bf16.msra.mxu0 %v9579_v17  ;;  %8853 = vmatprep.mubr.msk.f32.mxu0 %vm10063_vm4, %v10064_v55 }
 0x120   : >> { %9581 = vmatprep.subr.bf16.mxu0 %v10062_v50 }
 0x123   : >> { %9583 = vmatpush3.bf16.msra.mxu0 %v9582_v22 }
 0x124   : >> { %9584 = vmatprep.subr.bf16.mxu0 %v10062_v50 }
 0x126   : >> { %8854 = vmatmul.mubr.f32.vlgmr.msra.gmra.mrb[0].mxu0 %v1046_v5 }
 0x127   : >> { %9586 = vmatpush3.bf16.msra.mxu0 %v9585_v23  ;;  %8864 = vmatprep.mubr.msk.f32.mxu0 %vm10063_vm4, %v10064_v55 }
 0x128   : >> { %9587 = vmatprep.subr.bf16.mxu0 %v10062_v50 }
 0x12b   : >> { %9589 = vmatpush3.bf16.msra.mxu0 %v9588_v24  ;;  %v1462_v24 = vlaneseq }
 0x12c   : >> { %9590 = vmatprep.subr.bf16.mxu0 %v10062_v50 }
 0x12d   : >> { %v1463_v27 = vshrl.u32 %v1462_v24, 7 }
 0x12e   : >> { %8865 = vmatmul.mubr.f32.vlgmr.msra.gmra.mrb[0].mxu0 %v1047_v10 }
 0x12f   : >> { %9592 = vmatpush3.bf16.msra.mxu0 %v10316_v57  ;;  %8875 = vmatprep.mubr.msk.f32.mxu0 %vm10063_vm4, %v10064_v55 }
 0x130   : >> { %9593 = vmatprep.subr.bf16.mxu0 %v10062_v50 }
 0x133   : >> { %9595 = vmatpush3.bf16.msra.mxu0 %v9576_v61 }
 0x134   : >> { %9596 = vmatprep.subr.bf16.mxu0 %v10062_v50 }
 0x136   : >> { %8876 = vmatmul.mubr.f32.vlgmr.msra.gmra.mrb[0].mxu0 %v1048_v15 }
 0x137   : >> { %9598 = vmatpush3.bf16.msra.mxu0 %v9597_v25  ;;  %8886 = vmatprep.mubr.msk.f32.mxu0 %vm10063_vm4, %v10064_v55  ;;  %v1467_v25 = vand.u32 127, %v1462_v24 }
 0x138   : >> { %9599 = vmatprep.subr.bf16.mxu0 %v10062_v50 }
 0x13b   : >> { %9601 = vmatpush3.bf16.msra.mxu0 %v9600_v26  ;;  %v1468_v26 = vstv %s8420_s0  ;;  %s10073_s0 = smov 72  }
 0x13c   : >> { %9602 = vmatprep.subr.bf16.mxu0 %v10062_v50 }
 0x13e   : >> { %8887 = vmatmul.mubr.f32.vlgmr.msra.gmra.mrb[0].mxu0 %v1046_v5 }
 0x13f   : >> { %9604 = vmatpush3.bf16.msra.mxu0 %v10316_v57  ;;  %8897 = vmatprep.mubr.msk.f32.mxu0 %vm10063_vm4, %v10064_v55 }
 0x140   : >> { %9605 = vmatprep.subr.bf16.mxu0 %v10062_v50 }
 0x143   : >> { %9607 = vmatpush3.bf16.msra.mxu0 %v9576_v61 }
 0x144   : >> { %8960 = vmatprep.subr.mxu0 %v10064_v55 }
 0x146   : >> { %8898 = vmatmul.mubr.f32.vlgmr.msra.gmra.mrb[0].mxu0 %v1046_v5 }
 0x147   : >> { %8962 = vmatprep.mubr.msk.f32.mxu0 %vm10063_vm4, %v10064_v55 }
 0x183   : >> { %v2412_v41 = vpop.permute.xlu0 %2411 }
 0x184   : >> { %v2415_v42 = vsel %vm955_vm2, %v2412_v41, 0  ;;  %v3356_v57 = vpop.permute.xlu1 %3355 }
 0x185   : >> { %v2485_v43 = vand.u32 4294901760, %v2415_v42  ;;  %v3359_v59 = vsel %vm955_vm2, %v3356_v57, 0 }
 0x186   : >> { %v3429_v61 = vand.u32 4294901760, %v3359_v59 }
 0x187   : >> { %v2486_v44 = vsub.f32 %v2415_v42, %v2485_v43 }
 0x188   : >> { %v3430_v63 = vsub.f32 %v3359_v59, %v3429_v61 }
 0x189   : >> { %v2487_v46 = vand.u32 4294901760, %v2486_v44 }
 0x18a   : >> { %v3431_v1 = vand.u32 4294901760, %v3430_v63 }
 0x18b   : >> { %v2488_v48 = vsub.f32 %v2486_v44, %v2487_v46 }
 0x18c   : >> { %v3432_v4 = vsub.f32 %v3430_v63, %v3431_v1 }
 0x18d   : >> { %v2489_v52 = vand.u32 4294901760, %v2488_v48 }
 0x18e   : >> { %v3433_v6 = vand.u32 4294901760, %v3432_v4 }
 0x219   : >> { %v10355_v32 = vpop.f32.mrb[0].mxu0 }
 0x21a   : >> { %3357 = vrot.lane.b32.xlu1 %v10355_v32, %s10066_s15  ;;  %2413 = vrot.lane.b32.xlu0 %v10355_v32, %s10065_s1  ;;  %v8899_v33 = vpop.f32.mrb[1].mxu0  ;;  %v1476_v34 = vsel %vm955_vm2, %v10355_v32, 0  ;;  %s8429_s1 = sshll.u32 (%p963_p12), %s10044_s28, 7  ;;  %s8336_s15 = sshll.u32 (%p963_p12), %s11208_s29, 4  ;;  %s11133_s15 = int_to_ptr.vmem [resolvable:$true] %s8336_s15 }
 0x21b   : >> { %v1479_v35 = vand.u32 4294901760, %v1476_v34  ;;  %s9970_s28 = scalar_lea.vmem (%p963_p12), %s11133_s15, 128 }
 0x21c   : > { %p9971_p13 = scmp.ne.s32.totalorder (%p963_p12), %s11133_s15, %s9970_s28 }
 0x21d   : >> { %8901 = vmatpush3.xpose.msra.mxu1 %v1479_v35  ;;  %v1556_v37 = vsub.f32 %v1476_v34, %v1479_v35 }
 0x21e   : >> { %4301 = vrot.lane.b32.xlu1 %v10355_v32, %s10067_s23  ;;  %8905 = vmatprep.subr.mxu1 %v10064_v55  ;;  %p9972_p0 = pnand (%p963_p12), %p9971_p13, %p10186_p4 }
 0x21f   : >> { %v1557_v38 = vand.u32 4294901760, %v1556_v37  ;;  %4299 = vrot.lane.b32.xlu0 %v10289_v45, %s10067_s23 }
 0x220   : >> { %8903 = vmatmul.mubr.f32.vlgmr.msra.gmra.mrb[0].mxu1 %v1548_v36  ;;  %p9973_p1 = pneg (%p963_p12), %p9972_p0 }
 0x221   : >> { %v1558_v39 = vsub.f32 %v1556_v37, %v1557_v38  ;;  %8907 = vmatprep.mubr.msk.f32.mxu1 %vm10063_vm4, %v10064_v55 }
 0x223   : >> { %v1559_v40 = vand.u32 4294901760, %v1558_v39 }
 0x225   : >> { %8906 = vmatpush3.xpose.msra.mxu1 %v1559_v40 }
 0x226   : >> { %8910 = vmatprep.subr.mxu1 %v10064_v55 }
 0x228   : >> { %8908 = vmatmul.mubr.f32.vlgmr.msra.gmra.mrb[0].mxu1 %v1544_v28 }
 0x229   : >> { %8911 = vmatpush3.xpose.msra.mxu1 %v1556_v37  ;;  %8912 = vmatprep.mubr.msk.f32.mxu1 %vm10063_vm4, %v10064_v55  ;;  %v10069_v37 = vmov 0  }
 0x22a   : >> { %8915 = vmatprep.subr.mxu1 %v10064_v55  ;;  %9938 = vset.pattern.permute.xlu1 %v10069_v37 }
 0x22b   : >> { %9939 = vset.pattern.permute.xlu0 %v10069_v37 }
 0x230   : >> { %8913 = vmatmul.mubr.f32.vlgmr.msra.gmra.mrb[0].mxu1 %v1545_v29 }
 0x231   : >> { %8916 = vmatpush3.xpose.msra.mxu1 %v1479_v35  ;;  %8917 = vmatprep.mubr.msk.f32.mxu1 %vm10063_vm4, %v10064_v55 }
 0x232   : >> { %8920 = vmatprep.subr.mxu1 %v10064_v55 }
 0x238   : >> { %8918 = vmatmul.mubr.f32.vlgmr.msra.gmra.mrb[0].mxu1 %v1546_v30  ;;  %v10068_v30 = vmov -1e+30  }
 0x239   : >> { %8921 = vmatpush3.xpose.msra.mxu1 %v1557_v38  ;;  %8922 = vmatprep.mubr.msk.f32.mxu1 %vm10063_vm4, %v10064_v55 }
 0x23a   : >> { %8925 = vmatprep.subr.mxu1 %v10064_v55 }
 0x240   : >> { %8923 = vmatmul.mubr.f32.vlgmr.msra.gmra.mrb[0].mxu1 %v1544_v28 }
 0x241   : >> { %8926 = vmatpush3.xpose.msra.mxu1 %v1479_v35  ;;  %8927 = vmatprep.mubr.msk.f32.mxu1 %vm10063_vm4, %v10064_v55 }
 0x242   : >> { %8930 = vmatprep.subr.mxu1 %v10064_v55 }
 0x248   : >> { %8928 = vmatmul.mubr.f32.vlgmr.msra.gmra.mrb[0].mxu1 %v1544_v28  ;;  %v1469_v28 = vadd.s32 %v1468_v26, %v1467_v25  ;;  %v4756_v26 = vld [vmem:[#allocation2 + $0x18] sm:$0xff] }
 0x249   : >> { %8932 = vmatprep.mubr.msk.f32.mxu1 %vm10063_vm4, %v10064_v55 }
 0x24a   : >> { %vm1470_vm5 = vcmp.ge.s32.totalorder %v1463_v27, %v1469_v28 }
 0x24b   : >> { %v1471_v31 = vsel %vm1470_vm5, 0.0, %v10068_v30 }
 0x28c   : >> { %v2414_v47 = vpop.permute.xlu0 %2413  ;;  %v3358_v58 = vpop.permute.xlu1 %3357 }
 0x28d   : >> { %v2417_v49 = vsel %vm955_vm2, %v2414_v47, 0  ;;  %v3361_v60 = vsel %vm955_vm2, %v3358_v58, 0 }
 0x28e   : >> { %v2420_v50 = vand.u32 4294901760, %v2417_v49  ;;  %v3364_v62 = vand.u32 4294901760, %v3361_v60 }
 0x290   : >> { %v2497_v51 = vsub.f32 %v2417_v49, %v2420_v50  ;;  %8961 = vmatpush3.xpose.msra.mxu0 %v2420_v50  ;;  %v3441_v0 = vsub.f32 %v3361_v60, %v3364_v62  ;;  %v4302_v10 = vpop.permute.xlu1 %4301  ;;  %v10457_v60 = vld [vmem:[#allocation2 + $0x8] sm:$0xff] }
 0x291   : >> { %8965 = vmatprep.subr.mxu0 %v10064_v55  ;;  %v4300_v8 = vpop.permute.xlu0 %4299  ;;  %v4305_v12 = vsel %vm955_vm2, %v4302_v10, 0 }
 0x292   : >> { %v2498_v53 = vand.u32 4294901760, %v2497_v51  ;;  %v3442_v2 = vand.u32 4294901760, %v3441_v0  ;;  %v4303_v11 = vsel %vm955_vm2, %v4300_v8, 0  ;;  %v4308_v14 = vand.u32 4294901760, %v4305_v12 }
 0x293   : >> { %8963 = vmatmul.mubr.f32.vlgmr.msra.gmra.mrb[2].mxu0 %v2489_v52  ;;  %v4373_v13 = vand.u32 4294901760, %v4303_v11 }
 0x294   : >> { %v2499_v54 = vsub.f32 %v2497_v51, %v2498_v53  ;;  %8967 = vmatprep.mubr.msk.f32.mxu0 %vm10063_vm4, %v10064_v55  ;;  %v3443_v5 = vsub.f32 %v3441_v0, %v3442_v2  ;;  %v4385_v16 = vsub.f32 %v4305_v12, %v4308_v14 }
 0x295   : >> { %v4374_v15 = vsub.f32 %v4303_v11, %v4373_v13 }
 0x296   : >> { %v2500_v56 = vand.u32 4294901760, %v2499_v54  ;;  %v3444_v7 = vand.u32 4294901760, %v3443_v5  ;;  %v4386_v18 = vand.u32 4294901760, %v4385_v16 }
 0x297   : >> { %v4375_v17 = vand.u32 4294901760, %v4374_v15 }
 0x298   : >> { %8966 = vmatpush3.xpose.msra.mxu0 %v2500_v56  ;;  %v4387_v21 = vsub.f32 %v4385_v16, %v4386_v18 }
 0x299   : >> { %8970 = vmatprep.subr.mxu0 %v10064_v55  ;;  %v4376_v20 = vsub.f32 %v4374_v15, %v4375_v17 }
 0x29a   : >> { %v4388_v23 = vand.u32 4294901760, %v4387_v21 }
 0x29b   : >> { %8968 = vmatmul.mubr.f32.vlgmr.msra.gmra.mrb[2].mxu0 %v2485_v43  ;;  %v4377_v22 = vand.u32 4294901760, %v4376_v20  ;;  %v3812_v20 = vld [vmem:[#allocation2 + $0x10] sm:$0xff] }
 0x29c   : >> { %8971 = vmatpush3.xpose.msra.mxu0 %v2497_v51  ;;  %8972 = vmatprep.mubr.msk.f32.mxu0 %vm10063_vm4, %v10064_v55 }
 0x29d   : >> { %8975 = vmatprep.subr.mxu0 %v10064_v55 }
 0x2a3   : >> { %8973 = vmatmul.mubr.f32.vlgmr.msra.gmra.mrb[2].mxu0 %v2486_v44 }
 0x2a4   : >> { %8976 = vmatpush3.xpose.msra.mxu0 %v2420_v50  ;;  %8977 = vmatprep.mubr.msk.f32.mxu0 %vm10063_vm4, %v10064_v55 }
 0x2a5   : >> { %8980 = vmatprep.subr.mxu0 %v10064_v55 }
 0x2ab   : >> { %8978 = vmatmul.mubr.f32.vlgmr.msra.gmra.mrb[2].mxu0 %v2487_v46 }
 0x2ac   : >> { %8981 = vmatpush3.xpose.msra.mxu0 %v2498_v53  ;;  %8982 = vmatprep.mubr.msk.f32.mxu0 %vm10063_vm4, %v10064_v55 }
 0x2ad   : >> { %8985 = vmatprep.subr.mxu0 %v10064_v55 }
 0x2b3   : >> { %8983 = vmatmul.mubr.f32.vlgmr.msra.gmra.mrb[2].mxu0 %v2485_v43 }
 0x2b4   : >> { %8986 = vmatpush3.xpose.msra.mxu0 %v2420_v50  ;;  %8987 = vmatprep.mubr.msk.f32.mxu0 %vm10063_vm4, %v10064_v55 }
 0x2b5   : >> { %9020 = vmatprep.subr.mxu0 %v10064_v55 }
 0x2bb   : >> { %8988 = vmatmul.mubr.f32.vlgmr.msra.gmra.mrb[2].mxu0 %v2485_v43  ;;  %v1926_v43 = vld [vmem:[#allocation2] sm:$0xff] }
 0x2bc   : >> { %9021 = vmatpush3.xpose.msra.mxu0 %v3364_v62  ;;  %9022 = vmatprep.mubr.msk.f32.mxu0 %vm10063_vm4, %v10064_v55 }
 0x2bd   : >> { %9025 = vmatprep.subr.mxu0 %v10064_v55 }
 0x2bf   : >> { %9023 = vmatmul.mubr.f32.vlgmr.msra.gmra.mrb[4].mxu0 %v3433_v6 }
 0x2c0   : >> { %9026 = vmatpush3.xpose.msra.mxu0 %v3444_v7  ;;  %9027 = vmatprep.mubr.msk.f32.mxu0 %vm10063_vm4, %v10064_v55 }
 0x2c1   : >> { %9030 = vmatprep.subr.mxu0 %v10064_v55 }
 0x2c7   : >> { %9028 = vmatmul.mubr.f32.vlgmr.msra.gmra.mrb[4].mxu0 %v3429_v61 }
 0x2c8   : >> { %9031 = vmatpush3.xpose.msra.mxu0 %v3441_v0  ;;  %9032 = vmatprep.mubr.msk.f32.mxu0 %vm10063_vm4, %v10064_v55 }
 0x2c9   : >> { %9035 = vmatprep.subr.mxu0 %v10064_v55 }
 0x2cf   : >> { %9033 = vmatmul.mubr.f32.vlgmr.msra.gmra.mrb[4].mxu0 %v3430_v63 }
 0x2d0   : >> { %9036 = vmatpush3.xpose.msra.mxu0 %v3364_v62  ;;  %9037 = vmatprep.mubr.msk.f32.mxu0 %vm10063_vm4, %v10064_v55 }
 0x2d1   : >> { %9040 = vmatprep.subr.mxu0 %v10064_v55 }
 0x2d7   : >> { %9038 = vmatmul.mubr.f32.vlgmr.msra.gmra.mrb[4].mxu0 %v3431_v1 }
 0x2d8   : >> { %9041 = vmatpush3.xpose.msra.mxu0 %v3442_v2  ;;  %9042 = vmatprep.mubr.msk.f32.mxu0 %vm10063_vm4, %v10064_v55 }
 0x2d9   : >> { %9045 = vmatprep.subr.mxu0 %v10064_v55 }
 0x2df   : >> { %9043 = vmatmul.mubr.f32.vlgmr.msra.gmra.mrb[4].mxu0 %v3429_v61 }
 0x2e0   : >> { %9046 = vmatpush3.xpose.msra.mxu0 %v3364_v62  ;;  %9047 = vmatprep.mubr.msk.f32.mxu0 %vm10063_vm4, %v10064_v55 }
 0x2e1   : >> { %9080 = vmatprep.subr.mxu0 %v10064_v55 }
 0x2e7   : >> { %9048 = vmatmul.mubr.f32.vlgmr.msra.gmra.mrb[4].mxu0 %v3429_v61 }
 0x2e8   : >> { %9081 = vmatpush3.xpose.msra.mxu0 %v4308_v14  ;;  %9082 = vmatprep.mubr.msk.f32.mxu0 %vm10063_vm4, %v10064_v55 }
 0x2e9   : >> { %9085 = vmatprep.subr.mxu0 %v10064_v55 }
 0x2eb   : >> { %9083 = vmatmul.mubr.f32.vlgmr.msra.gmra.mrb[6].mxu0 %v4377_v22 }
 0x2ec   : >> { %9086 = vmatpush3.xpose.msra.mxu0 %v4388_v23  ;;  %9087 = vmatprep.mubr.msk.f32.mxu0 %vm10063_vm4, %v10064_v55 }
 0x2ed   : >> { %9090 = vmatprep.subr.mxu0 %v10064_v55 }
 0x2f3   : >> { %9088 = vmatmul.mubr.f32.vlgmr.msra.gmra.mrb[6].mxu0 %v4373_v13 }
 0x2f4   : >> { %9091 = vmatpush3.xpose.msra.mxu0 %v4385_v16  ;;  %9092 = vmatprep.mubr.msk.f32.mxu0 %vm10063_vm4, %v10064_v55 }
 0x2f5   : >> { %9095 = vmatprep.subr.mxu0 %v10064_v55 }
 0x2fb   : >> { %9093 = vmatmul.mubr.f32.vlgmr.msra.gmra.mrb[6].mxu0 %v4374_v15 }
 0x2fc   : >> { %9096 = vmatpush3.xpose.msra.mxu0 %v4308_v14  ;;  %9097 = vmatprep.mubr.msk.f32.mxu0 %vm10063_vm4, %v10064_v55 }
 0x2fd   : >> { %9100 = vmatprep.subr.mxu0 %v10064_v55 }
 0x303   : >> { %9098 = vmatmul.mubr.f32.vlgmr.msra.gmra.mrb[6].mxu0 %v4375_v17 }
 0x304   : >> { %9101 = vmatpush3.xpose.msra.mxu0 %v4386_v18  ;;  %9102 = vmatprep.mubr.msk.f32.mxu0 %vm10063_vm4, %v10064_v55 }
 0x305   : >> { %9105 = vmatprep.subr.mxu0 %v10064_v55 }
 0x30b   : >> { %9103 = vmatmul.mubr.f32.vlgmr.msra.gmra.mrb[6].mxu0 %v4373_v13 }
 0x30c   : >> { %9106 = vmatpush3.xpose.msra.mxu0 %v4308_v14  ;;  %9107 = vmatprep.mubr.msk.f32.mxu0 %vm10063_vm4, %v10064_v55 }
 0x30d   : > { %9140 = vmatprep.subr.mxu0 (%p963_p12), %v10060_v9 }
 0x313   : >> { %9108 = vmatmul.mubr.f32.vlgmr.msra.gmra.mrb[6].mxu0 %v4373_v13 }
 0x314   : > { %9142 = vmatprep.mubr.msk.f32.mxu0 (%p963_p12), %vm10059_vm0, %v10060_v9 }
 0x31b   : >> { %v1920_v29 = vpop.f32.mrb[0].mxu1 }
 0x31c   : >> { %v1924_v33 = vmul.f32 0.35355338, %v1920_v29  ;;  %v8929_v34 = vpop.f32.mrb[1].mxu1 }
 0x31e   : >> { %v1925_v35 = vadd.f32 %v1924_v33, %v1471_v31 }
 0x320   : >> { %v1927_v36 = vsel %vm955_vm2, %v1925_v35, -inf }
 0x321   : >> { %1928 = vmax.xlane.f32.xlu0 %v1927_v36 }
 0x38e   : >> { %v2861_v38 = vpop.f32.mrb[2].mxu0 }
 0x38f   : >> { %v2865_v39 = vmul.f32 0.35355338, %v2861_v38  ;;  %v8989_v40 = vpop.f32.mrb[3].mxu0 }
 0x391   : >> { %v10443_v41 = vadd.f32 %v2865_v39, %v1471_v31 }
 0x393   : >> { %v2869_v42 = vsel %vm955_vm2, %v10443_v41, -inf }
 0x394   : >> { %2870 = vmax.xlane.f32.xlu1 %v2869_v42 }
 0x3ae   : >> { %v1929_v44 = vpop.xlane.xlu0 %1928 }
 0x3af   : >> { %v1930_v46 = vmax.f32 %v1926_v43, %v1929_v44 }
 0x3b1   : >> { %v1931_v47 = vsub.f32 %v1926_v43, %v1930_v46  ;;  %2410 = vst.msk [vmem:[#allocation2] sm:$0xff] %vm946_vm1, %v1930_v46  ;;  %1936 = vperm.xlu1 %9938, %v1930_v46  }
 0x3b3   : >> { %v1932_v59 = vmul.f32 1.442695, %v1931_v47 }
 0x3b5   : >> { %1956 = vrot.lane.b32.xlu1 %v10355_v32, %s10070_s24  ;;  %9940 = vpow2.f32 %v1932_v59 }
 0x3ba   : >> { %v3805_v48 = vpop.f32.mrb[4].mxu0 }
 0x3bb   : >> { %v3809_v49 = vmul.f32 0.35355338, %v3805_v48  ;;  %v9049_v50 = vpop.f32.mrb[5].mxu0 }
 0x3bd   : >> { %v10449_v51 = vadd.f32 %v3809_v49, %v1471_v31 }
 0x3bf   : >> { %v3813_v52 = vsel %vm955_vm2, %v10449_v51, -inf  ;;  %v10467_v0 = vpop.eup %9940 }
 0x3c0   : >> { %3814 = vmax.xlane.f32.xlu0 %v3813_v52 }
 0x3e6   : >> { %v4749_v53 = vpop.f32.mrb[6].mxu0 }
 0x3e7   : >> { %v4753_v54 = vmul.f32 0.35355338, %v4749_v53  ;;  %v9109_v56 = vpop.f32.mrb[7].mxu0 }
 0x3e9   : >> { %v10453_v57 = vadd.f32 %v4753_v54, %v1471_v31 }
 0x3eb   : >> { %v4757_v58 = vsel %vm955_vm2, %v10453_v57, -inf }
 0x3ec   : >> { %4758 = vmax.xlane.f32.xlu0 %v4757_v58 }
 0x421   : >> { %v2871_v61 = vpop.xlane.xlu1 %2870 }
 0x422   : >> { %v10460_v62 = vmax.f32 %v10457_v60, %v2871_v61 }
 0x424   : >> { %v2873_v63 = vsub.f32 %v10457_v60, %v10460_v62  ;;  %3354 = vst.msk [vmem:[#allocation2 + $0x8] sm:$0xff] %vm946_vm1, %v10460_v62  ;;  %2878 = vperm.xlu0 %9939, %v10460_v62  }
 0x428   : >> { %1952 = vperm.xlu0 %9939, %v10467_v0  }
 0x430   : >> { %v1937_v1 = vpop.permute.xlu1 %1936 }
 0x431   : >> { %v1939_v2 = vsub.f32 %v1925_v35, %v1937_v1  ;;  %v2874_v35 = vmul.f32 1.442695, %v2873_v63 }
 0x433   : >> { %v1940_v4 = vmul.f32 1.442695, %v1939_v2 }
 0x434   : >> { %v1957_v5 = vpop.permute.xlu1 %1956 }
 0x435   : >> { %9942 = vpow2.f32 %v1940_v4  ;;  %v1963_v6 = vand.u32 4294901760, %v1957_v5 }
 0x437   : >> { %8931 = vmatpush3.msra.mxu1 %v1963_v6  ;;  %v2040_v7 = vsub.f32 %v1957_v5, %v1963_v6 }
 0x438   : >> { %8935 = vmatprep.subr.mxu1 %v10064_v55 }
 0x439   : >> { %v2041_v12 = vand.u32 4294901760, %v2040_v7 }
 0x43b   : >> { %v2042_v15 = vsub.f32 %v2040_v7, %v2041_v12 }
 0x43d   : >> { %v2043_v18 = vand.u32 4294901760, %v2042_v15 }
 0x43f   : >> { %v9943_v8 = vpop.eup %9942 }
 0x440   : >> { %v1960_v10 = vsel %vm955_vm2, %v9943_v8, 0  ;;  %v1944_v34 = vsel %vm955_vm2, %v9943_v8, 0.0 }
 0x441   : >> { %v2028_v11 = vand.u32 4294901760, %v1960_v10 }
 0x443   : >> { %v2029_v13 = vsub.f32 %v1960_v10, %v2028_v11 }
 0x445   : >> { %v2030_v14 = vand.u32 4294901760, %v2029_v13 }
 0x447   : >> { %v2031_v16 = vsub.f32 %v2029_v13, %v2030_v14 }
 0x449   : >> { %v2032_v17 = vand.u32 4294901760, %v2031_v16 }
 0x44b   : >> { %8933 = vmatmul.mubr.f32.vlgmr.msra.gmra.mrb[2].mxu1 %v2032_v17 }
 0x44c   : >> { %8936 = vmatpush3.msra.mxu1 %v2043_v18  ;;  %8937 = vmatprep.mubr.msk.f32.mxu1 %vm10063_vm4, %v10064_v55 }
 0x44d   : >> { %v3815_v21 = vpop.xlane.xlu0 %3814  ;;  %8940 = vmatprep.subr.mxu1 %v10064_v55 }
 0x44e   : >> { %v3816_v22 = vmax.f32 %v3812_v20, %v3815_v21 }
 0x44f   : >> { %8938 = vmatmul.mubr.f32.vlgmr.msra.gmra.mrb[4].mxu1 %v2028_v11 }
 0x450   : >> { %v3817_v23 = vsub.f32 %v3812_v20, %v3816_v22  ;;  %4298 = vst.msk [vmem:[#allocation2 + $0x10] sm:$0xff] %vm946_vm1, %v3816_v22  ;;  %8941 = vmatpush3.msra.mxu1 %v2040_v7  ;;  %3822 = vperm.xlu1 %9938, %v3816_v22  }
 0x451   : >> { %8942 = vmatprep.mubr.msk.f32.mxu1 %vm10063_vm4, %v10064_v55  ;;  %8945 = vmatprep.subr.mxu1 %v10064_v55 }
 0x452   : >> { %v3818_v24 = vmul.f32 1.442695, %v3817_v23 }
 0x453   : >> { %8943 = vmatmul.mubr.f32.vlgmr.msra.gmra.mrb[6].mxu1 %v2029_v13 }
 0x454   : >> { %9944 = vpow2.f32 %v3818_v24  ;;  %8946 = vmatpush3.msra.mxu1 %v1963_v6  ;;  %2900 = vrot.lane.b32.xlu1 %v10355_v32, %s10071_s14  ;;  %s11131_s14 = scalar_lea.hbm (%p963_p12), %s11196_s13, %s8429_s1 }
 0x455   : >> { %8947 = vmatprep.mubr.msk.f32.mxu1 %vm10063_vm4, %v10064_v55  ;;  %8950 = vmatprep.subr.mxu1 %v10064_v55 }
 0x457   : >> { %8948 = vmatmul.mubr.f32.vlgmr.msra.gmra.mrb[8].mxu1 %v2030_v14 }
 0x458   : >> { %8951 = vmatpush3.msra.mxu1 %v2041_v12  ;;  %8952 = vmatprep.mubr.msk.f32.mxu1 %vm10063_vm4, %v10064_v55 }
 0x459   : >> { %8955 = vmatprep.subr.mxu1 %v10064_v55 }
 0x45b   : >> { %8953 = vmatmul.mubr.f32.vlgmr.msra.gmra.mrb[10].mxu1 %v2028_v11 }
 0x45c   : >> { %8956 = vmatpush3.msra.mxu1 %v1963_v6  ;;  %8957 = vmatprep.mubr.msk.f32.mxu1 %vm10063_vm4, %v10064_v55 }
 0x45d   : >> { %8990 = vmatprep.subr.mxu1 %v10064_v55 }
 0x45e   : >> { %v10489_v25 = vpop.eup %9944 }
 0x45f   : >> { %8958 = vmatmul.mubr.f32.vlgmr.msra.gmra.mrb[12].mxu1 %v2028_v11  ;;  %3840 = vperm.xlu0 %9939, %v10489_v25  }
 0x460   : >> { %8992 = vmatprep.mubr.msk.f32.mxu1 %vm10063_vm4, %v10064_v55 }
 0x479   : >> { %v4759_v27 = vpop.xlane.xlu0 %4758 }
 0x47a   : >> { %v4760_v28 = vmax.f32 %v4756_v26, %v4759_v27 }
 0x47c   : >> { %v4761_v29 = vsub.f32 %v4756_v26, %v4760_v28  ;;  %5242 = vst.msk [vmem:[#allocation2 + $0x18] sm:$0xff] %vm946_vm1, %v4760_v28  ;;  %4766 = vperm.xlu1 %9938, %v4760_v28  }
 0x47e   : >> { %v4762_v58 = vmul.f32 1.442695, %v4761_v29 }
 0x480   : >> { %3844 = vrot.lane.b32.xlu1 %v10355_v32, %s10072_s19  ;;  %s11209_s19 = smov (%p963_p12), %s11208_s29  ;;  %s9974_s29 = sshll.u32 (%p963_p12), %s10075_s16, 4  ;;  %s9975_s29 = int_to_ptr.vmem [resolvable:$false] %s9974_s29 }
 0x481   : > { %s9976_s1 = scalar_lea.vmem (%p963_p12), %s9975_s29, 256  ;;  %p9977_p2 = scmp.lt.s32.totalorder (%p963_p12), %s11133_s15, %s9975_s29 }
 0x482   : > { %p9978_p3 = scmp.lt.s32.totalorder (%p963_p12), %s9976_s1, %s9970_s28 }
 0x484   : >> { %4788 = vrot.lane.b32.xlu1 %v10355_v32, %s10073_s0  ;;  %s11210_s0 = sand.u32 (%p963_p12), 1, %s10036_s26   ;;  %p9979_p5 = por (%p963_p12), %p9978_p3, %p9977_p2 }
 0x485   : > { %s8322_s22 = scalar_lea.sflag (%p963_p12), [#allocation6], %s11210_s0 }
 0x486   : > { %p9980_p6 = pnand (%p963_p12), %p9979_p5, %p9973_p1 }
 0x4a3   : >> { %v2879_v30 = vpop.permute.xlu0 %2878 }
 0x4a4   : >> { %v2881_v31 = vsub.f32 %v10443_v41, %v2879_v30 }
 0x4a6   : >> { %v2882_v33 = vmul.f32 1.442695, %v2881_v31 }
 0x4a8   : >> { %9946 = vpow2.f32 %v2882_v33  ;;  %1945 = vadd.xlane.f32.xlu1 %v1944_v34 }
 0x4a9   : >> { %9948 = vpow2.f32 %v2874_v35 }
 0x4b2   : >> { %v9947_v36 = vpop.eup %9946 }
 0x4b3   : >> { %v2887_v37 = vsel %vm955_vm2, %v9947_v36, 0.0  ;;  %v10503_v38 = vpop.eup %9948  ;;  %v2904_v32 = vsel %vm955_vm2, %v9947_v36, 0 }
 0x4b4   : >> { %2888 = vadd.xlane.f32.xlu0 %v2887_v37  ;;  %v2972_v39 = vand.u32 4294901760, %v2904_v32 }
 0x4b6   : >> { %v2973_v40 = vsub.f32 %v2904_v32, %v2972_v39 }
 0x4b8   : >> { %v2974_v41 = vand.u32 4294901760, %v2973_v40 }
 0x4b9   : >> { %2896 = vperm.xlu1 %9938, %v10503_v38  }
 0x4ba   : >> { %v2975_v44 = vsub.f32 %v2973_v40, %v2974_v41 }
 0x4bc   : >> { %v2976_v49 = vand.u32 4294901760, %v2975_v44  ;;  %v1949_v44 = vld [vmem:[#allocation4] sm:$0xff] }
 0x4cf   : >> { %v3823_v42 = vpop.permute.xlu1 %3822 }
 0x4d0   : >> { %v3825_v43 = vsub.f32 %v10449_v51, %v3823_v42 }
 0x4d2   : >> { %v3826_v46 = vmul.f32 1.442695, %v3825_v43 }
 0x4d3   : >> { %v2901_v47 = vpop.permute.xlu1 %2900 }
 0x4d4   : >> { %9950 = vpow2.f32 %v3826_v46  ;;  %v2907_v48 = vand.u32 4294901760, %v2901_v47  ;;  %v1953_v46 = vpop.permute.xlu0 %1952 }
 0x4d5   : >> { %9952 = vpow2.f32 %v4762_v58 }
 0x4d6   : >> { %v2984_v50 = vsub.f32 %v2901_v47, %v2907_v48  ;;  %8991 = vmatpush3.msra.mxu1 %v2907_v48  ;;  %v1942_v47 = vld [vmem:[#allocation3] sm:$0xff] }
 0x4d7   : >> { %8993 = vmatmul.mubr.f32.vlgmr.msra.gmra.mrb[14].mxu1 %v2976_v49  ;;  %8995 = vmatprep.subr.mxu1 %v10064_v55  ;;  %v1955_v49 = vmul.f32 %v1953_v46, %v1949_v44 }
 0x4d8   : >> { %v2985_v52 = vand.u32 4294901760, %v2984_v50  ;;  %8997 = vmatprep.mubr.msk.f32.mxu1 %vm10063_vm4, %v10064_v55 }
 0x4da   : >> { %v2986_v53 = vsub.f32 %v2984_v50, %v2985_v52 }
 0x4dc   : >> { %v2987_v54 = vand.u32 4294901760, %v2986_v53  ;;  %v1943_v53 = vmul.f32 %v10467_v0, %v1942_v47 }
 0x4de   : >> { %v9951_v56 = vpop.eup %9950  ;;  %8996 = vmatpush3.msra.mxu1 %v2987_v54  ;;  %v3841_v58 = vpop.permute.xlu0 %3840 }
 0x4df   : >> { %8998 = vmatmul.mubr.f32.vlgmr.msra.gmra.mrb[16].mxu1 %v2972_v39  ;;  %9000 = vmatprep.subr.mxu1 %v10064_v55  ;;  %v3831_v51 = vsel %vm955_vm2, %v9951_v56, 0.0  ;;  %v3848_v59 = vsel %vm955_vm2, %v9951_v56, 0  ;;  %v10528_v61 = vpop.eup %9952 }
 0x4e0   : >> { %9001 = vmatpush3.msra.mxu1 %v2984_v50  ;;  %3832 = vadd.xlane.f32.xlu0 %v3831_v51  ;;  %v3916_v60 = vand.u32 4294901760, %v3848_v59 }
 0x4e1   : >> { %9002 = vmatprep.mubr.msk.f32.mxu1 %vm10063_vm4, %v10064_v55  ;;  %9005 = vmatprep.subr.mxu1 %v10064_v55 }
 0x4e2   : >> { %v3917_v62 = vsub.f32 %v3848_v59, %v3916_v60  ;;  %v2885_v59 = vld [vmem:[#allocation3 + $0x8] sm:$0xff] }
 0x4e3   : >> { %9003 = vmatmul.mubr.f32.vlgmr.msra.gmra.mrb[18].mxu1 %v2973_v40 }
 0x4e4   : >> { %9006 = vmatpush3.msra.mxu1 %v2907_v48  ;;  %9007 = vmatprep.mubr.msk.f32.mxu1 %vm10063_vm4, %v10064_v55  ;;  %v3918_v63 = vand.u32 4294901760, %v3917_v62 }
 0x4e5   : >> { %9010 = vmatprep.subr.mxu1 %v10064_v55 }
 0x4e6   : >> { %v3919_v4 = vsub.f32 %v3917_v62, %v3918_v63 }
 0x4e7   : >> { %9008 = vmatmul.mubr.f32.vlgmr.msra.gmra.mrb[20].mxu1 %v2974_v41 }
 0x4e8   : >> { %9011 = vmatpush3.msra.mxu1 %v2985_v52  ;;  %9012 = vmatprep.mubr.msk.f32.mxu1 %vm10063_vm4, %v10064_v55  ;;  %v3920_v8 = vand.u32 4294901760, %v3919_v4 }
 0x4e9   : >> { %9015 = vmatprep.subr.mxu1 %v10064_v55 }
 0x4eb   : >> { %9013 = vmatmul.mubr.f32.vlgmr.msra.gmra.mrb[22].mxu1 %v2972_v39 }
 0x4ec   : >> { %9016 = vmatpush3.msra.mxu1 %v2907_v48  ;;  %9017 = vmatprep.mubr.msk.f32.mxu1 %vm10063_vm4, %v10064_v55 }
 0x4ed   : >> { %9050 = vmatprep.subr.mxu1 %v10064_v55 }
 0x4ef   : >> { %9018 = vmatmul.mubr.f32.vlgmr.msra.gmra.mrb[24].mxu1 %v2972_v39 }
 0x4f0   : >> { %9052 = vmatprep.mubr.msk.f32.mxu1 %vm10063_vm4, %v10064_v55 }
 0x4f6   : >> { %4784 = vperm.xlu0 %9939, %v10528_v61  }
 0x4fb   : >> { %v4767_v1 = vpop.permute.xlu1 %4766 }
 0x4fc   : >> { %v4769_v2 = vsub.f32 %v10453_v57, %v4767_v1 }
 0x4fe   : >> { %v4770_v5 = vmul.f32 1.442695, %v4769_v2 }
 0x4ff   : >> { %v3845_v6 = vpop.permute.xlu1 %3844 }
 0x500   : >> { %9954 = vpow2.f32 %v4770_v5  ;;  %v3851_v7 = vand.u32 4294901760, %v3845_v6  ;;  %v4773_v5 = vld [vmem:[#allocation3 + $0x18] sm:$0xff] }
 0x502   : >> { %v3928_v10 = vsub.f32 %v3845_v6, %v3851_v7  ;;  %9051 = vmatpush3.msra.mxu1 %v3851_v7  ;;  %v4774_v6 = vmul.f32 %v10528_v61, %v4773_v5 }
 0x503   : >> { %9053 = vmatmul.mubr.f32.vlgmr.msra.gmra.mrb[26].mxu1 %v3920_v8  ;;  %9055 = vmatprep.subr.mxu1 %v10064_v55  ;;  %v4789_v15 = vpop.permute.xlu1 %4788 }
 0x504   : >> { %v3929_v11 = vand.u32 4294901760, %v3928_v10  ;;  %9057 = vmatprep.mubr.msk.f32.mxu1 %vm10063_vm4, %v10064_v55  ;;  %v4795_v18 = vand.u32 4294901760, %v4789_v15 }
 0x506   : >> { %v3930_v12 = vsub.f32 %v3928_v10, %v3929_v11  ;;  %v4872_v21 = vsub.f32 %v4789_v15, %v4795_v18 }
 0x508   : >> { %v3931_v13 = vand.u32 4294901760, %v3930_v12  ;;  %v4873_v23 = vand.u32 4294901760, %v4872_v21 }
 0x50a   : >> { %v9955_v14 = vpop.eup %9954  ;;  %9056 = vmatpush3.msra.mxu1 %v3931_v13  ;;  %v4874_v26 = vsub.f32 %v4872_v21, %v4873_v23 }
 0x50b   : >> { %v4792_v57 = vsel %vm955_vm2, %v9955_v14, 0  ;;  %9058 = vmatmul.mubr.f32.vlgmr.msra.gmra.mrb[28].mxu1 %v3916_v60  ;;  %9060 = vmatprep.subr.mxu1 %v10064_v55  ;;  %v4775_v16 = vsel %vm955_vm2, %v9955_v14, 0.0 }
 0x50c   : >> { %4776 = vadd.xlane.f32.xlu1 %v4775_v16  ;;  %9061 = vmatpush3.msra.mxu1 %v3928_v10  ;;  %v10538_v17 = vand.u32 4294901760, %v4792_v57  ;;  %v4875_v28 = vand.u32 4294901760, %v4874_v26 }
 0x50d   : >> { %9062 = vmatprep.mubr.msk.f32.mxu1 %vm10063_vm4, %v10064_v55  ;;  %9065 = vmatprep.subr.mxu1 %v10064_v55 }
 0x50e   : >> { %v4861_v20 = vsub.f32 %v4792_v57, %v10538_v17 }
 0x50f   : >> { %9063 = vmatmul.mubr.f32.vlgmr.msra.gmra.mrb[30].mxu1 %v3917_v62 }
 0x510   : >> { %9066 = vmatpush3.msra.mxu1 %v3851_v7  ;;  %9067 = vmatprep.mubr.msk.f32.mxu1 %vm10063_vm4, %v10064_v55  ;;  %v4862_v22 = vand.u32 4294901760, %v4861_v20 }
 0x511   : >> { %9070 = vmatprep.subr.mxu1 %v10064_v55 }
 0x512   : >> { %v4863_v24 = vsub.f32 %v4861_v20, %v4862_v22 }
 0x513   : >> { %9068 = vmatmul.mubr.f32.vlgmr.msra.gmra.mrb[32].mxu1 %v3918_v63  ;;  %v3829_v63 = vld [vmem:[#allocation3 + $0x10] sm:$0xff] }
 0x514   : >> { %9071 = vmatpush3.msra.mxu1 %v3929_v11  ;;  %9072 = vmatprep.mubr.msk.f32.mxu1 %vm10063_vm4, %v10064_v55  ;;  %v4864_v27 = vand.u32 4294901760, %v4863_v24  ;;  %v3830_v1 = vmul.f32 %v10489_v25, %v3829_v63 }
 0x515   : >> { %9075 = vmatprep.subr.mxu1 %v10064_v55 }
 0x517   : >> { %9073 = vmatmul.mubr.f32.vlgmr.msra.gmra.mrb[34].mxu1 %v3916_v60 }
 0x518   : >> { %9076 = vmatpush3.msra.mxu1 %v3851_v7  ;;  %9077 = vmatprep.mubr.msk.f32.mxu1 %vm10063_vm4, %v10064_v55 }
 0x519   : >> { %9110 = vmatprep.subr.mxu1 %v10064_v55 }
 0x51b   : >> { %9078 = vmatmul.mubr.f32.vlgmr.msra.gmra.mrb[36].mxu1 %v3916_v60 }
 0x51c   : >> { %9111 = vmatpush3.msra.mxu1 %v4795_v18  ;;  %9112 = vmatprep.mubr.msk.f32.mxu1 %vm10063_vm4, %v10064_v55 }
 0x51d   : >> { %9115 = vmatprep.subr.mxu1 %v10064_v55 }
 0x51e   : >> { %v2034_v29 = vpop.f32.mrb[2].mxu1 }
 0x51f   : >> { %v8934_v30 = vpop.f32.mrb[3].mxu1  ;;  %9113 = vmatmul.mubr.f32.vlgmr.msra.gmra.mrb[38].mxu1 %v4864_v27 }
 0x520   : >> { %9116 = vmatpush3.msra.mxu1 %v4875_v28  ;;  %9117 = vmatprep.mubr.msk.f32.mxu1 %vm10063_vm4, %v10064_v55 }
 0x521   : >> { %9120 = vmatprep.subr.mxu1 %v10064_v55 }
 0x522   : >> { %v2110_v31 = vpop.f32.mrb[4].mxu1 }
 0x523   : >> { %v2111_v33 = vadd.f32 %v2110_v31, %v2034_v29  ;;  %v8939_v34 = vpop.f32.mrb[5].mxu1  ;;  %9118 = vmatmul.mubr.f32.vlgmr.msra.gmra.mrb[40].mxu1 %v10538_v17 }
 0x524   : >> { %9121 = vmatpush3.msra.mxu1 %v4872_v21  ;;  %9122 = vmatprep.mubr.msk.f32.mxu1 %vm10063_vm4, %v10064_v55 }
 0x525   : >> { %9125 = vmatprep.subr.mxu1 %v10064_v55 }
 0x526   : >> { %v2184_v35 = vpop.f32.mrb[6].mxu1 }
 0x527   : >> { %v2185_v36 = vadd.f32 %v2184_v35, %v2111_v33  ;;  %v8944_v37 = vpop.f32.mrb[7].mxu1  ;;  %9123 = vmatmul.mubr.f32.vlgmr.msra.gmra.mrb[42].mxu1 %v4861_v20 }
 0x528   : >> { %9126 = vmatpush3.msra.mxu1 %v4795_v18  ;;  %9127 = vmatprep.mubr.msk.f32.mxu1 %vm10063_vm4, %v10064_v55 }
 0x529   : >> { %9130 = vmatprep.subr.mxu1 %v10064_v55 }
 0x52a   : >> { %v2258_v32 = vpop.f32.mrb[8].mxu1 }
 0x52b   : >> { %v2259_v39 = vadd.f32 %v2258_v32, %v2185_v36  ;;  %v8949_v40 = vpop.f32.mrb[9].mxu1  ;;  %9128 = vmatmul.mubr.f32.vlgmr.msra.gmra.mrb[44].mxu1 %v4862_v22  ;;  %v2893_v22 = vld [vmem:[#allocation4 + $0x8] sm:$0xff] }
 0x52c   : >> { %9131 = vmatpush3.msra.mxu1 %v4873_v23  ;;  %9132 = vmatprep.mubr.msk.f32.mxu1 %vm10063_vm4, %v10064_v55 }
 0x52d   : >> { %9135 = vmatprep.subr.mxu1 %v10064_v55 }
 0x52e   : >> { %v2332_v41 = vpop.f32.mrb[10].mxu1 }
 0x52f   : >> { %v2333_v42 = vadd.f32 %v2332_v41, %v2259_v39  ;;  %v8954_v43 = vpop.f32.mrb[11].mxu1  ;;  %9133 = vmatmul.mubr.f32.vlgmr.msra.gmra.mrb[46].mxu1 %v10538_v17 }
 0x530   : >> { %9136 = vmatpush3.msra.mxu1 %v4795_v18  ;;  %9137 = vmatprep.mubr.msk.f32.mxu1 %vm10063_vm4, %v10064_v55  ;;  %v2886_v55 = vmul.f32 %v10503_v38, %v2885_v59  ;;  %v3837_v43 = vld [vmem:[#allocation4 + $0x10] sm:$0xff] }
 0x531   : >> { %v3843_v46 = vmul.f32 %v3841_v58, %v3837_v43  ;;  %v4781_v58 = vld [vmem:[#allocation4 + $0x18] sm:$0xff]  ;;  %9165 = vmatprep.subr.mxu1 (%p963_p12), %v10060_v9 }
 0x532   : >> { %v2404_v48 = vpop.f32.mrb[12].mxu1 }
 0x533   : >> { %v2405_v50 = vadd.f32 %v2404_v48, %v2333_v42  ;;  %v8959_v52 = vpop.f32.mrb[13].mxu1  ;;  %9138 = vmatmul.mubr.f32.vlgmr.msra.gmra.mrb[48].mxu1 %v10538_v17 }
 0x534   : > { %9167 = vmatprep.mubr.msk.f32.mxu1 (%p963_p12), %vm10059_vm0, %v10060_v9 }
 0x535   : >> { %v2408_v54 = vadd.f32 %v2405_v50, %v1955_v49  ;;  %v1946_v56 = vpop.xlane.xlu1 %1945 }
 0x536   : >> { %v1947_v51 = vadd.f32 %v1946_v56, %v1943_v53 }
 0x537   : >> { %2409 = vst.msk [vmem:[#allocation4] sm:$0xff] %vm955_vm2, %v2408_v54 }
 0x538   : >> { %1948 = vst.msk [vmem:[#allocation3] sm:$0xff] %vm946_vm1, %v1947_v51 }
 0x539   : >> { %v2897_v4 = vpop.permute.xlu1 %2896 }
 0x53a   : >> { %v2899_v23 = vmul.f32 %v2897_v4, %v2893_v22 }
 0x541   : >> { %v2889_v60 = vpop.xlane.xlu0 %2888 }
 0x542   : >> { %v2890_v62 = vadd.f32 %v2889_v60, %v2886_v55 }
 0x544   : >> { %2891 = vst.msk [vmem:[#allocation3 + $0x8] sm:$0xff] %vm946_vm1, %v2890_v62 }
 0x56d   : >> { %v3833_v2 = vpop.xlane.xlu0 %3832 }
 0x56e   : >> { %v3834_v0 = vadd.f32 %v3833_v2, %v3830_v1 }
 0x570   : >> { %3835 = vst.msk [vmem:[#allocation3 + $0x10] sm:$0xff] %vm946_vm1, %v3834_v0 }
 0x575   : >> { %v4785_v4 = vpop.permute.xlu0 %4784 }
 0x599   : >> { %v4777_v7 = vpop.xlane.xlu1 %4776 }
 0x59a   : >> { %v4778_v8 = vadd.f32 %v4777_v7, %v4774_v6  ;;  %v4787_v6 = vmul.f32 %v4785_v4, %v4781_v58 }
 0x59c   : >> { %4779 = vst.msk [vmem:[#allocation3 + $0x18] sm:$0xff] %vm946_vm1, %v4778_v8 }
 0x5aa   : >> { %v2978_v38 = vpop.f32.mrb[14].mxu1 }
 0x5ab   : >> { %v8994_v10 = vpop.f32.mrb[15].mxu1 }
 0x5ac   : > { %v5256_v10 = vld [vmem:[#allocation3 + $0x8] sm:$0xff] (%p963_p12) }
 0x5ad   : > { %9958 = vrcp.f32 (%p963_p12), %v5256_v10 }
 0x5b2   : >> { %v3054_v11 = vpop.f32.mrb[16].mxu1 }
 0x5b3   : >> { %v3055_v12 = vadd.f32 %v3054_v11, %v2978_v38  ;;  %v8999_v13 = vpop.f32.mrb[17].mxu1  ;;  %v5244_v11 = vld [vmem:[#allocation3] sm:$0xff] (%p963_p12) }
 0x5b4   : > { %v10074_v13 = vmov (%p963_p12), 0   ;;  %9960 = vrcp.f32 (%p963_p12), %v5244_v11 }
 0x5b5   : > { %9956 = vset.pattern.permute.xlu0 (%p963_p12), %v10074_v13  ;;  %9957 = vset.pattern.permute.xlu1 (%p963_p12), %v10074_v13 }
 0x5b6   : >> { %v3128_v14 = vpop.f32.mrb[18].mxu1 }
 0x5b7   : >> { %v3129_v57 = vadd.f32 %v3128_v14, %v3055_v12  ;;  %v9004_v25 = vpop.f32.mrb[19].mxu1  ;;  %v6166_v12 = vld [vmem:[#allocation3 + $0x10] sm:$0xff] (%p963_p12)  ;;  %v6628_v14 = vld [vmem:[#allocation3 + $0x18] sm:$0xff] (%p963_p12)  ;;  %v9959_v45 = vpop.eup (%p963_p12), %9958 }
 0x5b8   : > { %9962 = vrcp.f32 (%p963_p12), %v6166_v12  ;;  %5260 = vperm.xlu0 (%p963_p12), %9956, %v9959_v45  }
 0x5b9   : > { %9964 = vrcp.f32 (%p963_p12), %v6628_v14 }
 0x5ba   : >> { %v3202_v15 = vpop.f32.mrb[20].mxu1 }
 0x5bb   : >> { %v3203_v16 = vadd.f32 %v3202_v15, %v3129_v57  ;;  %v9009_v17 = vpop.f32.mrb[21].mxu1  ;;  %v5264_v15 = vld [vmem:[%s11186_s3 + $0x8] sm:$0xff] (%p963_p12) }
 0x5be   : >> { %v3276_v18 = vpop.f32.mrb[22].mxu1  ;;  %v9961_v57 = vpop.eup (%p963_p12), %9960 }
 0x5bf   : >> { %v3277_v20 = vadd.f32 %v3276_v18, %v3203_v16  ;;  %v9014_v21 = vpop.f32.mrb[23].mxu1  ;;  %v10597_v16 = vand.u32 (%p963_p12), 4294901760, %v5264_v15  ;;  %5248 = vperm.xlu0 (%p963_p12), %9956, %v9961_v57   ;;  %v5252_v18 = vld [vmem:[%s11186_s3] sm:$0xff] (%p963_p12) }
 0x5c1   : > { %9166 = vmatpush3.msra.mxu1 (%p963_p12), %v10597_v16  ;;  %9141 = vmatpush3.msra.mxu0 (%p963_p12), %v10597_v16 }
 0x5c2   : >> { %v3348_v61 = vpop.f32.mrb[24].mxu1  ;;  %v9963_v25 = vpop.eup (%p963_p12), %9962  ;;  %9175 = vmatprep.subr.mxu1 (%p963_p12), %v10060_v9  ;;  %9145 = vmatprep.subr.mxu0 (%p963_p12), %v10060_v9 }
 0x5c3   : >> { %v3349_v24 = vadd.f32 %v3348_v61, %v3277_v20  ;;  %v9019_v26 = vpop.f32.mrb[25].mxu1  ;;  %6170 = vperm.xlu1 (%p963_p12), %9957, %v9963_v25   ;;  %v9965_v17 = vpop.eup (%p963_p12), %9964  ;;  %v10606_v20 = vand.u32 (%p963_p12), 4294901760, %v5252_v18  ;;  %v6174_v61 = vld [vmem:[%s11186_s3 + $0x10] sm:$0xff] (%p963_p12) }
 0x5c5   : >> { %v3352_v27 = vadd.f32 %v3349_v24, %v2899_v23  ;;  %v10609_v21 = vsub.f32 (%p963_p12), %v5252_v18, %v10606_v20  ;;  %v10616_v24 = vsub.f32 (%p963_p12), %v5264_v15, %v10597_v16 }
 0x5c7   : >> { %3353 = vst.msk [vmem:[#allocation4 + $0x8] sm:$0xff] %vm955_vm2, %v3352_v27  ;;  %6632 = vperm.xlu1 (%p963_p12), %9957, %v9965_v17   ;;  %v5796_v22 = vand.u32 (%p963_p12), 4294901760, %v10609_v21 }
 0x5c9   : > { %v5797_v26 = vsub.f32 (%p963_p12), %v10609_v21, %v5796_v22 }
 0x5ce   : > { %v5254_v23 = vld [vmem:[#allocation4 + $0x8] sm:$0xff] (%p963_p12) }
 0x5d6   : >> { %v3922_v28 = vpop.f32.mrb[26].mxu1 }
 0x5d7   : >> { %v9054_v29 = vpop.f32.mrb[27].mxu1 }
 0x5de   : >> { %v3998_v30 = vpop.f32.mrb[28].mxu1 }
 0x5df   : >> { %v3999_v31 = vadd.f32 %v3998_v30, %v3922_v28  ;;  %v9059_v33 = vpop.f32.mrb[29].mxu1  ;;  %v10621_v28 = vand.u32 (%p963_p12), 4294901760, %v6174_v61  ;;  %v5243_v30 = vld [vmem:[#allocation4] sm:$0xff] (%p963_p12) }
 0x5e0   : > { %v5798_v33 = vand.u32 (%p963_p12), 4294901760, %v5797_v26 }
 0x5e2   : >> { %v4072_v34 = vpop.f32.mrb[30].mxu1 }
 0x5e3   : >> { %v4073_v35 = vadd.f32 %v4072_v34, %v3999_v31  ;;  %v9064_v36 = vpop.f32.mrb[31].mxu1  ;;  %v5347_v34 = vand.u32 (%p963_p12), 4294901760, %v10616_v24 }
 0x5e5   : > { %v5348_v43 = vsub.f32 (%p963_p12), %v10616_v24, %v5347_v34 }
 0x5e6   : >> { %v4146_v37 = vpop.f32.mrb[32].mxu1 }
 0x5e7   : >> { %v4147_v32 = vadd.f32 %v4146_v37, %v4073_v35  ;;  %v9069_v39 = vpop.f32.mrb[33].mxu1 }
 0x5e8   : > { %v10628_v39 = vsub.f32 (%p963_p12), %v6174_v61, %v10621_v28 }
 0x5ea   : >> { %v4220_v40 = vpop.f32.mrb[34].mxu1 }
 0x5eb   : >> { %v4221_v41 = vadd.f32 %v4220_v40, %v4147_v32  ;;  %v9074_v42 = vpop.f32.mrb[35].mxu1 }
 0x5ee   : >> { %v4292_v44 = vpop.f32.mrb[36].mxu1 }
 0x5ef   : >> { %v4293_v47 = vadd.f32 %v4292_v44, %v4221_v41  ;;  %v9079_v48 = vpop.f32.mrb[37].mxu1 }
 0x5f0   : > { %v6257_v48 = vand.u32 (%p963_p12), 4294901760, %v10628_v39 }
 0x5f1   : >> { %v4296_v49 = vadd.f32 %v4293_v47, %v3843_v46 }
 0x5f2   : >> { %v4866_v50 = vpop.f32.mrb[38].mxu1 }
 0x5f3   : >> { %4297 = vst.msk [vmem:[#allocation4 + $0x10] sm:$0xff] %vm955_vm2, %v4296_v49  ;;  %v9114_v52 = vpop.f32.mrb[39].mxu1  ;;  %v6636_v49 = vld [vmem:[%s11186_s3 + $0x18] sm:$0xff] (%p963_p12) }
 0x5f6   : >> { %v4942_v53 = vpop.f32.mrb[40].mxu1 }
 0x5f7   : >> { %v4943_v54 = vadd.f32 %v4942_v53, %v4866_v50  ;;  %v9119_v56 = vpop.f32.mrb[41].mxu1  ;;  %v5349_v53 = vand.u32 (%p963_p12), 4294901760, %v5348_v43 }
 0x5fa   : >> { %v5016_v51 = vpop.f32.mrb[42].mxu1  ;;  %v6164_v37 = vld [vmem:[#allocation4 + $0x10] sm:$0xff] (%p963_p12) }
 0x5fb   : >> { %v5017_v59 = vadd.f32 %v5016_v51, %v4943_v54  ;;  %v9124_v55 = vpop.f32.mrb[43].mxu1 }
 0x5fc   : > { %v10658_v55 = vand.u32 (%p963_p12), 4294901760, %v6636_v49 }
 0x5fe   : >> { %v5090_v60 = vpop.f32.mrb[44].mxu1 }
 0x5ff   : >> { %v5091_v62 = vadd.f32 %v5090_v60, %v5017_v59  ;;  %v9129_v63 = vpop.f32.mrb[45].mxu1  ;;  %v6258_v59 = vsub.f32 (%p963_p12), %v10628_v39, %v6257_v48 }
 0x602   : >> { %v5164_v1 = vpop.f32.mrb[46].mxu1 }
 0x603   : >> { %v5165_v2 = vadd.f32 %v5164_v1, %v5091_v62  ;;  %v9134_v0 = vpop.f32.mrb[47].mxu1  ;;  %v6259_v62 = vand.u32 (%p963_p12), 4294901760, %v6258_v59 }
 0x605   : > { %966 = sbr.rel (!%p963_p12) target bundleno = 271 (0x10f), region = 131 }
 0x606   : >> { %v5236_v5 = vpop.f32.mrb[48].mxu1 }
 0x607   : >> { %v5237_v7 = vadd.f32 %v5236_v5, %v5165_v2  ;;  %v9139_v8 = vpop.f32.mrb[49].mxu1  ;;  %v10667_v2 = vsub.f32 (%p963_p12), %v6636_v49, %v10658_v55 }
 0x609   : >> { %v5240_v38 = vadd.f32 %v5237_v7, %v4787_v6  ;;  %v6719_v4 = vand.u32 (%p963_p12), 4294901760, %v10667_v2 }
 0x60b   : >> { %5241 = vst.msk [vmem:[#allocation4 + $0x18] sm:$0xff] %vm955_vm2, %v5240_v38  ;;  %v6720_v7 = vsub.f32 (%p963_p12), %v10667_v2, %v6719_v4 }
 0x60d   : > { %v6721_v10 = vand.u32 4294901760, %v6720_v7 }
 0x612   : > { %v6626_v63 = vld [vmem:[#allocation4 + $0x18] sm:$0xff] }
 0x637   : > { %v5261_v27 = vpop.permute.xlu0 %5260 }
 0x638   : > { %v5263_v29 = vmul.f32 %v5261_v27, %v5254_v23 }
 0x63a   : > { %v5266_v31 = vsel %vm955_vm2, %v5263_v29, 0 }
 0x63b   : > { %v10625_v35 = vand.u32 4294901760, %v5266_v31 }
 0x63d   : > { %v5335_v41 = vsub.f32 %v5266_v31, %v10625_v35  ;;  %9168 = vmatmul.mubr.f32.vlgmr.msra.gmra.mrb[0].mxu1 %v10625_v35 }
 0x63e   : > { %v5249_v36 = vpop.permute.xlu0 %5248  ;;  %9176 = vmatpush3.msra.mxu1 %v5798_v33  ;;  %9177 = vmatprep.mubr.msk.f32.mxu1 %vm10059_vm0, %v10060_v9 }
 0x63f   : > { %v5251_v40 = vmul.f32 %v5249_v36, %v5243_v30  ;;  %9185 = vmatprep.subr.mxu1 %v10060_v9  ;;  %v5336_v47 = vand.u32 4294901760, %v5335_v41 }
 0x641   : > { %v5715_v42 = vsel %vm955_vm2, %v5251_v40, 0  ;;  %v5337_v52 = vsub.f32 %v5335_v41, %v5336_v47 }
 0x642   : > { %v6171_v32 = vpop.permute.xlu1 %6170  ;;  %v10638_v46 = vand.u32 4294901760, %v5715_v42 }
 0x643   : > { %v6173_v44 = vmul.f32 %v6171_v32, %v6164_v37  ;;  %v5338_v51 = vand.u32 4294901760, %v5337_v52 }
 0x644   : > { %v10646_v50 = vsub.f32 %v5715_v42, %v10638_v46  ;;  %9178 = vmatmul.mubr.f32.vlgmr.msra.gmra.mrb[2].mxu1 %v10638_v46 }
 0x645   : > { %9186 = vmatpush3.msra.mxu1 %v10606_v20  ;;  %9187 = vmatprep.mubr.msk.f32.mxu1 %vm10059_vm0, %v10060_v9  ;;  %v6176_v54 = vsel %vm955_vm2, %v6173_v44, 0 }
 0x646   : > { %v5785_v56 = vand.u32 4294901760, %v10646_v50  ;;  %9195 = vmatprep.subr.mxu1 %v10060_v9  ;;  %9143 = vmatmul.mubr.f32.vlgmr.msra.gmra.mrb[0].mxu0 %v5338_v51  ;;  %v10660_v60 = vand.u32 4294901760, %v6176_v54  ;;  %v6633_v1 = vpop.permute.xlu1 %6632 }
 0x647   : > { %9146 = vmatpush3.msra.mxu0 %v5349_v53  ;;  %9147 = vmatprep.mubr.msk.f32.mxu0 %vm10059_vm0, %v10060_v9  ;;  %v6635_v58 = vmul.f32 %v6633_v1, %v6626_v63 }
 0x648   : > { %9188 = vmatmul.mubr.f32.vlgmr.msra.gmra.mrb[4].mxu1 %v5785_v56  ;;  %9150 = vmatprep.subr.mxu0 %v10060_v9  ;;  %v10673_v0 = vsub.f32 %v6176_v54, %v10660_v60  ;;  %v5786_v38 = vsub.f32 %v10646_v50, %v5785_v56 }
 0x649   : > { %9196 = vmatpush3.msra.mxu1 %v10606_v20  ;;  %9197 = vmatprep.mubr.msk.f32.mxu1 %vm10059_vm0, %v10060_v9  ;;  %v6638_v6 = vsel %vm955_vm2, %v6635_v58, 0 }
 0x64a   : > { %9205 = vmatprep.subr.mxu1 %v10060_v9  ;;  %9148 = vmatmul.mubr.f32.vlgmr.msra.gmra.mrb[2].mxu0 %v10625_v35  ;;  %v6246_v5 = vand.u32 4294901760, %v10673_v0  ;;  %v10699_v8 = vand.u32 4294901760, %v6638_v6  ;;  %v5787_v12 = vand.u32 4294901760, %v5786_v38 }
 0x64b   : > { %9151 = vmatpush3.msra.mxu0 %v10616_v24  ;;  %9152 = vmatprep.mubr.msk.f32.mxu0 %vm10059_vm0, %v10060_v9 }
 0x64c   : > { %9198 = vmatmul.mubr.f32.vlgmr.msra.gmra.mrb[6].mxu1 %v10638_v46  ;;  %9155 = vmatprep.subr.mxu0 %v10060_v9  ;;  %v6707_v11 = vsub.f32 %v6638_v6, %v10699_v8  ;;  %v6247_v14 = vsub.f32 %v10673_v0, %v6246_v5 }
 0x64d   : > { %9206 = vmatpush3.msra.mxu1 %v6259_v62  ;;  %9207 = vmatprep.mubr.msk.f32.mxu1 %vm10059_vm0, %v10060_v9 }
 0x64e   : > { %9215 = vmatprep.subr.mxu1 %v10060_v9  ;;  %9153 = vmatmul.mubr.f32.vlgmr.msra.gmra.mrb[4].mxu0 %v5335_v41  ;;  %v6708_v13 = vand.u32 4294901760, %v6707_v11  ;;  %v6248_v45 = vand.u32 4294901760, %v6247_v14 }
 0x64f   : > { %9156 = vmatpush3.msra.mxu0 %v10597_v16  ;;  %9157 = vmatprep.mubr.msk.f32.mxu0 %vm10059_vm0, %v10060_v9 }
 0x650   : > { %9208 = vmatmul.mubr.f32.vlgmr.msra.gmra.mrb[8].mxu1 %v10660_v60  ;;  %9160 = vmatprep.subr.mxu0 %v10060_v9  ;;  %v6709_v57 = vsub.f32 %v6707_v11, %v6708_v13 }
 0x651   : > { %9216 = vmatpush3.msra.mxu1 %v10621_v28  ;;  %9217 = vmatprep.mubr.msk.f32.mxu1 %vm10059_vm0, %v10060_v9 }
 0x652   : > { %9225 = vmatprep.subr.mxu1 %v10060_v9  ;;  %9158 = vmatmul.mubr.f32.vlgmr.msra.gmra.mrb[6].mxu0 %v5336_v47  ;;  %v6710_v25 = vand.u32 4294901760, %v6709_v57 }
 0x653   : > { %9161 = vmatpush3.msra.mxu0 %v5347_v34  ;;  %9162 = vmatprep.mubr.msk.f32.mxu0 %vm10059_vm0, %v10060_v9 }
 0x654   : > { %9218 = vmatmul.mubr.f32.vlgmr.msra.gmra.mrb[10].mxu1 %v6246_v5  ;;  %9170 = vmatprep.subr.mxu0 %v10060_v9 }
 0x655   : > { %9226 = vmatpush3.msra.mxu1 %v10621_v28  ;;  %9227 = vmatprep.mubr.msk.f32.mxu1 %vm10059_vm0, %v10060_v9 }
 0x656   : > { %9235 = vmatprep.subr.mxu1 %v10060_v9  ;;  %9163 = vmatmul.mubr.f32.vlgmr.msra.gmra.mrb[8].mxu0 %v10625_v35 }
 0x657   : > { %9171 = vmatpush3.msra.mxu0 %v10606_v20  ;;  %9172 = vmatprep.mubr.msk.f32.mxu0 %vm10059_vm0, %v10060_v9 }
 0x658   : > { %9228 = vmatmul.mubr.f32.vlgmr.msra.gmra.mrb[12].mxu1 %v10660_v60  ;;  %9180 = vmatprep.subr.mxu0 %v10060_v9 }
 0x659   : > { %9236 = vmatpush3.msra.mxu1 %v6721_v10  ;;  %9237 = vmatprep.mubr.msk.f32.mxu1 %vm10059_vm0, %v10060_v9 }
 0x65a   : > { %9245 = vmatprep.subr.mxu1 %v10060_v9  ;;  %9173 = vmatmul.mubr.f32.vlgmr.msra.gmra.mrb[10].mxu0 %v5787_v12 }
 0x65b   : > { %9181 = vmatpush3.msra.mxu0 %v10609_v21  ;;  %9182 = vmatprep.mubr.msk.f32.mxu0 %vm10059_vm0, %v10060_v9 }
 0x65c   : > { %9238 = vmatmul.mubr.f32.vlgmr.msra.gmra.mrb[14].mxu1 %v10699_v8  ;;  %9190 = vmatprep.subr.mxu0 %v10060_v9 }
 0x65d   : > { %9246 = vmatpush3.msra.mxu1 %v10658_v55  ;;  %9247 = vmatprep.mubr.msk.f32.mxu1 %vm10059_vm0, %v10060_v9 }
 0x65e   : > { %9255 = vmatprep.subr.mxu1 %v10060_v9  ;;  %9183 = vmatmul.mubr.f32.vlgmr.msra.gmra.mrb[12].mxu0 %v10646_v50 }
 0x65f   : > { %9191 = vmatpush3.msra.mxu0 %v5796_v22  ;;  %9192 = vmatprep.mubr.msk.f32.mxu0 %vm10059_vm0, %v10060_v9 }
 0x660   : > { %9248 = vmatmul.mubr.f32.vlgmr.msra.gmra.mrb[16].mxu1 %v6708_v13  ;;  %9200 = vmatprep.subr.mxu0 %v10060_v9 }
 0x661   : > { %9256 = vmatpush3.msra.mxu1 %v10658_v55  ;;  %9257 = vmatprep.mubr.msk.f32.mxu1 %vm10059_vm0, %v10060_v9 }
 0x662   : > { %9644 = vmatprep.subr.bf16.mxu1 %v10058_v3  ;;  %9193 = vmatmul.mubr.f32.vlgmr.msra.gmra.mrb[14].mxu0 %v10638_v46 }
 0x663   : > { %9201 = vmatpush3.msra.mxu0 %v10621_v28  ;;  %9202 = vmatprep.mubr.msk.f32.mxu0 %vm10059_vm0, %v10060_v9 }
 0x664   : > { %9258 = vmatmul.mubr.f32.vlgmr.msra.gmra.mrb[18].mxu1 %v10699_v8  ;;  %9210 = vmatprep.subr.mxu0 %v10060_v9 }
 0x665   : > { %9358 = vmatprep.mubr.msk.f32.mxu1 %vm10059_vm0, %v10060_v9 }
 0x666   : > { %9203 = vmatmul.mubr.f32.vlgmr.msra.gmra.mrb[16].mxu0 %v6248_v45 }
 0x667   : > { %9211 = vmatpush3.msra.mxu0 %v10628_v39  ;;  %9212 = vmatprep.mubr.msk.f32.mxu0 %vm10059_vm0, %v10060_v9 }
 0x668   : > { %9220 = vmatprep.subr.mxu0 %v10060_v9 }
 0x66a   : > { %9213 = vmatmul.mubr.f32.vlgmr.msra.gmra.mrb[18].mxu0 %v10673_v0 }
 0x66b   : > { %9221 = vmatpush3.msra.mxu0 %v6257_v48  ;;  %9222 = vmatprep.mubr.msk.f32.mxu0 %vm10059_vm0, %v10060_v9 }
 0x66c   : > { %9230 = vmatprep.subr.mxu0 %v10060_v9 }
 0x66e   : > { %9223 = vmatmul.mubr.f32.vlgmr.msra.gmra.mrb[20].mxu0 %v10660_v60 }
 0x66f   : > { %9231 = vmatpush3.msra.mxu0 %v10658_v55  ;;  %9232 = vmatprep.mubr.msk.f32.mxu0 %vm10059_vm0, %v10060_v9 }
 0x670   : > { %9240 = vmatprep.subr.mxu0 %v10060_v9 }
 0x672   : > { %9233 = vmatmul.mubr.f32.vlgmr.msra.gmra.mrb[22].mxu0 %v6710_v25 }
 0x673   : > { %9241 = vmatpush3.msra.mxu0 %v10667_v2  ;;  %9242 = vmatprep.mubr.msk.f32.mxu0 %vm10059_vm0, %v10060_v9 }
 0x674   : > { %9250 = vmatprep.subr.mxu0 %v10060_v9 }
 0x676   : > { %9243 = vmatmul.mubr.f32.vlgmr.msra.gmra.mrb[24].mxu0 %v6707_v11 }
 0x677   : > { %9251 = vmatpush3.msra.mxu0 %v6719_v4  ;;  %9252 = vmatprep.mubr.msk.f32.mxu0 %vm10059_vm0, %v10060_v9 }
 0x678   : > { %9608 = vmatprep.subr.bf16.mxu0 %v10058_v3 }
 0x67a   : > { %9253 = vmatmul.mubr.f32.vlgmr.msra.gmra.mrb[26].mxu0 %v10699_v8 }
 0x67b   : > { %9268 = vmatprep.mubr.msk.f32.mxu0 %vm10059_vm0, %v10060_v9 }
 0x710   : > { %v5710_v15 = vpop.f32.mrb[0].mxu1 }
 0x711   : > { %v9169_v16 = vpop.f32.mrb[1].mxu1 }
 0x717   : > { %v5865_v17 = vpop.f32.mrb[2].mxu1 }
 0x718   : > { %v9179_v18 = vpop.f32.mrb[3].mxu1 }
 0x719   : > { %v5340_v20 = vpop.f32.mrb[0].mxu0 }
 0x71a   : > { %v9144_v22 = vpop.f32.mrb[1].mxu0 }
 0x71b   : > { %v6013_v21 = vpop.f32.mrb[4].mxu1 }
 0x71c   : > { %v9189_v61 = vpop.f32.mrb[5].mxu1 }
 0x71d   : > { %v5416_v23 = vpop.f32.mrb[2].mxu0 }
 0x71e   : > { %v5417_v26 = vadd.f32 %v5416_v23, %v5340_v20  ;;  %v9149_v27 = vpop.f32.mrb[3].mxu0 }
 0x71f   : > { %v6159_v24 = vpop.f32.mrb[6].mxu1 }
 0x720   : > { %v9199_v28 = vpop.f32.mrb[7].mxu1 }
 0x721   : > { %v5490_v29 = vpop.f32.mrb[4].mxu0 }
 0x722   : > { %v5491_v31 = vadd.f32 %v5490_v29, %v5417_v26  ;;  %v9154_v33 = vpop.f32.mrb[5].mxu0 }
 0x723   : > { %v6326_v30 = vpop.f32.mrb[8].mxu1 }
 0x724   : > { %v9209_v34 = vpop.f32.mrb[9].mxu1 }
 0x725   : > { %v5564_v35 = vpop.f32.mrb[6].mxu0 }
 0x726   : > { %v5565_v37 = vadd.f32 %v5564_v35, %v5491_v31  ;;  %v9159_v32 = vpop.f32.mrb[7].mxu0 }
 0x727   : > { %v6474_v36 = vpop.f32.mrb[10].mxu1 }
 0x728   : > { %v9219_v39 = vpop.f32.mrb[11].mxu1 }
 0x729   : > { %v5638_v40 = vpop.f32.mrb[8].mxu0 }
 0x72a   : > { %v5639_v42 = vadd.f32 %v5638_v40, %v5565_v37  ;;  %v9164_v43 = vpop.f32.mrb[9].mxu0  ;;  %v7128_v37 = vld [vmem:[%s11190_s7 + $0x10] sm:$0xff]  ;;  %v7129_v40 = vld [vmem:[%s11190_s7 + $0x18] sm:$0xff] }
 0x72b   : > { %v6620_v41 = vpop.f32.mrb[12].mxu1 }
 0x72c   : > { %v9229_v44 = vpop.f32.mrb[13].mxu1  ;;  %v5711_v46 = vadd.f32 %v5710_v15, %v5639_v42  ;;  %v7150_v42 = vand.u32 4294901760, %v7129_v40 }
 0x72d   : > { %v5789_v47 = vpop.f32.mrb[10].mxu0 }
 0x72e   : > { %v5790_v49 = vadd.f32 %v5789_v47, %v5711_v46  ;;  %v9174_v50 = vpop.f32.mrb[11].mxu0 }
 0x72f   : > { %v6788_v48 = vpop.f32.mrb[14].mxu1 }
 0x730   : > { %v9239_v52 = vpop.f32.mrb[15].mxu1  ;;  %v5866_v53 = vadd.f32 %v5865_v17, %v5790_v49 }
 0x731   : > { %v5939_v54 = vpop.f32.mrb[12].mxu0 }
 0x732   : > { %v5940_v51 = vadd.f32 %v5939_v54, %v5866_v53  ;;  %v9184_v59 = vpop.f32.mrb[13].mxu0 }
 0x733   : > { %v6936_v56 = vpop.f32.mrb[16].mxu1 }
 0x734   : > { %v9249_v55 = vpop.f32.mrb[17].mxu1  ;;  %v6014_v60 = vadd.f32 %v6013_v21, %v5940_v51 }
 0x735   : > { %v6087_v62 = vpop.f32.mrb[14].mxu0 }
 0x736   : > { %v6088_v1 = vadd.f32 %v6087_v62, %v6014_v60  ;;  %v9194_v2 = vpop.f32.mrb[15].mxu0 }
 0x737   : > { %v7082_v63 = vpop.f32.mrb[18].mxu1 }
 0x738   : > { %v9259_v0 = vpop.f32.mrb[19].mxu1  ;;  %v6160_v58 = vadd.f32 %v6159_v24, %v6088_v1  ;;  %v8421_v24 = vld [vmem:[%s11187_s4] ss:$0 sm:$0xff] }
 0x739   : > { %v6250_v4 = vpop.f32.mrb[16].mxu0 }
 0x73a   : > { %v6327_v5 = vadd.f32 %v6326_v30, %v6250_v4  ;;  %v9204_v6 = vpop.f32.mrb[17].mxu0 }
 0x73d   : > { %v6400_v7 = vpop.f32.mrb[18].mxu0 }
 0x73e   : > { %v6401_v8 = vadd.f32 %v6400_v7, %v6327_v5  ;;  %v9214_v38 = vpop.f32.mrb[19].mxu0  ;;  %v7626_v7 = vld [vmem:[%s11192_s9] sm:$0xff] }
 0x73f   : > { %v7650_v38 = vand.u32 4294901760, %v7626_v7 }
 0x740   : > { %v6475_v10 = vadd.f32 %v6474_v36, %v6401_v8  ;;  %v7126_v36 = vld [vmem:[%s11190_s7] sm:$0xff]  ;;  %v7627_v8 = vld [vmem:[%s11192_s9 + $0x8] sm:$0xff] }
 0x741   : > { %v6548_v11 = vpop.f32.mrb[20].mxu0  ;;  %v7141_v32 = vand.u32 4294901760, %v7126_v36 }
 0x742   : > { %v6549_v12 = vadd.f32 %v6548_v11, %v6475_v10  ;;  %v9224_v13 = vpop.f32.mrb[21].mxu0  ;;  %v7653_v10 = vand.u32 4294901760, %v7627_v8  ;;  %v7628_v11 = vld [vmem:[%s11192_s9 + $0x10] sm:$0xff] }
 0x743   : > { %v10800_v44 = vsub.f32 %v7126_v36, %v7141_v32  ;;  %v10846_v13 = vsub.f32 %v7626_v7, %v7650_v38 }
 0x744   : > { %v6621_v14 = vadd.f32 %v6620_v41, %v6549_v12  ;;  %v7147_v41 = vand.u32 4294901760, %v7128_v37  ;;  %v7629_v12 = vld [vmem:[%s11192_s9 + $0x18] sm:$0xff] }
 0x745   : > { %v6712_v45 = vpop.f32.mrb[22].mxu0  ;;  %v7222_v50 = vand.u32 4294901760, %v10800_v44 }
 0x746   : > { %v6624_v57 = vadd.f32 %v6621_v14, %v6160_v58  ;;  %v6789_v25 = vadd.f32 %v6788_v48, %v6712_v45  ;;  %v9234_v15 = vpop.f32.mrb[23].mxu0  ;;  %v10804_v47 = vsub.f32 %v7128_v37, %v7147_v41  ;;  %v10806_v48 = vsub.f32 %v7129_v40, %v7150_v42 }
 0x747   : > { %v10809_v49 = vpack.c.bf16 %v7150_v42, %v7147_v41  ;;  %v7223_v53 = vsub.f32 %v10800_v44, %v7222_v50  ;;  %v10848_v14 = vsub.f32 %v7627_v8, %v7653_v10  ;;  %v7656_v45 = vand.u32 4294901760, %v7628_v11  ;;  %v7639_v8 = vld [vmem:[%s11192_s9 + $0x68] sm:$0xff] }
 0x748   : > { %v7236_v59 = vand.u32 4294901760, %v10804_v47  ;;  %v7243_v55 = vand.u32 4294901760, %v10806_v48  ;;  %v9624_v4 = vpack.c.bf16 %v10806_v48, %v10804_v47 }
 0x749   : > { %v6862_v16 = vpop.f32.mrb[24].mxu0 }
 0x74a   : > { %v6863_v17 = vadd.f32 %v6862_v16, %v6789_v25  ;;  %v9244_v18 = vpop.f32.mrb[25].mxu0  ;;  %v7237_v62 = vsub.f32 %v10804_v47, %v7236_v59  ;;  %v10832_v6 = vpack.c.bf16 %v7243_v55, %v7236_v59  ;;  %v10850_v25 = vsub.f32 %v7628_v11, %v7656_v45  ;;  %v7637_v47 = vld [vmem:[%s11192_s9 + $0x58] sm:$0xff] }
 0x74b   : > { %v10854_v16 = vpack.c.bf16 %v7653_v10, %v7650_v38  ;;  %v7631_v18 = vld [vmem:[%s11192_s9 + $0x28] sm:$0xff]  ;;  %v7689_v10 = vand.u32 4294901760, %v7639_v8 }
 0x74c   : > { %v6937_v20 = vadd.f32 %v6936_v56, %v6863_v17  ;;  %v7224_v56 = vand.u32 4294901760, %v7223_v53  ;;  %v7238_v1 = vand.u32 4294901760, %v7237_v62  ;;  %v7630_v17 = vld [vmem:[%s11192_s9 + $0x20] sm:$0xff] }
 0x74d   : > { %v7010_v21 = vpop.f32.mrb[26].mxu0  ;;  %9646 = vmatpush3.bf16.msra.mxu1 %v10854_v16  ;;  %v8422_v53 = vld [vmem:[%s11188_s5] ss:$0 sm:$0xff] }
 0x74e   : > { %v7011_v22 = vadd.f32 %v7010_v21, %v6937_v20  ;;  %v9254_v61 = vpop.f32.mrb[27].mxu0  ;;  %v7662_v20 = vand.u32 4294901760, %v7630_v17  ;;  %v7665_v21 = vand.u32 4294901760, %v7631_v18  ;;  %9647 = vmatprep.subr.bf16.mxu1 %v10058_v3 }
 0x750   : > { %v7083_v23 = vadd.f32 %v7082_v63, %v7011_v22  ;;  %v7244_v63 = vsub.f32 %v10806_v48, %v7243_v55  ;;  %v10864_v22 = vsub.f32 %v7630_v17, %v7662_v20  ;;  %v10866_v61 = vsub.f32 %v7631_v18, %v7665_v21 }
 0x752   : > { %v7086_v26 = vadd.f32 %v7083_v23, %v6624_v57  ;;  %v7245_v2 = vand.u32 4294901760, %v7244_v63  ;;  %v7659_v57 = vand.u32 4294901760, %v7629_v12 }
 0x754   : > { %v7094_v27 = vadd.f32 %v8421_v24, %v7086_v26  ;;  %v10824_v0 = vpack.c.bf16 %v7245_v2, %v7238_v1  ;;  %v10852_v15 = vsub.f32 %v7629_v12, %v7659_v57  ;;  %v10868_v23 = vpack.c.bf16 %v7659_v57, %v7656_v45  ;;  %v7632_v24 = vld [vmem:[%s11192_s9 + $0x30] sm:$0xff]  ;;  %v7633_v26 = vld [vmem:[%s11192_s9 + $0x38] sm:$0xff] }
 0x755   : > { %v7833_v12 = vsub.f32 %v7639_v8, %v7689_v10  ;;  %v7640_v45 = vld [vmem:[%s11192_s9 + $0x70] sm:$0xff]  ;;  %v7641_v57 = vld [vmem:[%s11192_s9 + $0x78] sm:$0xff] }
 0x756   : > { %v7095_v28 = vadd.f32 %v7094_v27, %v10264_v19  ;;  %v7127_v19 = vld [vmem:[%s11190_s7 + $0x8] sm:$0xff]  ;;  %9649 = vmatpush3.bf16.msra.mxu1 %v10868_v23  ;;  %v7668_v27 = vand.u32 4294901760, %v7632_v24  ;;  %v7692_v18 = vand.u32 4294901760, %v7640_v45  ;;  %v7764_v8 = vand.u32 4294901760, %v10852_v15 }
 0x757   : > { %v7144_v39 = vand.u32 4294901760, %v7127_v19  ;;  %9650 = vmatprep.subr.bf16.mxu1 %v10058_v3 }
 0x758   : > { %v7096_v29 = vsel %vm457_vm3, %v7095_v28, 0.0 }
 0x759   : > { %7097 = vadd.xlane.f32.xlu0 %v7096_v29  ;;  %v10798_v43 = vpack.c.bf16 %v7144_v39, %v7141_v32  ;;  %v10802_v46 = vsub.f32 %v7127_v19, %v7144_v39  ;;  %v10878_v29 = vsub.f32 %v7632_v24, %v7668_v27  ;;  %v7840_v24 = vsub.f32 %v7640_v45, %v7692_v18 }
 0x75a   : > { %v7765_v45 = vsub.f32 %v10852_v15, %v7764_v8 }
 0x75b   : > { %9610 = vmatpush3.bf16.msra.mxu0 %v10798_v43  ;;  %v7229_v52 = vand.u32 4294901760, %v10802_v46  ;;  %v9621_v58 = vpack.c.bf16 %v10802_v46, %v10800_v44  ;;  %v9696_v44 = vpack.c.bf16 %v10852_v15, %v10850_v25 }
 0x75c   : > { %9611 = vmatprep.subr.bf16.mxu0 %v10058_v3 }
 0x75d   : > { %v7230_v54 = vsub.f32 %v10802_v46, %v7229_v52  ;;  %v10830_v5 = vpack.c.bf16 %v7229_v52, %v7222_v50  ;;  %v7636_v46 = vld [vmem:[%s11192_s9 + $0x50] sm:$0xff] }
 0x75f   : > { %9613 = vmatpush3.bf16.msra.mxu0 %v10809_v49  ;;  %v7231_v51 = vand.u32 4294901760, %v7230_v54 }
 0x760   : > { %9614 = vmatprep.subr.bf16.mxu0 %v10058_v3 }
 0x761   : > { %v10820_v60 = vpack.c.bf16 %v7231_v51, %v7224_v56  ;;  %v8423_v56 = vld [vmem:[%s11189_s6] ss:$0 sm:$0xff] }
 0x7e6   : > { %v7098_v30 = vpop.xlane.xlu0 %7097 }
 0x7e7   : > { %v7100_v31 = vmul.f32 0.03125, %v7098_v30 }
 0x7e9   : > { %v10781_v33 = vsub.f32 %v7095_v28, %v7100_v31  ;;  %v7671_v28 = vand.u32 4294901760, %v7633_v26  ;;  %v10882_v31 = vpack.c.bf16 %v7665_v21, %v7662_v20  ;;  %v7695_v20 = vand.u32 4294901760, %v7641_v57 }
 0x7eb   : > { %v7102_v34 = vmul.f32 %v10781_v33, %v10781_v33  ;;  %v10880_v30 = vsub.f32 %v7633_v26, %v7671_v28  ;;  %9652 = vmatpush3.bf16.msra.mxu1 %v10882_v31  ;;  %v10896_v39 = vpack.c.bf16 %v7671_v28, %v7668_v27  ;;  %v7847_v26 = vsub.f32 %v7641_v57, %v7695_v20 }
 0x7ec   : > { %9653 = vmatprep.subr.bf16.mxu1 %v10058_v3  ;;  %v7771_v57 = vand.u32 4294901760, %v10864_v22 }
 0x7ed   : > { %v7103_v35 = vsel %vm457_vm3, %v7102_v34, 0.0  ;;  %v7634_v34 = vld [vmem:[%s11192_s9 + $0x40] sm:$0xff]  ;;  %v9702_v48 = vpack.c.bf16 %v10880_v30, %v10878_v29  ;;  %v9714_v27 = vpack.c.bf16 %v7847_v26, %v7840_v24 }
 0x7ee   : > { %7104 = vadd.xlane.f32.xlu1 %v7103_v35  ;;  %v7635_v35 = vld [vmem:[%s11192_s9 + $0x48] sm:$0xff]  ;;  %v7674_v36 = vand.u32 4294901760, %v7634_v34 }
 0x7ef   : > { %v7677_v19 = vand.u32 4294901760, %v7635_v35  ;;  %9655 = vmatpush3.bf16.msra.mxu1 %v10896_v39 }
 0x7f0   : > { %v10892_v37 = vsub.f32 %v7634_v34, %v7674_v36  ;;  %9656 = vmatprep.subr.bf16.mxu1 %v10058_v3  ;;  %v11001_v34 = vpack.c.bf16 %v7695_v20, %v7692_v18  ;;  %v7766_v20 = vand.u32 4294901760, %v7765_v45 }
 0x7f1   : > { %v10894_v32 = vsub.f32 %v7635_v35, %v7677_v19  ;;  %v10900_v40 = vpack.c.bf16 %v7677_v19, %v7674_v36  ;;  %v7834_v36 = vand.u32 4294901760, %v7833_v12 }
 0x7f3   : > { %9658 = vmatpush3.bf16.msra.mxu1 %v10900_v40 }
 0x7f4   : > { %9659 = vmatprep.subr.bf16.mxu1 %v10058_v3 }
 0x87b   : > { %v7105_v41 = vpop.xlane.xlu1 %7104 }
 0x87c   : > { %v7106_v42 = vmul.f32 0.03125, %v7105_v41  ;;  %v7841_v41 = vand.u32 4294901760, %v7840_v24 }
 0x87e   : > { %v7107_v50 = vadd.f32 1e-05, %v7106_v42  ;;  %v7848_v42 = vand.u32 4294901760, %v7847_v26 }
 0x880   : > { %9966 = vrsqrt.f32 %v7107_v50 }
 0x88a   : > { %v9967_v52 = vpop.eup %9966 }
 0x88b   : > { %v7109_v54 = vmul.f32 %v9967_v52, %v10781_v33  ;;  %v9693_v33 = vpack.c.bf16 %v10848_v14, %v10846_v13  ;;  %v7835_v52 = vsub.f32 %v7833_v12, %v7834_v36 }
 0x88d   : > { %v7117_v51 = vmul.f32 %v8422_v53, %v7109_v54  ;;  %v11007_v53 = vpack.c.bf16 %v7848_v42, %v7841_v41 }
 0x88f   : > { %v10911_v59 = vadd.f32 %v8423_v56, %v7117_v51  ;;  %v7836_v56 = vand.u32 4294901760, %v7835_v52  ;;  %v7842_v51 = vsub.f32 %v7840_v24, %v7841_v41  ;;  %v7772_v24 = vsub.f32 %v10864_v22, %v7771_v57 }
 0x891   : > { %v7138_v55 = vsel %vm457_vm3, %v10911_v59, 0 }
 0x892   : > { %v7209_v62 = vand.u32 4294901760, %v7138_v55 }
 0x894   : > { %v7210_v63 = vsub.f32 %v7138_v55, %v7209_v62  ;;  %v7849_v55 = vsub.f32 %v7847_v26, %v7848_v42 }
 0x896   : > { %v7211_v1 = vand.u32 4294901760, %v7210_v63 }
 0x898   : > { %v7212_v2 = vsub.f32 %v7210_v63, %v7211_v1 }
 0x89a   : > { %v7213_v7 = vand.u32 4294901760, %v7212_v2 }
 0x89c   : > { %9269 = vmatmul.mubr.f32.vlgmr.msra.gmra.mrb[28].mxu0 %v7213_v7  ;;  %v8424_v7 = vld [vmem:[%s11191_s8] ss:$0 sm:$0xff] }
 0x89d   : > { %9616 = vmatpush3.bf16.msra.mxu0 %v10820_v60  ;;  %9279 = vmatprep.mubr.msk.f32.mxu0 %vm10059_vm0, %v10060_v9  ;;  %v7683_v60 = vand.u32 4294901760, %v7637_v47 }
 0x89e   : > { %9617 = vmatprep.subr.bf16.mxu0 %v10058_v3 }
 0x8a1   : > { %9619 = vmatpush3.bf16.msra.mxu0 %v10824_v0  ;;  %v9705_v0 = vpack.c.bf16 %v10894_v32, %v10892_v37 }
 0x8a2   : > { %9620 = vmatprep.subr.bf16.mxu0 %v10058_v3 }
 0x8a4   : > { %9280 = vmatmul.mubr.f32.vlgmr.msra.gmra.mrb[28].mxu0 %v7209_v62 }
 0x8a5   : > { %9622 = vmatpush3.bf16.msra.mxu0 %v9621_v58  ;;  %9290 = vmatprep.mubr.msk.f32.mxu0 %vm10059_vm0, %v10060_v9 }
 0x8a6   : > { %9623 = vmatprep.subr.bf16.mxu0 %v10058_v3 }
 0x8a9   : > { %9625 = vmatpush3.bf16.msra.mxu0 %v9624_v4  ;;  %v10972_v4 = vsub.f32 %v7637_v47, %v7683_v60  ;;  %v7750_v47 = vand.u32 4294901760, %v10848_v14 }
 0x8aa   : > { %9626 = vmatprep.subr.bf16.mxu0 %v10058_v3 }
 0x8ac   : > { %9291 = vmatmul.mubr.f32.vlgmr.msra.gmra.mrb[28].mxu0 %v7210_v63  ;;  %v7843_v63 = vand.u32 4294901760, %v7842_v51  ;;  %v7806_v51 = vand.u32 4294901760, %v10894_v32 }
 0x8ad   : > { %9628 = vmatpush3.bf16.msra.mxu0 %v10798_v43  ;;  %9301 = vmatprep.mubr.msk.f32.mxu0 %vm10059_vm0, %v10060_v9 }
 0x8ae   : > { %9629 = vmatprep.subr.bf16.mxu0 %v10058_v3 }
 0x8b1   : > { %9631 = vmatpush3.bf16.msra.mxu0 %v10809_v49 }
 0x8b2   : > { %9632 = vmatprep.subr.bf16.mxu0 %v10058_v3 }
 0x8b4   : > { %9302 = vmatmul.mubr.f32.vlgmr.msra.gmra.mrb[28].mxu0 %v7211_v1  ;;  %v7850_v1 = vand.u32 4294901760, %v7849_v55 }
 0x8b5   : > { %9634 = vmatpush3.bf16.msra.mxu0 %v10830_v5  ;;  %9312 = vmatprep.mubr.msk.f32.mxu0 %vm10059_vm0, %v10060_v9 }
 0x8b6   : > { %9635 = vmatprep.subr.bf16.mxu0 %v10058_v3  ;;  %v11011_v2 = vpack.c.bf16 %v7850_v1, %v7843_v63  ;;  %v7807_v1 = vsub.f32 %v10894_v32, %v7806_v51 }
 0x8b9   : > { %9637 = vmatpush3.bf16.msra.mxu0 %v10832_v6  ;;  %v7638_v6 = vld [vmem:[%s11192_s9 + $0x60] sm:$0xff] }
 0x8ba   : > { %9638 = vmatprep.subr.bf16.mxu0 %v10058_v3  ;;  %v7686_v38 = vand.u32 4294901760, %v7638_v6 }
 0x8bc   : > { %9313 = vmatmul.mubr.f32.vlgmr.msra.gmra.mrb[28].mxu0 %v7209_v62  ;;  %v7826_v11 = vsub.f32 %v7638_v6, %v7686_v38  ;;  %v10996_v28 = vpack.c.bf16 %v7689_v10, %v7686_v38  ;;  %v7757_v6 = vand.u32 4294901760, %v10850_v25 }
 0x8bd   : > { %9640 = vmatpush3.bf16.msra.mxu0 %v10798_v43  ;;  %9323 = vmatprep.mubr.msk.f32.mxu0 %vm10059_vm0, %v10060_v9  ;;  %v9699_v43 = vpack.c.bf16 %v10866_v61, %v10864_v22 }
 0x8be   : > { %9641 = vmatprep.subr.bf16.mxu0 %v10058_v3  ;;  %v9711_v17 = vpack.c.bf16 %v7833_v12, %v7826_v11  ;;  %v7827_v35 = vand.u32 4294901760, %v7826_v11  ;;  %v7758_v12 = vsub.f32 %v10850_v25, %v7757_v6 }
 0x8c0   : > { %v11005_v19 = vpack.c.bf16 %v7834_v36, %v7827_v35  ;;  %v7828_v50 = vsub.f32 %v7826_v11, %v7827_v35  ;;  %v7759_v15 = vand.u32 4294901760, %v7758_v12  ;;  %v7785_v35 = vand.u32 4294901760, %v10878_v29 }
 0x8c1   : > { %9643 = vmatpush3.bf16.msra.mxu0 %v10809_v49  ;;  %v7680_v49 = vand.u32 4294901760, %v7636_v46  ;;  %v7792_v36 = vand.u32 4294901760, %v10880_v30 }
 0x8c2   : > { %9692 = vmatprep.subr.bf16.mxu0 %v10058_v3  ;;  %v7829_v54 = vand.u32 4294901760, %v7828_v50  ;;  %v7786_v42 = vsub.f32 %v10878_v29, %v7785_v35  ;;  %v9672_v52 = vpack.c.bf16 %v7766_v20, %v7759_v15  ;;  %v8426_v15 = vld [vmem:[%s11194_s11] ss:$0 sm:$0xff] }
 0x8c3   : > { %v10970_v58 = vsub.f32 %v7636_v46, %v7680_v49  ;;  %v10991_v21 = vpack.c.bf16 %v7683_v60, %v7680_v49  ;;  %v7743_v46 = vand.u32 4294901760, %v10846_v13  ;;  %v7751_v60 = vsub.f32 %v10848_v14, %v7750_v47 }
 0x8c4   : > { %9324 = vmatmul.mubr.f32.vlgmr.msra.gmra.mrb[28].mxu0 %v7209_v62  ;;  %v11009_v62 = vpack.c.bf16 %v7836_v56, %v7829_v54  ;;  %v9744_v14 = vpack.c.bf16 %v7764_v8, %v7757_v6  ;;  %v7793_v50 = vsub.f32 %v10880_v30, %v7792_v36  ;;  %v7773_v54 = vand.u32 4294901760, %v7772_v24  ;;  %v8427_v24 = vld [vmem:[%s11195_s12] ss:$0 sm:$0xff] }
 0x8c5   : > { %9694 = vmatpush3.bf16.msra.mxu0 %v9693_v33  ;;  %9428 = vmatprep.mubr.msk.f32.mxu0 %vm10059_vm0, %v10060_v9  ;;  %v9708_v5 = vpack.c.bf16 %v10972_v4, %v10970_v58  ;;  %v7744_v49 = vsub.f32 %v10846_v13, %v7743_v46  ;;  %v7752_v11 = vand.u32 4294901760, %v7751_v60  ;;  %v7799_v56 = vand.u32 4294901760, %v10892_v37 }
 0x8c6   : > { %9695 = vmatprep.subr.bf16.mxu0 %v10058_v3  ;;  %9661 = vmatpush3.bf16.msra.mxu1 %v10991_v21  ;;  %v7787_v29 = vand.u32 4294901760, %v7786_v42  ;;  %v7794_v55 = vand.u32 4294901760, %v7793_v50 }
 0x8c7   : > { %9662 = vmatprep.subr.bf16.mxu1 %v10058_v3  ;;  %v7745_v10 = vand.u32 4294901760, %v7744_v49  ;;  %v7800_v63 = vsub.f32 %v10892_v37, %v7799_v56 }
 0x8c9   : > { %9697 = vmatpush3.bf16.msra.mxu0 %v9696_v44  ;;  %v9669_v25 = vpack.c.bf16 %v7752_v11, %v7745_v10 }
 0x8ca   : > { %9698 = vmatprep.subr.bf16.mxu0 %v10058_v3  ;;  %9664 = vmatpush3.bf16.msra.mxu1 %v10996_v28 }
 0x8cb   : > { %9665 = vmatprep.subr.bf16.mxu1 %v10058_v3 }
 0x8cd   : > { %9700 = vmatpush3.bf16.msra.mxu0 %v9699_v43 }
 0x8ce   : > { %9701 = vmatprep.subr.bf16.mxu0 %v10058_v3  ;;  %9667 = vmatpush3.bf16.msra.mxu1 %v11001_v34 }
 0x8cf   : > { %9668 = vmatprep.subr.bf16.mxu1 %v10058_v3 }
 0x8d1   : > { %9703 = vmatpush3.bf16.msra.mxu0 %v9702_v48 }
 0x8d2   : > { %9704 = vmatprep.subr.bf16.mxu0 %v10058_v3 }
 0x8d5   : > { %9706 = vmatpush3.bf16.msra.mxu0 %v9705_v0 }
 0x8d6   : > { %9707 = vmatprep.subr.bf16.mxu0 %v10058_v3 }
 0x8d9   : > { %9709 = vmatpush3.bf16.msra.mxu0 %v9708_v5  ;;  %v9741_v5 = vpack.c.bf16 %v7750_v47, %v7743_v46  ;;  %v7801_v46 = vand.u32 4294901760, %v7800_v63  ;;  %v7808_v47 = vand.u32 4294901760, %v7807_v1 }
 0x8da   : > { %9710 = vmatprep.subr.bf16.mxu0 %v10058_v3 }
 0x8db   : > { %v9681_v49 = vpack.c.bf16 %v7808_v47, %v7801_v46 }
 0x8dd   : > { %9712 = vmatpush3.bf16.msra.mxu0 %v9711_v17  ;;  %v7778_v17 = vand.u32 4294901760, %v10866_v61 }
 0x8de   : > { %9713 = vmatprep.subr.bf16.mxu0 %v10058_v3 }
 0x8df   : > { %v7779_v26 = vsub.f32 %v10866_v61, %v7778_v17  ;;  %v9747_v41 = vpack.c.bf16 %v7778_v17, %v7771_v57  ;;  %v9750_v61 = vpack.c.bf16 %v7792_v36, %v7785_v35 }
 0x8e1   : > { %9715 = vmatpush3.bf16.msra.mxu0 %v9714_v27  ;;  %v7780_v22 = vand.u32 4294901760, %v7779_v26 }
 0x8e2   : > { %9740 = vmatprep.subr.bf16.mxu0 %v10058_v3 }
 0x8e3   : > { %v9675_v30 = vpack.c.bf16 %v7780_v22, %v7773_v54 }
 0x997   : > { %v7621_v33 = vpop.f32.mrb[28].mxu0 }
 0x998   : > { %v9847_v44 = vadd.f32 %v8424_v7, %v7621_v33  ;;  %v9325_v43 = vpop.f32.mrb[29].mxu0  ;;  %v9753_v7 = vpack.c.bf16 %v7806_v51, %v7799_v56  ;;  %v7813_v33 = vand.u32 4294901760, %v10970_v58 }
 0x999   : > { %v9678_v43 = vpack.c.bf16 %v7794_v55, %v7787_v29 }
 0x99a   : > { %v7625_v48 = vmax.f32 %v9847_v44, 0.0  ;;  %v7820_v44 = vand.u32 4294901760, %v10972_v4 }
 0x99c   : > { %v11020_v0 = vand.u32 4294901760, %v7625_v48  ;;  %v7821_v37 = vsub.f32 %v10972_v4, %v7820_v44  ;;  %v9756_v32 = vpack.c.bf16 %v7820_v44, %v7813_v33 }
 0x99e   : > { %v11025_v38 = vsub.f32 %v7625_v48, %v11020_v0  ;;  %v7814_v48 = vsub.f32 %v10970_v58, %v7813_v33  ;;  %v8425_v58 = vld [vmem:[%s11193_s10] ss:$0 sm:$0xff] }
 0x9a0   : > { %v7732_v13 = vand.u32 4294901760, %v11025_v38  ;;  %9429 = vmatmul.mubr.f32.vlgmr.msra.gmra.mrb[30].mxu0 %v11025_v38  ;;  %v7815_v60 = vand.u32 4294901760, %v7814_v48 }
 0x9a1   : > { %9742 = vmatpush3.bf16.msra.mxu0 %v9741_v5  ;;  %9498 = vmatprep.mubr.msk.f32.mxu0 %vm10059_vm0, %v10060_v9  ;;  %v7822_v5 = vand.u32 4294901760, %v7821_v37 }
 0x9a2   : > { %v7733_v18 = vsub.f32 %v11025_v38, %v7732_v13  ;;  %9743 = vmatprep.subr.bf16.mxu0 %v10058_v3 }
 0x9a3   : > { %v9684_v6 = vpack.c.bf16 %v7822_v5, %v7815_v60 }
 0x9a4   : > { %v7734_v27 = vand.u32 4294901760, %v7733_v18 }
 0x9a5   : > { %9745 = vmatpush3.bf16.msra.mxu0 %v9744_v14 }
 0x9a6   : > { %9359 = vmatmul.mubr.f32.vlgmr.msra.gmra.mrb[20].mxu1 %v7734_v27  ;;  %9746 = vmatprep.subr.bf16.mxu0 %v10058_v3 }
 0x9a7   : > { %9670 = vmatpush3.bf16.msra.mxu1 %v9669_v25  ;;  %9393 = vmatprep.mubr.msk.f32.mxu1 %vm10059_vm0, %v10060_v9 }
 0x9a8   : > { %9671 = vmatprep.subr.bf16.mxu1 %v10058_v3 }
 0x9a9   : > { %9748 = vmatpush3.bf16.msra.mxu0 %v9747_v41 }
 0x9aa   : > { %9749 = vmatprep.subr.bf16.mxu0 %v10058_v3 }
 0x9ab   : > { %9673 = vmatpush3.bf16.msra.mxu1 %v9672_v52 }
 0x9ac   : > { %9674 = vmatprep.subr.bf16.mxu1 %v10058_v3 }
 0x9ad   : > { %9751 = vmatpush3.bf16.msra.mxu0 %v9750_v61 }
 0x9ae   : > { %9752 = vmatprep.subr.bf16.mxu0 %v10058_v3 }
 0x9af   : > { %9676 = vmatpush3.bf16.msra.mxu1 %v9675_v30 }
 0x9b0   : > { %9677 = vmatprep.subr.bf16.mxu1 %v10058_v3 }
 0x9b1   : > { %9754 = vmatpush3.bf16.msra.mxu0 %v9753_v7 }
 0x9b2   : > { %9755 = vmatprep.subr.bf16.mxu0 %v10058_v3 }
 0x9b3   : > { %9679 = vmatpush3.bf16.msra.mxu1 %v9678_v43 }
 0x9b4   : > { %9680 = vmatprep.subr.bf16.mxu1 %v10058_v3 }
 0x9b5   : > { %9757 = vmatpush3.bf16.msra.mxu0 %v9756_v32 }
 0x9b6   : > { %9758 = vmatprep.subr.bf16.mxu0 %v10058_v3 }
 0x9b7   : > { %9682 = vmatpush3.bf16.msra.mxu1 %v9681_v49 }
 0x9b8   : > { %9683 = vmatprep.subr.bf16.mxu1 %v10058_v3 }
 0x9b9   : > { %9760 = vmatpush3.bf16.msra.mxu0 %v11005_v19 }
 0x9ba   : > { %9761 = vmatprep.subr.bf16.mxu0 %v10058_v3 }
 0x9bb   : > { %9685 = vmatpush3.bf16.msra.mxu1 %v9684_v6 }
 0x9bc   : > { %9686 = vmatprep.subr.bf16.mxu1 %v10058_v3 }
 0x9bd   : > { %9763 = vmatpush3.bf16.msra.mxu0 %v11007_v53 }
 0x9bf   : > { %9688 = vmatpush3.bf16.msra.mxu1 %v11009_v62 }
 0x9c0   : > { %9499 = vmatmul.mubr.f32.vlgmr.msra.gmra.mrb[32].mxu0 %v11020_v0  ;;  %9689 = vmatprep.subr.bf16.mxu1 %v10058_v3 }
 0x9c3   : > { %9691 = vmatpush3.bf16.msra.mxu1 %v11011_v2 }
 0x9c4   : > { %9716 = vmatprep.subr.bf16.mxu1 %v10058_v3 }
 0x9c6   : > { %9394 = vmatmul.mubr.f32.vlgmr.msra.gmra.mrb[22].mxu1 %v11020_v0 }
 0x9c7   : > { %9718 = vmatpush3.bf16.msra.mxu1 %v10854_v16  ;;  %9463 = vmatprep.mubr.msk.f32.mxu1 %vm10059_vm0, %v10060_v9 }
 0x9c8   : > { %9719 = vmatprep.subr.bf16.mxu1 %v10058_v3 }
 0x9cb   : > { %9721 = vmatpush3.bf16.msra.mxu1 %v10868_v23 }
 0x9cc   : > { %9722 = vmatprep.subr.bf16.mxu1 %v10058_v3 }
 0x9cf   : > { %9724 = vmatpush3.bf16.msra.mxu1 %v10882_v31 }
 0x9d0   : > { %9725 = vmatprep.subr.bf16.mxu1 %v10058_v3 }
 0x9d3   : > { %9727 = vmatpush3.bf16.msra.mxu1 %v10896_v39 }
 0x9d4   : > { %9728 = vmatprep.subr.bf16.mxu1 %v10058_v3 }
 0x9d7   : > { %9730 = vmatpush3.bf16.msra.mxu1 %v10900_v40 }
 0x9d8   : > { %9731 = vmatprep.subr.bf16.mxu1 %v10058_v3 }
 0x9db   : > { %9733 = vmatpush3.bf16.msra.mxu1 %v10991_v21 }
 0x9dc   : > { %9734 = vmatprep.subr.bf16.mxu1 %v10058_v3 }
 0x9df   : > { %9736 = vmatpush3.bf16.msra.mxu1 %v10996_v28 }
 0x9e0   : > { %9737 = vmatprep.subr.bf16.mxu1 %v10058_v3 }
 0x9e3   : > { %9739 = vmatpush3.bf16.msra.mxu1 %v11001_v34 }
 0x9e4   : > { %9764 = vmatprep.subr.bf16.mxu1 %v10058_v3 }
 0x9e6   : > { %9464 = vmatmul.mubr.f32.vlgmr.msra.gmra.mrb[24].mxu1 %v7732_v13 }
 0x9e7   : > { %9766 = vmatpush3.bf16.msra.mxu1 %v10854_v16  ;;  %9533 = vmatprep.mubr.msk.f32.mxu1 %vm10059_vm0, %v10060_v9 }
 0x9e8   : > { %9767 = vmatprep.subr.bf16.mxu1 %v10058_v3 }
 0x9eb   : > { %9769 = vmatpush3.bf16.msra.mxu1 %v10868_v23 }
 0x9ec   : > { %9770 = vmatprep.subr.bf16.mxu1 %v10058_v3 }
 0x9ef   : > { %9772 = vmatpush3.bf16.msra.mxu1 %v10882_v31 }
 0x9f0   : > { %9773 = vmatprep.subr.bf16.mxu1 %v10058_v3 }
 0x9f3   : > { %9775 = vmatpush3.bf16.msra.mxu1 %v10896_v39 }
 0x9f4   : > { %9776 = vmatprep.subr.bf16.mxu1 %v10058_v3 }
 0x9f7   : > { %9778 = vmatpush3.bf16.msra.mxu1 %v10900_v40 }
 0x9f8   : > { %9779 = vmatprep.subr.bf16.mxu1 %v10058_v3 }
 0x9fb   : > { %9781 = vmatpush3.bf16.msra.mxu1 %v10991_v21 }
 0x9fc   : > { %9782 = vmatprep.subr.bf16.mxu1 %v10058_v3 }
 0x9ff   : > { %9784 = vmatpush3.bf16.msra.mxu1 %v10996_v28 }
 0xa00   : > { %9785 = vmatprep.subr.bf16.mxu1 %v10058_v3 }
 0xa03   : > { %9787 = vmatpush3.bf16.msra.mxu1 %v11001_v34 }
 0xa06   : > { %9534 = vmatmul.mubr.f32.vlgmr.msra.gmra.mrb[26].mxu1 %v11020_v0 }
 0xa73   : > { %v7991_v9 = vpop.f32.mrb[30].mxu0 }
 0xa74   : > { %v9430_v16 = vpop.f32.mrb[31].mxu0 }
 0xa79   : > { %v7736_v23 = vpop.f32.mrb[20].mxu1 }
 0xa7a   : > { %v9360_v31 = vpop.f32.mrb[21].mxu1  ;;  %v7737_v4 = vadd.f32 %v8425_v58, %v7736_v23 }
 0xa93   : > { %v8199_v39 = vpop.f32.mrb[32].mxu0 }
 0xa94   : > { %v9500_v40 = vpop.f32.mrb[33].mxu0 }
 0xa99   : > { %v7887_v21 = vpop.f32.mrb[22].mxu1 }
 0xa9a   : > { %v7888_v19 = vadd.f32 %v7887_v21, %v7737_v4  ;;  %v9395_v28 = vpop.f32.mrb[23].mxu1 }
 0xa9c   : > { %v7992_v53 = vadd.f32 %v7991_v9, %v7888_v19 }
 0xab9   : > { %v8080_v3 = vpop.f32.mrb[24].mxu1 }
 0xaba   : > { %v8081_v62 = vadd.f32 %v8080_v3, %v7992_v53  ;;  %v9465_v34 = vpop.f32.mrb[25].mxu1 }
 0xabc   : > { %v8200_v2 = vadd.f32 %v8199_v39, %v8081_v62 }
 0xad9   : > { %v8286_v0 = vpop.f32.mrb[26].mxu1 }
 0xada   : > { %v8287_v8 = vadd.f32 %v8286_v0, %v8200_v2  ;;  %v9535_v38 = vpop.f32.mrb[27].mxu1 }
 0xadc   : > { %v8290_v10 = vadd.f32 %v8287_v8, %v10911_v59 }
 0xade   : > { %v8291_v11 = vsel %vm457_vm3, %v8290_v10, 0.0 }
 0xadf   : > { %8292 = vadd.xlane.f32.xlu0 %v8291_v11 }
 0xb6c   : > { %v8293_v12 = vpop.xlane.xlu0 %8292 }
 0xb6d   : > { %v8294_v45 = vmul.f32 0.03125, %v8293_v12 }
 0xb6f   : > { %v8295_v13 = vsub.f32 %v8290_v10, %v8294_v45 }
 0xb71   : > { %v8296_v14 = vmul.f32 %v8295_v13, %v8295_v13 }
 0xb73   : > { %v8297_v57 = vsel %vm457_vm3, %v8296_v14, 0.0 }
 0xb74   : > { %8298 = vadd.xlane.f32.xlu0 %v8297_v57 }
 0xc01   : > { %v8299_v17 = vpop.xlane.xlu0 %8298 }
 0xc02   : > { %v8300_v18 = vmul.f32 0.03125, %v8299_v17 }
 0xc04   : > { %v8301_v25 = vadd.f32 1e-05, %v8300_v18 }
 0xc06   : > { %9968 = vrsqrt.f32 %v8301_v25 }
 0xc10   : > { %v9969_v59 = vpop.eup %9968 }
 0xc11   : > { %v8303_v20 = vmul.f32 %v9969_v59, %v8295_v13 }
 0xc13   : > { %v8311_v26 = vmul.f32 %v8426_v15, %v8303_v20 }
 0xc15   : > { %v8319_v27 = vadd.f32 %v8427_v24, %v8311_v26 }
 0xc17   : > { %8320 = vst.msk [vmem:[%s11209_s19] sm:$0xff] %vm457_vm3, %v8319_v27 }
 0xc18   : > { %9983 = shalt.err (!%p9980_p6)
}
 0xc19   : > { %s9984_s17 = scalar_lea.hbm %s11131_s14, 128  ;;  %s9988_s19 = scalar_lea.hbm %s11196_s13, 256 }
 0xc1a   : > { %p9985_p7 = scmp.ne.s32.totalorder %s11131_s14, %s9984_s17  ;;  %p9989_p11 = scmp.lt.u32.totalorder %s11131_s14, %s11196_s13 }
 0xc1b   : > { %p9990_p12 = scmp.lt.u32.totalorder %s9988_s19, %s9984_s17  ;;  %p9992_p0 = scmp.lt.u32.totalorder %s9984_s17, %s11131_s14 }
 0xc1c   : > { %p9986_p9 = pnand %p9985_p7, %p10186_p4 }
 0xc1d   : > { %p9991_p13 = por %p9990_p12, %p9989_p11 }
 0xc1e   : > { %p9987_p10 = pneg %p9986_p9 }
 0xc1f   : > { %p9993_p1 = por %p9992_p0, %p9991_p13 }
 0xc21   : > { %p9994_p2 = pnand %p9993_p1, %p9987_p10 }
 0xc23   : > { %9997 = shalt.err (!%p9994_p2)
}
 0xc24   : > { %9858 = dma.vmem_to_hbm [thread:$0]  (%p10186_p4), %s11133_s15, 128, %s11131_s14, %s8322_s22  }
 0xc25 PF: > { %p9864_p3 = scmp.ge.s32.totalorder %s10052_s30, 2  ;;  %s8348_s28 = sand.u32 1, %s10032_s25  }
 0xc26   : > { %s8349_s29 = scalar_lea.sflag [#allocation6], %s8348_s28 }
 0xc27   : > { %p9861_p5 = pnand %p9864_p3, %p10193_p8 }
 0xc29   : > { %10027 = dma.done.wait (!%p9861_p5), %s8349_s29, 128  }
 0xc2a   : > { %10029 = vsyncadd (!%p9861_p5), %s8349_s29, 4294967168  ;;  %s26_s30 = sadd.s32 1, %s10052_s30   ;;  %s11211_s28 = sld [smem:[#allocation8_spill]] }
 0xc2b   : > { %p23_p6 = scmp.ge.s32.totalorder %s26_s30, 4   ;;  %s11212_s29 = sld [smem:[#allocation9_spill]] }
 0xc2c   : > { %s11213_s25 = smov %s10036_s26  ;;  %s11214_s26 = smov %s10040_s27 }
 0xc2d   : > { %s11215_s27 = smov %s10199_s21  ;;  %25 = sbr.rel (!%p23_p6) target bundleno = 7 (0x7), region = 142 }
 0xc34   :  { %8354 = vsyncpa [#allocation6], 1 }
 0xc35   :  { %8356 = vsyncpa [#allocation6 + $0x1], 1 }

</bundles_post_ra>
